<compile_context>
chip_gen: v6e
topology: v6e:2x2x1
jax: 0.10.0
libtpu: 0.0.40
codegen_flags: <defaults>
</compile_context>

<pallas_src>
import functools

import jax
import jax.numpy as jnp
import numpy as np
from jax.experimental import pallas as pl
from jax.experimental.pallas import tpu as pltpu


def _rpe_attn_kernel(x_ref, gavg_ref, gexp_ref, gamma_ref, beta_ref,
                     wqkvT_ref, bqkv_ref, rk_ref, rq_ref, rv_ref,
                     wprojT_ref, bproj_ref, o_ref, heads_ref,
                     *, DB, T, C, H, Fh, scale, eps):
    xb = x_ref[0]                                           # (DB, T, C)

    # ---- GroupNorm: per-d stats over (T, channels-in-group) ----
    m1 = jnp.mean(xb, axis=1)                               # (DB, C) per-channel mean
    m2 = jnp.mean(xb * xb, axis=1)                          # (DB, C) per-channel E[x^2]
    mu_g = jnp.dot(m1, gavg_ref[...], preferred_element_type=jnp.float32)   # (DB, G)
    e2_g = jnp.dot(m2, gavg_ref[...], preferred_element_type=jnp.float32)   # (DB, G)
    mu = jnp.dot(mu_g, gexp_ref[...], preferred_element_type=jnp.float32)   # (DB, C)
    ex2 = jnp.dot(e2_g, gexp_ref[...], preferred_element_type=jnp.float32)  # (DB, C)
    inv = jax.lax.rsqrt(ex2 - mu * mu + eps)
    xn = (xb - mu[:, None, :]) * inv[:, None, :]
    xn = xn * gamma_ref[...] + beta_ref[...]                # (DB, T, C)
    xn2 = xn.reshape(DB * T, C)                             # token rows, (d, t) order

    # ---- fused qkv projection (single wide MXU matmul) ----
    qkv = jnp.dot(xn2, wqkvT_ref[...],
                  preferred_element_type=jnp.float32) + bqkv_ref[...]       # (DB*T, 3C)

    def to_heads(m):
        # (DB*T, C) -> (H*DB, T, Fh); batch index = h*DB + d
        parts = [m[:, h * Fh:(h + 1) * Fh] for h in range(H)]
        return jnp.stack(parts, axis=0).reshape(H * DB, T, Fh)

    qh = to_heads(qkv[:, :C] * scale)                       # q already scaled
    kh = to_heads(qkv[:, C:2 * C])
    vh = to_heads(qkv[:, 2 * C:3 * C])

    def head_slab(r):
        # (T, T, C) -> (H, T, T, Fh) per-head slabs (lane slices, no relayout)
        return jnp.stack([r[:, :, h * Fh:(h + 1) * Fh] for h in range(H)], axis=0)

    def tile_d(r):
        # (H, A, B, Fh) -> (H*DB*A, B, Fh), batch order (h, d, a)
        Hh, A, Bb, F = r.shape
        return jnp.broadcast_to(r[:, None], (Hh, DB, A, Bb, F)).reshape(Hh * DB * A, Bb, F)

    rk_h = head_slab(rk_ref[0])      # rk_h[h, t, s, f] = Rk[b, t, s, h, f]
    rq_h = head_slab(rq_ref[0])      # rq_h[h, t, s, f] = Rq[b, s, t, h, f]  (pre-transposed)
    rv_h = head_slab(rv_ref[0])      # rv_h[h, t, s, f] = Rv[b, t, s, h, f]

    # ---- attention scores: QK^T + rpe_k + rpe_q, batched over (h, d) ----
    scores = jnp.einsum('bqf,bkf->bqk', qh, kh,
                        preferred_element_type=jnp.float32)                 # (H*DB, T, T)

    # rpe_k: sum_f q[h,d,t,f] * Rk[t,s,h,f]  -> MXU, batched over (h, d, t)
    bias_k = jnp.einsum('bqf,bsf->bqs',
                        qh.reshape(H * DB * T, 1, Fh), tile_d(rk_h),
                        preferred_element_type=jnp.float32).reshape(H * DB, T, T)
    scores = scores + bias_k

    # rpe_q: sum_f (k*scale)[h,d,s,f] * Rq[s,t,h,f]
    # kept as a broadcast-reduce (transpose-free); R_q was pre-transposed in the wrapper.
    rq_t = jnp.broadcast_to(rq_h[:, None], (H, DB, T, T, Fh)).reshape(H * DB, T, T, Fh)
    kq = kh * scale
    scores = scores + jnp.sum(kq[:, None, :, :] * rq_t, axis=-1)            # (H*DB, T, T)

    # ---- softmax over the key axis (EUP reciprocal) ----
    scores = scores - jnp.max(scores, axis=-1, keepdims=True)
    p = jnp.exp(scores)
    p = p * pl.reciprocal(jnp.sum(p, axis=-1, keepdims=True), approx=True)

    # ---- AV + rpe_v, batched over (h, d) / (h, d, t) ----
    out_h = jnp.einsum('bts,bsf->btf', p, vh,
                       preferred_element_type=jnp.float32)                  # (H*DB, T, Fh)
    out_h = out_h + jnp.einsum('bqs,bsf->bqf',
                               p.reshape(H * DB * T, 1, T), tile_d(rv_h),
                               preferred_element_type=jnp.float32).reshape(H * DB, T, Fh)

    # ---- assemble heads into (DB*T, C) via lane-slice writes (no concat) ----
    for h in range(H):
        heads_ref[:, h * Fh:(h + 1) * Fh] = (
            out_h[h * DB:(h + 1) * DB].reshape(DB * T, Fh))

    out = jnp.dot(heads_ref[...], wprojT_ref[...],
                  preferred_element_type=jnp.float32) + bproj_ref[...]      # proj_out
    o_ref[0] = (xn2 + out).reshape(DB, T, C).astype(o_ref.dtype)            # residual w/ normed x


def _rpe_net_R(p, temb, pd, H, Fh):
    """RPENet forward: returns R of shape (B, T, T, H, Fh)."""
    B, T, _ = pd.shape
    de = jnp.stack([jnp.log1p(jnp.maximum(pd, 0.0)),
                    jnp.log1p(jnp.maximum(-pd, 0.0)),
                    (pd == 0).astype(jnp.float32)], axis=-1)                # (B, T, T, 3)
    t_emb = temb @ p["W_time"].T + p["b_time"]                              # (B, T, C)
    d_emb = de @ p["W_dist"].T + p["b_dist"]                                # (B, T, T, C)
    emb = t_emb[:, :, None, :] + d_emb
    hidden = emb * jax.nn.sigmoid(emb)                                      # SiLU
    r = hidden @ p["W_out"].T + p["b_out"]
    return r.reshape(B, T, T, H, Fh)


def _pick_db(D, T, cap=256):
    db = 1
    for cand in range(1, D + 1):
        if D % cand == 0 and cand * T <= cap:
            db = cand
    return db


def rpe_attention(x, temb, frame_indices, params, *, num_heads, num_groups=32,
                  d_block=None):
    B, D, C, T = x.shape
    H = num_heads
    assert C % H == 0 and C % num_groups == 0
    Fh = C // H
    G = num_groups
    cs = C // G
    scale = Fh ** -0.5

    DB = d_block if d_block is not None else _pick_db(D, T)
    assert D % DB == 0

    # pairwise relative distances and the three RPE tensors (plain-JAX glue)
    pd = frame_indices[:, :, None] - frame_indices[:, None, :]              # (B, T, T)
    Rk = _rpe_net_R(params["rpe_k"], temb, pd, H, Fh).reshape(B, T, T, C)
    Rq5 = _rpe_net_R(params["rpe_q"], temb, pd, H, Fh)
    Rq = jnp.transpose(Rq5, (0, 2, 1, 3, 4)).reshape(B, T, T, C)            # [b,t,s,:] = Rq[b,s,t,:]
    Rv = _rpe_net_R(params["rpe_v"], temb, pd, H, Fh).reshape(B, T, T, C)

    x_t = jnp.transpose(x, (0, 1, 3, 2))                                    # (B, D, T, C)

    # GroupNorm group-reduction matrices: (C, G) average-in, (G, C) expand-out
    gid = jnp.arange(C) // cs
    gavg = (gid[:, None] == jnp.arange(G)[None, :]).astype(jnp.float32) / cs
    gexp = (jnp.arange(G)[:, None] == gid[None, :]).astype(jnp.float32)

    kern = functools.partial(_rpe_attn_kernel, DB=DB, T=T, C=C, H=H, Fh=Fh,
                             scale=scale, eps=1e-5)

    def const2d(r, c):
        return pl.BlockSpec((r, c), lambda b, j: (0, 0))

    r_spec = pl.BlockSpec((1, T, T, C), lambda b, j: (b, 0, 0, 0))          # constant across j

    grid_spec = pltpu.PrefetchScalarGridSpec(
        num_scalar_prefetch=0,
        grid=(B, D // DB),                                                  # B outer, D inner
        in_specs=[
            pl.BlockSpec((1, DB, T, C), lambda b, j: (b, j, 0, 0)),         # x (token rows)
            const2d(C, G), const2d(G, C),                                   # group avg / expand
            const2d(1, C), const2d(1, C),                                   # gamma, beta
            const2d(C, 3 * C), const2d(1, 3 * C),                           # Wqkv^T, bqkv
            r_spec, r_spec, r_spec,                                         # R_k, R_q, R_v
            const2d(C, C), const2d(1, C),                                   # Wproj^T, bproj
        ],
        out_specs=pl.BlockSpec((1, DB, T, C), lambda b, j: (b, j, 0, 0)),
        scratch_shapes=[pltpu.VMEM((DB * T, C), jnp.float32)],              # head assembly
    )

    out_t = pl.pallas_call(
        kern,
        grid_spec=grid_spec,
        out_shape=jax.ShapeDtypeStruct((B, D, T, C), x.dtype),
        compiler_params=pltpu.CompilerParams(
            dimension_semantics=("parallel", "parallel")),
    )(x_t, gavg, gexp,
      params["gamma"][None, :], params["beta"][None, :],
      params["Wqkv"].T, params["bqkv"][None, :],
      Rk, Rq, Rv,
      params["Wproj"].T, params["bproj"][None, :])

    return jnp.transpose(out_t, (0, 1, 3, 2))                               # back to (B, D, C, T)


def reference(x, temb, frame_indices, params, *, num_heads, num_groups=32):
    """Pure-JAX transcription of RPEAttention._forward (attn_mask=None)."""
    B, D, C, T = x.shape
    H = num_heads
    Fh = C // H
    scale = Fh ** -0.5
    with jax.default_matmul_precision("float32"):
        xr = x.reshape(B * D, num_groups, C // num_groups, T)
        mu = xr.mean(axis=(2, 3), keepdims=True)
        var = ((xr - mu) ** 2).mean(axis=(2, 3), keepdims=True)
        xn = ((xr - mu) / jnp.sqrt(var + 1e-5)).reshape(B * D, C, T)
        xn = xn * params["gamma"][None, :, None] + params["beta"][None, :, None]
        xn = xn.reshape(B, D, C, T)
        xt = jnp.einsum("BDCT->BDTC", xn)
        qkv = xt @ params["Wqkv"].T + params["bqkv"]
        qkv = jnp.einsum("BDTtHF->tBDHTF", qkv.reshape(B, D, T, 3, H, Fh))
        q, k, v = qkv[0] * scale, qkv[1], qkv[2]
        attn = q @ jnp.swapaxes(k, -1, -2)
        pd = frame_indices[:, :, None] - frame_indices[:, None, :]
        Rk = _rpe_net_R(params["rpe_k"], temb, pd, H, Fh)
        Rq = _rpe_net_R(params["rpe_q"], temb, pd, H, Fh)
        Rv = _rpe_net_R(params["rpe_v"], temb, pd, H, Fh)
        attn = attn + jnp.einsum("bdhtf,btshf->bdhts", q, Rk)
        attn = attn + jnp.swapaxes(
            jnp.einsum("bdhtf,btshf->bdhts", k * scale, Rq), -1, -2)
        attn = jax.nn.softmax(attn, axis=-1)
        out = attn @ v
        out = out + jnp.einsum("bdhts,btshf->bdhtf", attn, Rv)
        out = jnp.einsum("BDHTF->BDTHF", out).reshape(B, D, T, C)
        out = out @ params["Wproj"].T + params["bproj"]
        return jnp.einsum("BDTC->BDCT", xt + out)


if __name__ == "__main__":
    B, D, C, T = 2, 4, 32, 8       # channels=32, seq (frames) T=8
    H, TED, G = 4, 16, 8           # num_heads=4 (head_dim=8), time_embed_dim=16, 8 groups

    keys = iter(jax.random.split(jax.random.PRNGKey(0), 32))

    def lin(out_f, in_f, s=0.3):
        return (jax.random.normal(next(keys), (out_f, in_f), jnp.float32) * s,
                jax.random.normal(next(keys), (out_f,), jnp.float32) * s)

    def rpe_params():
        W_d, b_d = lin(C, 3)
        W_t, b_t = lin(C, TED)
        W_o, b_o = lin(C, C)   # zero-initialized in the module; randomized here
        return dict(W_dist=W_d, b_dist=b_d, W_time=W_t, b_time=b_t,
                    W_out=W_o, b_out=b_o)

    Wqkv, bqkv = lin(3 * C, C)
    Wproj, bproj = lin(C, C)       # zero_module in the module; randomized here
    params = dict(
        gamma=1.0 + 0.1 * jax.random.normal(next(keys), (C,), jnp.float32),
        beta=0.1 * jax.random.normal(next(keys), (C,), jnp.float32),
        Wqkv=Wqkv, bqkv=bqkv, Wproj=Wproj, bproj=bproj,
        rpe_q=rpe_params(), rpe_k=rpe_params(), rpe_v=rpe_params(),
    )

    x = jax.random.normal(next(keys), (B, D, C, T), jnp.float32)
    temb = jax.random.normal(next(keys), (B, T, TED), jnp.float32)
    frame_indices = jax.random.randint(next(keys), (B, T), 0, 20).astype(jnp.float32)

    out = rpe_attention(x, temb, frame_indices, params, num_heads=H,
                        num_groups=G, d_block=2)
    out = jax.block_until_ready(out)

    ref = reference(x, temb, frame_indices, params, num_heads=H, num_groups=G)
    np.testing.assert_allclose(np.asarray(out), np.asarray(ref), rtol=5e-2, atol=5e-2)
    print("KERNEL_OK")
</pallas_src>

<mosaic_0001>
module attributes {stable_mosaic.version = 11 : i64} {
  func.func @_rpe_attn_kernel(%arg0: i32, %arg1: i32, %arg2: memref<1x2x8x32xf32, #tpu.memory_space<vmem>>, %arg3: memref<32x8xf32, #tpu.memory_space<vmem>>, %arg4: memref<8x32xf32, #tpu.memory_space<vmem>>, %arg5: memref<1x32xf32, #tpu.memory_space<vmem>>, %arg6: memref<1x32xf32, #tpu.memory_space<vmem>>, %arg7: memref<32x96xf32, #tpu.memory_space<vmem>>, %arg8: memref<1x96xf32, #tpu.memory_space<vmem>>, %arg9: memref<1x8x8x32xf32, #tpu.memory_space<vmem>>, %arg10: memref<1x8x8x32xf32, #tpu.memory_space<vmem>>, %arg11: memref<1x8x8x32xf32, #tpu.memory_space<vmem>>, %arg12: memref<32x32xf32, #tpu.memory_space<vmem>>, %arg13: memref<1x32xf32, #tpu.memory_space<vmem>>, %arg14: memref<1x2x8x32xf32, #tpu.memory_space<vmem>>, %arg15: memref<16x32xf32, #tpu.memory_space<vmem>>) attributes {dimension_semantics = [#tpu.dimension_semantics<parallel>, #tpu.dimension_semantics<parallel>], iteration_bounds = array<i64: 2, 2>, scalar_prefetch = 0 : i64, scratch_operands = 1 : i64, tpu.core_type = #tpu.core_type<tc>, window_params = [{transform_indices = @transform_0, window_bounds = array<i64: 1, 2, 8, 32>}, {pipeline_mode = #tpu.pipeline_mode<synchronous>, transform_indices = @transform_1, window_bounds = array<i64: 32, 8>}, {pipeline_mode = #tpu.pipeline_mode<synchronous>, transform_indices = @transform_2, window_bounds = array<i64: 8, 32>}, {pipeline_mode = #tpu.pipeline_mode<synchronous>, transform_indices = @transform_3, window_bounds = array<i64: 1, 32>}, {pipeline_mode = #tpu.pipeline_mode<synchronous>, transform_indices = @transform_4, window_bounds = array<i64: 1, 32>}, {pipeline_mode = #tpu.pipeline_mode<synchronous>, transform_indices = @transform_5, window_bounds = array<i64: 32, 96>}, {pipeline_mode = #tpu.pipeline_mode<synchronous>, transform_indices = @transform_6, window_bounds = array<i64: 1, 96>}, {transform_indices = @transform_7, window_bounds = array<i64: 1, 8, 8, 32>}, {transform_indices = @transform_8, window_bounds = array<i64: 1, 8, 8, 32>}, {transform_indices = @transform_9, window_bounds = array<i64: 1, 8, 8, 32>}, {pipeline_mode = #tpu.pipeline_mode<synchronous>, transform_indices = @transform_10, window_bounds = array<i64: 32, 32>}, {pipeline_mode = #tpu.pipeline_mode<synchronous>, transform_indices = @transform_11, window_bounds = array<i64: 1, 32>}, {transform_indices = @transform_12, window_bounds = array<i64: 1, 2, 8, 32>}]} {
    %c0 = arith.constant 0 : index
    %c0_0 = arith.constant 0 : index
    %c0_1 = arith.constant 0 : index
    %c0_2 = arith.constant 0 : index
    %0 = vector.load %arg2[%c0, %c0_0, %c0_1, %c0_2] : memref<1x2x8x32xf32, #tpu.memory_space<vmem>>, vector<1x2x8x32xf32>
    %1 = vector.shape_cast %0 : vector<1x2x8x32xf32> to vector<2x8x32xf32>
    %cst = arith.constant dense<0.000000e+00> : vector<2x32xf32>
    %2 = vector.multi_reduction <add>, %1, %cst [1] : vector<2x8x32xf32> to vector<2x32xf32>
    %cst_3 = arith.constant 8.000000e+00 : f32
    %3 = vector.broadcast %cst_3 : f32 to vector<2x32xf32>
    %4 = arith.divf %2, %3 : vector<2x32xf32>
    %5 = arith.mulf %1, %1 : vector<2x8x32xf32>
    %cst_4 = arith.constant dense<0.000000e+00> : vector<2x32xf32>
    %6 = vector.multi_reduction <add>, %5, %cst_4 [1] : vector<2x8x32xf32> to vector<2x32xf32>
    %cst_5 = arith.constant 8.000000e+00 : f32
    %7 = vector.broadcast %cst_5 : f32 to vector<2x32xf32>
    %8 = arith.divf %6, %7 : vector<2x32xf32>
    %c0_6 = arith.constant 0 : index
    %c0_7 = arith.constant 0 : index
    %9 = vector.load %arg3[%c0_6, %c0_7] : memref<32x8xf32, #tpu.memory_space<vmem>>, vector<32x8xf32>
    %cst_8 = arith.constant dense<0.000000e+00> : vector<2x8xf32>
    %10 = tpu.matmul %4, %9, %cst_8 {dimension_numbers = #tpu.dot_dimension_numbers<[1], [0], [0], [1], [0, 0, 1, 1], [], []>} : vector<2x32xf32>, vector<32x8xf32>, vector<2x8xf32> -> vector<2x8xf32>
    %c0_9 = arith.constant 0 : index
    %c0_10 = arith.constant 0 : index
    %11 = vector.load %arg3[%c0_9, %c0_10] : memref<32x8xf32, #tpu.memory_space<vmem>>, vector<32x8xf32>
    %cst_11 = arith.constant dense<0.000000e+00> : vector<2x8xf32>
    %12 = tpu.matmul %8, %11, %cst_11 {dimension_numbers = #tpu.dot_dimension_numbers<[1], [0], [0], [1], [0, 0, 1, 1], [], []>} : vector<2x32xf32>, vector<32x8xf32>, vector<2x8xf32> -> vector<2x8xf32>
    %c0_12 = arith.constant 0 : index
    %c0_13 = arith.constant 0 : index
    %13 = vector.load %arg4[%c0_12, %c0_13] : memref<8x32xf32, #tpu.memory_space<vmem>>, vector<8x32xf32>
    %cst_14 = arith.constant dense<0.000000e+00> : vector<2x32xf32>
    %14 = tpu.matmul %10, %13, %cst_14 {dimension_numbers = #tpu.dot_dimension_numbers<[1], [0], [0], [1], [0, 0, 1, 1], [], []>} : vector<2x8xf32>, vector<8x32xf32>, vector<2x32xf32> -> vector<2x32xf32>
    %c0_15 = arith.constant 0 : index
    %c0_16 = arith.constant 0 : index
    %15 = vector.load %arg4[%c0_15, %c0_16] : memref<8x32xf32, #tpu.memory_space<vmem>>, vector<8x32xf32>
    %cst_17 = arith.constant dense<0.000000e+00> : vector<2x32xf32>
    %16 = tpu.matmul %12, %15, %cst_17 {dimension_numbers = #tpu.dot_dimension_numbers<[1], [0], [0], [1], [0, 0, 1, 1], [], []>} : vector<2x8xf32>, vector<8x32xf32>, vector<2x32xf32> -> vector<2x32xf32>
    %17 = arith.mulf %14, %14 : vector<2x32xf32>
    %18 = arith.subf %16, %17 : vector<2x32xf32>
    %cst_18 = arith.constant 9.99999974E-6 : f32
    %19 = vector.broadcast %cst_18 : f32 to vector<2x32xf32>
    %20 = arith.addf %18, %19 : vector<2x32xf32>
    %21 = math.rsqrt %20 : vector<2x32xf32>
    %22 = vector.shape_cast %14 : vector<2x32xf32> to vector<2x1x32xf32>
    %23 = vector.broadcast %22 : vector<2x1x32xf32> to vector<2x8x32xf32>
    %24 = arith.subf %1, %23 : vector<2x8x32xf32>
    %25 = vector.shape_cast %21 : vector<2x32xf32> to vector<2x1x32xf32>
    %26 = vector.broadcast %25 : vector<2x1x32xf32> to vector<2x8x32xf32>
    %27 = arith.mulf %24, %26 : vector<2x8x32xf32>
    %c0_19 = arith.constant 0 : index
    %c0_20 = arith.constant 0 : index
    %28 = vector.load %arg5[%c0_19, %c0_20] : memref<1x32xf32, #tpu.memory_space<vmem>>, vector<1x32xf32>
    %29 = vector.shape_cast %28 : vector<1x32xf32> to vector<1x1x32xf32>
    %30 = vector.broadcast %29 : vector<1x1x32xf32> to vector<2x8x32xf32>
    %31 = arith.mulf %27, %30 : vector<2x8x32xf32>
    %c0_21 = arith.constant 0 : index
    %c0_22 = arith.constant 0 : index
    %32 = vector.load %arg6[%c0_21, %c0_22] : memref<1x32xf32, #tpu.memory_space<vmem>>, vector<1x32xf32>
    %33 = vector.shape_cast %32 : vector<1x32xf32> to vector<1x1x32xf32>
    %34 = vector.broadcast %33 : vector<1x1x32xf32> to vector<2x8x32xf32>
    %35 = arith.addf %31, %34 : vector<2x8x32xf32>
    %36 = vector.shape_cast %35 : vector<2x8x32xf32> to vector<16x32xf32>
    %c0_23 = arith.constant 0 : index
    %c0_24 = arith.constant 0 : index
    %37 = vector.load %arg7[%c0_23, %c0_24] : memref<32x96xf32, #tpu.memory_space<vmem>>, vector<32x96xf32>
    %cst_25 = arith.constant dense<0.000000e+00> : vector<16x96xf32>
    %38 = tpu.matmul %36, %37, %cst_25 {dimension_numbers = #tpu.dot_dimension_numbers<[1], [0], [0], [1], [0, 0, 1, 1], [], []>} : vector<16x32xf32>, vector<32x96xf32>, vector<16x96xf32> -> vector<16x96xf32>
    %c0_26 = arith.constant 0 : index
    %c0_27 = arith.constant 0 : index
    %39 = vector.load %arg8[%c0_26, %c0_27] : memref<1x96xf32, #tpu.memory_space<vmem>>, vector<1x96xf32>
    %40 = vector.broadcast %39 : vector<1x96xf32> to vector<16x96xf32>
    %41 = arith.addf %38, %40 : vector<16x96xf32>
    %42 = vector.extract_strided_slice %41 {offsets = [0, 0], sizes = [16, 32], strides = [1, 1]} : vector<16x96xf32> to vector<16x32xf32>
    %cst_28 = arith.constant 0.353553385 : f32
    %43 = vector.broadcast %cst_28 : f32 to vector<16x32xf32>
    %44 = arith.mulf %42, %43 : vector<16x32xf32>
    %45 = vector.extract_strided_slice %44 {offsets = [0, 0], sizes = [16, 8], strides = [1, 1]} : vector<16x32xf32> to vector<16x8xf32>
    %46 = vector.extract_strided_slice %44 {offsets = [0, 8], sizes = [16, 8], strides = [1, 1]} : vector<16x32xf32> to vector<16x8xf32>
    %47 = vector.extract_strided_slice %44 {offsets = [0, 16], sizes = [16, 8], strides = [1, 1]} : vector<16x32xf32> to vector<16x8xf32>
    %48 = vector.extract_strided_slice %44 {offsets = [0, 24], sizes = [16, 8], strides = [1, 1]} : vector<16x32xf32> to vector<16x8xf32>
    %49 = vector.shape_cast %45 : vector<16x8xf32> to vector<1x16x8xf32>
    %50 = vector.shape_cast %46 : vector<16x8xf32> to vector<1x16x8xf32>
    %51 = vector.shape_cast %47 : vector<16x8xf32> to vector<1x16x8xf32>
    %52 = vector.shape_cast %48 : vector<16x8xf32> to vector<1x16x8xf32>
    %53 = tpu.concatenate %49, %50, %51, %52 in 0 : vector<1x16x8xf32>, vector<1x16x8xf32>, vector<1x16x8xf32>, vector<1x16x8xf32> -> vector<4x16x8xf32>
    %54 = vector.shape_cast %53 : vector<4x16x8xf32> to vector<8x8x8xf32>
    %55 = vector.extract_strided_slice %41 {offsets = [0, 32], sizes = [16, 32], strides = [1, 1]} : vector<16x96xf32> to vector<16x32xf32>
    %56 = vector.extract_strided_slice %55 {offsets = [0, 0], sizes = [16, 8], strides = [1, 1]} : vector<16x32xf32> to vector<16x8xf32>
    %57 = vector.extract_strided_slice %55 {offsets = [0, 8], sizes = [16, 8], strides = [1, 1]} : vector<16x32xf32> to vector<16x8xf32>
    %58 = vector.extract_strided_slice %55 {offsets = [0, 16], sizes = [16, 8], strides = [1, 1]} : vector<16x32xf32> to vector<16x8xf32>
    %59 = vector.extract_strided_slice %55 {offsets = [0, 24], sizes = [16, 8], strides = [1, 1]} : vector<16x32xf32> to vector<16x8xf32>
    %60 = vector.shape_cast %56 : vector<16x8xf32> to vector<1x16x8xf32>
    %61 = vector.shape_cast %57 : vector<16x8xf32> to vector<1x16x8xf32>
    %62 = vector.shape_cast %58 : vector<16x8xf32> to vector<1x16x8xf32>
    %63 = vector.shape_cast %59 : vector<16x8xf32> to vector<1x16x8xf32>
    %64 = tpu.concatenate %60, %61, %62, %63 in 0 : vector<1x16x8xf32>, vector<1x16x8xf32>, vector<1x16x8xf32>, vector<1x16x8xf32> -> vector<4x16x8xf32>
    %65 = vector.shape_cast %64 : vector<4x16x8xf32> to vector<8x8x8xf32>
    %66 = vector.extract_strided_slice %41 {offsets = [0, 64], sizes = [16, 32], strides = [1, 1]} : vector<16x96xf32> to vector<16x32xf32>
    %67 = vector.extract_strided_slice %66 {offsets = [0, 0], sizes = [16, 8], strides = [1, 1]} : vector<16x32xf32> to vector<16x8xf32>
    %68 = vector.extract_strided_slice %66 {offsets = [0, 8], sizes = [16, 8], strides = [1, 1]} : vector<16x32xf32> to vector<16x8xf32>
    %69 = vector.extract_strided_slice %66 {offsets = [0, 16], sizes = [16, 8], strides = [1, 1]} : vector<16x32xf32> to vector<16x8xf32>
    %70 = vector.extract_strided_slice %66 {offsets = [0, 24], sizes = [16, 8], strides = [1, 1]} : vector<16x32xf32> to vector<16x8xf32>
    %71 = vector.shape_cast %67 : vector<16x8xf32> to vector<1x16x8xf32>
    %72 = vector.shape_cast %68 : vector<16x8xf32> to vector<1x16x8xf32>
    %73 = vector.shape_cast %69 : vector<16x8xf32> to vector<1x16x8xf32>
    %74 = vector.shape_cast %70 : vector<16x8xf32> to vector<1x16x8xf32>
    %75 = tpu.concatenate %71, %72, %73, %74 in 0 : vector<1x16x8xf32>, vector<1x16x8xf32>, vector<1x16x8xf32>, vector<1x16x8xf32> -> vector<4x16x8xf32>
    %76 = vector.shape_cast %75 : vector<4x16x8xf32> to vector<8x8x8xf32>
    %c0_29 = arith.constant 0 : index
    %c0_30 = arith.constant 0 : index
    %c0_31 = arith.constant 0 : index
    %c0_32 = arith.constant 0 : index
    %77 = vector.load %arg9[%c0_29, %c0_30, %c0_31, %c0_32] : memref<1x8x8x32xf32, #tpu.memory_space<vmem>>, vector<1x8x8x32xf32>
    %78 = vector.shape_cast %77 : vector<1x8x8x32xf32> to vector<8x8x32xf32>
    %79 = vector.extract_strided_slice %78 {offsets = [0, 0, 0], sizes = [8, 8, 8], strides = [1, 1, 1]} : vector<8x8x32xf32> to vector<8x8x8xf32>
    %80 = vector.extract_strided_slice %78 {offsets = [0, 0, 8], sizes = [8, 8, 8], strides = [1, 1, 1]} : vector<8x8x32xf32> to vector<8x8x8xf32>
    %81 = vector.extract_strided_slice %78 {offsets = [0, 0, 16], sizes = [8, 8, 8], strides = [1, 1, 1]} : vector<8x8x32xf32> to vector<8x8x8xf32>
    %82 = vector.extract_strided_slice %78 {offsets = [0, 0, 24], sizes = [8, 8, 8], strides = [1, 1, 1]} : vector<8x8x32xf32> to vector<8x8x8xf32>
    %83 = vector.shape_cast %79 : vector<8x8x8xf32> to vector<1x8x8x8xf32>
    %84 = vector.shape_cast %80 : vector<8x8x8xf32> to vector<1x8x8x8xf32>
    %85 = vector.shape_cast %81 : vector<8x8x8xf32> to vector<1x8x8x8xf32>
    %86 = vector.shape_cast %82 : vector<8x8x8xf32> to vector<1x8x8x8xf32>
    %87 = tpu.concatenate %83, %84, %85, %86 in 0 : vector<1x8x8x8xf32>, vector<1x8x8x8xf32>, vector<1x8x8x8xf32>, vector<1x8x8x8xf32> -> vector<4x8x8x8xf32>
    %c0_33 = arith.constant 0 : index
    %c0_34 = arith.constant 0 : index
    %c0_35 = arith.constant 0 : index
    %c0_36 = arith.constant 0 : index
    %88 = vector.load %arg10[%c0_33, %c0_34, %c0_35, %c0_36] : memref<1x8x8x32xf32, #tpu.memory_space<vmem>>, vector<1x8x8x32xf32>
    %89 = vector.shape_cast %88 : vector<1x8x8x32xf32> to vector<8x8x32xf32>
    %90 = vector.extract_strided_slice %89 {offsets = [0, 0, 0], sizes = [8, 8, 8], strides = [1, 1, 1]} : vector<8x8x32xf32> to vector<8x8x8xf32>
    %91 = vector.extract_strided_slice %89 {offsets = [0, 0, 8], sizes = [8, 8, 8], strides = [1, 1, 1]} : vector<8x8x32xf32> to vector<8x8x8xf32>
    %92 = vector.extract_strided_slice %89 {offsets = [0, 0, 16], sizes = [8, 8, 8], strides = [1, 1, 1]} : vector<8x8x32xf32> to vector<8x8x8xf32>
    %93 = vector.extract_strided_slice %89 {offsets = [0, 0, 24], sizes = [8, 8, 8], strides = [1, 1, 1]} : vector<8x8x32xf32> to vector<8x8x8xf32>
    %94 = vector.shape_cast %90 : vector<8x8x8xf32> to vector<1x8x8x8xf32>
    %95 = vector.shape_cast %91 : vector<8x8x8xf32> to vector<1x8x8x8xf32>
    %96 = vector.shape_cast %92 : vector<8x8x8xf32> to vector<1x8x8x8xf32>
    %97 = vector.shape_cast %93 : vector<8x8x8xf32> to vector<1x8x8x8xf32>
    %98 = tpu.concatenate %94, %95, %96, %97 in 0 : vector<1x8x8x8xf32>, vector<1x8x8x8xf32>, vector<1x8x8x8xf32>, vector<1x8x8x8xf32> -> vector<4x8x8x8xf32>
    %c0_37 = arith.constant 0 : index
    %c0_38 = arith.constant 0 : index
    %c0_39 = arith.constant 0 : index
    %c0_40 = arith.constant 0 : index
    %99 = vector.load %arg11[%c0_37, %c0_38, %c0_39, %c0_40] : memref<1x8x8x32xf32, #tpu.memory_space<vmem>>, vector<1x8x8x32xf32>
    %100 = vector.shape_cast %99 : vector<1x8x8x32xf32> to vector<8x8x32xf32>
    %101 = vector.extract_strided_slice %100 {offsets = [0, 0, 0], sizes = [8, 8, 8], strides = [1, 1, 1]} : vector<8x8x32xf32> to vector<8x8x8xf32>
    %102 = vector.extract_strided_slice %100 {offsets = [0, 0, 8], sizes = [8, 8, 8], strides = [1, 1, 1]} : vector<8x8x32xf32> to vector<8x8x8xf32>
    %103 = vector.extract_strided_slice %100 {offsets = [0, 0, 16], sizes = [8, 8, 8], strides = [1, 1, 1]} : vector<8x8x32xf32> to vector<8x8x8xf32>
    %104 = vector.extract_strided_slice %100 {offsets = [0, 0, 24], sizes = [8, 8, 8], strides = [1, 1, 1]} : vector<8x8x32xf32> to vector<8x8x8xf32>
    %105 = vector.shape_cast %101 : vector<8x8x8xf32> to vector<1x8x8x8xf32>
    %106 = vector.shape_cast %102 : vector<8x8x8xf32> to vector<1x8x8x8xf32>
    %107 = vector.shape_cast %103 : vector<8x8x8xf32> to vector<1x8x8x8xf32>
    %108 = vector.shape_cast %104 : vector<8x8x8xf32> to vector<1x8x8x8xf32>
    %109 = tpu.concatenate %105, %106, %107, %108 in 0 : vector<1x8x8x8xf32>, vector<1x8x8x8xf32>, vector<1x8x8x8xf32>, vector<1x8x8x8xf32> -> vector<4x8x8x8xf32>
    "tpu.trace_start"() <{level = 10 : i32, message = "bqf,bkf->bqk"}> : () -> ()
    %cst_41 = arith.constant dense<0.000000e+00> : vector<8x8x8xf32>
    %110 = tpu.matmul %54, %65, %cst_41 {dimension_numbers = #tpu.dot_dimension_numbers<[2], [2], [1], [1], [0, 0, 0, 1, 1, 1], [0], [0]>} : vector<8x8x8xf32>, vector<8x8x8xf32>, vector<8x8x8xf32> -> vector<8x8x8xf32>
    "tpu.trace_stop"() : () -> ()
    %111 = vector.shape_cast %54 : vector<8x8x8xf32> to vector<64x1x8xf32>
    %112 = vector.shape_cast %87 : vector<4x8x8x8xf32> to vector<4x1x8x8x8xf32>
    %113 = vector.shape_cast %112 : vector<4x1x8x8x8xf32> to vector<4x1x8x8x8xf32>
    %114 = vector.broadcast %113 : vector<4x1x8x8x8xf32> to vector<4x2x8x8x8xf32>
    %115 = vector.shape_cast %114 : vector<4x2x8x8x8xf32> to vector<64x8x8xf32>
    "tpu.trace_start"() <{level = 10 : i32, message = "bqf,bsf->bqs"}> : () -> ()
    %cst_42 = arith.constant dense<0.000000e+00> : vector<64x1x8xf32>
    %116 = tpu.matmul %111, %115, %cst_42 {dimension_numbers = #tpu.dot_dimension_numbers<[2], [2], [1], [1], [0, 0, 0, 1, 1, 1], [0], [0]>} : vector<64x1x8xf32>, vector<64x8x8xf32>, vector<64x1x8xf32> -> vector<64x1x8xf32>
    "tpu.trace_stop"() : () -> ()
    %117 = vector.shape_cast %116 : vector<64x1x8xf32> to vector<8x8x8xf32>
    %118 = arith.addf %110, %117 : vector<8x8x8xf32>
    %119 = vector.shape_cast %98 : vector<4x8x8x8xf32> to vector<4x1x8x8x8xf32>
    %120 = vector.shape_cast %119 : vector<4x1x8x8x8xf32> to vector<4x1x8x8x8xf32>
    %121 = vector.broadcast %120 : vector<4x1x8x8x8xf32> to vector<4x2x8x8x8xf32>
    %122 = vector.shape_cast %121 : vector<4x2x8x8x8xf32> to vector<8x8x8x8xf32>
    %cst_43 = arith.constant 0.353553385 : f32
    %123 = vector.broadcast %cst_43 : f32 to vector<8x8x8xf32>
    %124 = arith.mulf %65, %123 : vector<8x8x8xf32>
    %125 = vector.shape_cast %124 : vector<8x8x8xf32> to vector<8x1x8x8xf32>
    %126 = vector.broadcast %125 : vector<8x1x8x8xf32> to vector<8x8x8x8xf32>
    %127 = arith.mulf %126, %122 : vector<8x8x8x8xf32>
    %cst_44 = arith.constant dense<0.000000e+00> : vector<8x8x8xf32>
    %128 = vector.multi_reduction <add>, %127, %cst_44 [3] : vector<8x8x8x8xf32> to vector<8x8x8xf32>
    %129 = arith.addf %118, %128 : vector<8x8x8xf32>
    %cst_45 = arith.constant dense<0xFF800000> : vector<8x8xf32>
    %130 = vector.multi_reduction <maximumf>, %129, %cst_45 [2] : vector<8x8x8xf32> to vector<8x8xf32>
    %131 = vector.shape_cast %130 : vector<8x8xf32> to vector<8x8x1xf32>
    %132 = vector.broadcast %131 : vector<8x8x1xf32> to vector<8x8x8xf32>
    %133 = arith.subf %129, %132 : vector<8x8x8xf32>
    %134 = math.exp %133 : vector<8x8x8xf32>
    %cst_46 = arith.constant dense<0.000000e+00> : vector<8x8xf32>
    %135 = vector.multi_reduction <add>, %134, %cst_46 [2] : vector<8x8x8xf32> to vector<8x8xf32>
    %136 = vector.shape_cast %135 : vector<8x8xf32> to vector<8x8x1xf32>
    %137 = tpu.reciprocal %136 {approx = true} : vector<8x8x1xf32> -> vector<8x8x1xf32>
    %138 = vector.broadcast %137 : vector<8x8x1xf32> to vector<8x8x8xf32>
    %139 = arith.mulf %134, %138 : vector<8x8x8xf32>
    "tpu.trace_start"() <{level = 10 : i32, message = "bts,bsf->btf"}> : () -> ()
    %cst_47 = arith.constant dense<0.000000e+00> : vector<8x8x8xf32>
    %140 = tpu.matmul %139, %76, %cst_47 {dimension_numbers = #tpu.dot_dimension_numbers<[2], [1], [1], [2], [0, 0, 0, 1, 1, 2], [0], [0]>} : vector<8x8x8xf32>, vector<8x8x8xf32>, vector<8x8x8xf32> -> vector<8x8x8xf32>
    "tpu.trace_stop"() : () -> ()
    %141 = vector.shape_cast %139 : vector<8x8x8xf32> to vector<64x1x8xf32>
    %142 = vector.shape_cast %109 : vector<4x8x8x8xf32> to vector<4x1x8x8x8xf32>
    %143 = vector.shape_cast %142 : vector<4x1x8x8x8xf32> to vector<4x1x8x8x8xf32>
    %144 = vector.broadcast %143 : vector<4x1x8x8x8xf32> to vector<4x2x8x8x8xf32>
    %145 = vector.shape_cast %144 : vector<4x2x8x8x8xf32> to vector<64x8x8xf32>
    "tpu.trace_start"() <{level = 10 : i32, message = "bqs,bsf->bqf"}> : () -> ()
    %cst_48 = arith.constant dense<0.000000e+00> : vector<64x1x8xf32>
    %146 = tpu.matmul %141, %145, %cst_48 {dimension_numbers = #tpu.dot_dimension_numbers<[2], [1], [1], [2], [0, 0, 0, 1, 1, 2], [0], [0]>} : vector<64x1x8xf32>, vector<64x8x8xf32>, vector<64x1x8xf32> -> vector<64x1x8xf32>
    "tpu.trace_stop"() : () -> ()
    %147 = vector.shape_cast %146 : vector<64x1x8xf32> to vector<8x8x8xf32>
    %148 = arith.addf %140, %147 : vector<8x8x8xf32>
    %149 = vector.extract_strided_slice %148 {offsets = [0, 0, 0], sizes = [2, 8, 8], strides = [1, 1, 1]} : vector<8x8x8xf32> to vector<2x8x8xf32>
    %150 = vector.shape_cast %149 : vector<2x8x8xf32> to vector<16x8xf32>
    %c0_49 = arith.constant 0 : index
    %c0_50 = arith.constant 0 : index
    %151 = vector.load %arg15[%c0_49, %c0_50] : memref<16x32xf32, #tpu.memory_space<vmem>>, vector<16x8xf32>
    tpu.vector_store %arg15[%c0_49, %c0_50], %150 {strides = array<i32>} : memref<16x32xf32, #tpu.memory_space<vmem>>, vector<16x8xf32>,
    %152 = vector.extract_strided_slice %148 {offsets = [2, 0, 0], sizes = [2, 8, 8], strides = [1, 1, 1]} : vector<8x8x8xf32> to vector<2x8x8xf32>
    %153 = vector.shape_cast %152 : vector<2x8x8xf32> to vector<16x8xf32>
    %c0_51 = arith.constant 0 : index
    %c8 = arith.constant 8 : index
    %154 = vector.load %arg15[%c0_51, %c8] : memref<16x32xf32, #tpu.memory_space<vmem>>, vector<16x8xf32>
    tpu.vector_store %arg15[%c0_51, %c8], %153 {strides = array<i32>} : memref<16x32xf32, #tpu.memory_space<vmem>>, vector<16x8xf32>,
    %155 = vector.extract_strided_slice %148 {offsets = [4, 0, 0], sizes = [2, 8, 8], strides = [1, 1, 1]} : vector<8x8x8xf32> to vector<2x8x8xf32>
    %156 = vector.shape_cast %155 : vector<2x8x8xf32> to vector<16x8xf32>
    %c0_52 = arith.constant 0 : index
    %c16 = arith.constant 16 : index
    %157 = vector.load %arg15[%c0_52, %c16] : memref<16x32xf32, #tpu.memory_space<vmem>>, vector<16x8xf32>
    tpu.vector_store %arg15[%c0_52, %c16], %156 {strides = array<i32>} : memref<16x32xf32, #tpu.memory_space<vmem>>, vector<16x8xf32>,
    %158 = vector.extract_strided_slice %148 {offsets = [6, 0, 0], sizes = [2, 8, 8], strides = [1, 1, 1]} : vector<8x8x8xf32> to vector<2x8x8xf32>
    %159 = vector.shape_cast %158 : vector<2x8x8xf32> to vector<16x8xf32>
    %c0_53 = arith.constant 0 : index
    %c24 = arith.constant 24 : index
    %160 = vector.load %arg15[%c0_53, %c24] : memref<16x32xf32, #tpu.memory_space<vmem>>, vector<16x8xf32>
    tpu.vector_store %arg15[%c0_53, %c24], %159 {strides = array<i32>} : memref<16x32xf32, #tpu.memory_space<vmem>>, vector<16x8xf32>,
    %c0_54 = arith.constant 0 : index
    %c0_55 = arith.constant 0 : index
    %161 = vector.load %arg15[%c0_54, %c0_55] : memref<16x32xf32, #tpu.memory_space<vmem>>, vector<16x32xf32>
    %c0_56 = arith.constant 0 : index
    %c0_57 = arith.constant 0 : index
    %162 = vector.load %arg12[%c0_56, %c0_57] : memref<32x32xf32, #tpu.memory_space<vmem>>, vector<32x32xf32>
    %cst_58 = arith.constant dense<0.000000e+00> : vector<16x32xf32>
    %163 = tpu.matmul %161, %162, %cst_58 {dimension_numbers = #tpu.dot_dimension_numbers<[1], [0], [0], [1], [0, 0, 1, 1], [], []>} : vector<16x32xf32>, vector<32x32xf32>, vector<16x32xf32> -> vector<16x32xf32>
    %c0_59 = arith.constant 0 : index
    %c0_60 = arith.constant 0 : index
    %164 = vector.load %arg13[%c0_59, %c0_60] : memref<1x32xf32, #tpu.memory_space<vmem>>, vector<1x32xf32>
    %165 = vector.broadcast %164 : vector<1x32xf32> to vector<16x32xf32>
    %166 = arith.addf %163, %165 : vector<16x32xf32>
    %167 = arith.addf %36, %166 : vector<16x32xf32>
    %168 = vector.shape_cast %167 : vector<16x32xf32> to vector<2x8x32xf32>
    %c0_61 = arith.constant 0 : index
    %c0_62 = arith.constant 0 : index
    %c0_63 = arith.constant 0 : index
    %c0_64 = arith.constant 0 : index
    %169 = vector.load %arg14[%c0_61, %c0_62, %c0_63, %c0_64] : memref<1x2x8x32xf32, #tpu.memory_space<vmem>>, vector<1x2x8x32xf32>
    %170 = vector.shape_cast %169 : vector<1x2x8x32xf32> to vector<2x8x32xf32>
    %171 = vector.shape_cast %168 : vector<2x8x32xf32> to vector<1x2x8x32xf32>
    tpu.vector_store %arg14[%c0_61, %c0_62, %c0_63, %c0_64], %171 {strides = array<i32>} : memref<1x2x8x32xf32, #tpu.memory_space<vmem>>, vector<1x2x8x32xf32>,
    return
  }
  func.func @transform_0(%arg0: i32, %arg1: i32) -> (i32, i32, i32, i32) {
    %c0_i32 = arith.constant 0 : i32
    %c0_i32_0 = arith.constant 0 : i32
    %c0_i32_1 = arith.constant 0 : i32
    return %arg0, %arg1, %c0_i32, %c0_i32_0 : i32, i32, i32, i32
  }
  func.func @transform_1(%arg0: i32, %arg1: i32) -> (i32, i32) {
    %c0_i32 = arith.constant 0 : i32
    %c0_i32_0 = arith.constant 0 : i32
    %c0_i32_1 = arith.constant 0 : i32
    return %c0_i32, %c0_i32_0 : i32, i32
  }
  func.func @transform_2(%arg0: i32, %arg1: i32) -> (i32, i32) {
    %c0_i32 = arith.constant 0 : i32
    %c0_i32_0 = arith.constant 0 : i32
    %c0_i32_1 = arith.constant 0 : i32
    return %c0_i32, %c0_i32_0 : i32, i32
  }
  func.func @transform_3(%arg0: i32, %arg1: i32) -> (i32, i32) {
    %c0_i32 = arith.constant 0 : i32
    %c0_i32_0 = arith.constant 0 : i32
    %c0_i32_1 = arith.constant 0 : i32
    return %c0_i32, %c0_i32_0 : i32, i32
  }
  func.func @transform_4(%arg0: i32, %arg1: i32) -> (i32, i32) {
    %c0_i32 = arith.constant 0 : i32
    %c0_i32_0 = arith.constant 0 : i32
    %c0_i32_1 = arith.constant 0 : i32
    return %c0_i32, %c0_i32_0 : i32, i32
  }
  func.func @transform_5(%arg0: i32, %arg1: i32) -> (i32, i32) {
    %c0_i32 = arith.constant 0 : i32
    %c0_i32_0 = arith.constant 0 : i32
    %c0_i32_1 = arith.constant 0 : i32
    return %c0_i32, %c0_i32_0 : i32, i32
  }
  func.func @transform_6(%arg0: i32, %arg1: i32) -> (i32, i32) {
    %c0_i32 = arith.constant 0 : i32
    %c0_i32_0 = arith.constant 0 : i32
    %c0_i32_1 = arith.constant 0 : i32
    return %c0_i32, %c0_i32_0 : i32, i32
  }
  func.func @transform_7(%arg0: i32, %arg1: i32) -> (i32, i32, i32, i32) {
    %c0_i32 = arith.constant 0 : i32
    %c0_i32_0 = arith.constant 0 : i32
    %c0_i32_1 = arith.constant 0 : i32
    %c0_i32_2 = arith.constant 0 : i32
    return %arg0, %c0_i32, %c0_i32_0, %c0_i32_1 : i32, i32, i32, i32
  }
  func.func @transform_8(%arg0: i32, %arg1: i32) -> (i32, i32, i32, i32) {
    %c0_i32 = arith.constant 0 : i32
    %c0_i32_0 = arith.constant 0 : i32
    %c0_i32_1 = arith.constant 0 : i32
    %c0_i32_2 = arith.constant 0 : i32
    return %arg0, %c0_i32, %c0_i32_0, %c0_i32_1 : i32, i32, i32, i32
  }
  func.func @transform_9(%arg0: i32, %arg1: i32) -> (i32, i32, i32, i32) {
    %c0_i32 = arith.constant 0 : i32
    %c0_i32_0 = arith.constant 0 : i32
    %c0_i32_1 = arith.constant 0 : i32
    %c0_i32_2 = arith.constant 0 : i32
    return %arg0, %c0_i32, %c0_i32_0, %c0_i32_1 : i32, i32, i32, i32
  }
  func.func @transform_10(%arg0: i32, %arg1: i32) -> (i32, i32) {
    %c0_i32 = arith.constant 0 : i32
    %c0_i32_0 = arith.constant 0 : i32
    %c0_i32_1 = arith.constant 0 : i32
    return %c0_i32, %c0_i32_0 : i32, i32
  }
  func.func @transform_11(%arg0: i32, %arg1: i32) -> (i32, i32) {
    %c0_i32 = arith.constant 0 : i32
    %c0_i32_0 = arith.constant 0 : i32
    %c0_i32_1 = arith.constant 0 : i32
    return %c0_i32, %c0_i32_0 : i32, i32
  }
  func.func @transform_12(%arg0: i32, %arg1: i32) -> (i32, i32, i32, i32) {
    %c0_i32 = arith.constant 0 : i32
    %c0_i32_0 = arith.constant 0 : i32
    %c0_i32_1 = arith.constant 0 : i32
    return %arg0, %arg1, %c0_i32, %c0_i32_0 : i32, i32, i32, i32
  }
}

</mosaic_0001>

<bundles_post_ra>
// kernel: tpu_custom_call.1
= control target key start
LH: loop header
LB: loop body
LE: loop exit
PB: predicated region body
PF: predicated region fallthrough
CT: control target
= control target key end

     0   :  { %s19025_s0 = inlined_call_operand.hbm [shape: f32[2,4,8,32], index: 0, kind: input, shape index: {}]   ;;  %s19026_s1 = inlined_call_operand.vmem [shape: f32[32,8], index: 1, kind: input, shape index: {}]   ;;  %s19027_s2 = inlined_call_operand.vmem [shape: f32[8,32], index: 2, kind: input, shape index: {}]   ;;  %s19028_s3 = inlined_call_operand.vmem [shape: f32[1,32], index: 3, kind: input, shape index: {}]   ;;  %s19029_s4 = inlined_call_operand.vmem [shape: f32[1,32], index: 4, kind: input, shape index: {}]   ;;  %s19030_s5 = inlined_call_operand.vmem [shape: f32[32,96], index: 5, kind: input, shape index: {}]   ;;  %s19031_s6 = inlined_call_operand.vmem [shape: f32[1,96], index: 6, kind: input, shape index: {}]   ;;  %s19032_s7 = inlined_call_operand.hbm [shape: f32[2,8,8,32], index: 7, kind: input, shape index: {}]   ;;  %s19033_s8 = inlined_call_operand.hbm [shape: f32[2,8,8,32], index: 8, kind: input, shape index: {}]   ;;  %s19034_s9 = inlined_call_operand.hbm [shape: f32[2,8,8,32], index: 9, kind: input, shape index: {}]   ;;  %s19035_s10 = inlined_call_operand.hbm [shape: f32[32,32], index: 10, kind: input, shape index: {}]   ;;  %s19036_s11 = inlined_call_operand.vmem [shape: f32[1,32], index: 11, kind: input, shape index: {}]   ;;  %s19037_s12 = inlined_call_operand.hbm [shape: f32[2,4,8,32], index: 12, kind: output, shape index: {}]  }
   0x1   :  { %19089 = sst [smem:[#allocation55_spill]] %s19026_s1 }
   0x2   :  { %19090 = sst [smem:[#allocation56_spill]] %s19027_s2 }
   0x3   :  { %19091 = sst [smem:[#allocation57_spill]] %s19028_s3 }
   0x4   :  { %19092 = sst [smem:[#allocation58_spill]] %s19029_s4 }
   0x5   :  { %19093 = sst [smem:[#allocation59_spill]] %s19030_s5 }
   0x6   :  { %19094 = sst [smem:[#allocation60_spill]] %s19031_s6 }
   0x7   :  { %19095 = sst [smem:[#allocation61_spill]] %s19032_s7 }
   0x8   :  { %19096 = sst [smem:[#allocation62_spill]] %s19034_s9 }
   0x9   :  { %19097 = sst [smem:[#allocation63_spill]] %s19035_s10 }
   0xa   :  { %19098 = sst [smem:[#allocation64_spill]] %s19036_s11 }
   0xb   :  { %19099 = sst [smem:[#allocation65_spill]] %s19037_s12 }
   0xc   :  { %17 = vsyncpa [#allocation4], 0 }
   0xd   :  { %19 = vsyncpa [#allocation4 + $0x1], 0 }
   0xe   :  { %20 = vsyncpa [#allocation7], 0 }
   0xf   :  { %22 = vsyncpa [#allocation7 + $0x1], 0 }
  0x10   :  { %23 = vsyncpa [#allocation10], 0 }
  0x11   :  { %25 = vsyncpa [#allocation10 + $0x1], 0 }
  0x12   :  { %26 = vsyncpa [#allocation5], 0 }
  0x13   :  { %28 = vsyncpa [#allocation5 + $0x1], 0  ;;  %s16319_s21 = smov 0   ;;  %s16321_s22 = smov 0  }
  0x14   :  { %s16323_s23 = smov 0   ;;  %s16325_s24 = smov 0  }
  0x15   :  { %s16327_s25 = smov 0   ;;  %s16329_s26 = smov 0  }
  0x16   :  { %s16331_s27 = smov 0   ;;  %s16333_s28 = smov 0  }
  0x17   :  { %s16335_s29 = smov 0   ;;  %s16337_s30 = smov 0  }
  0x18   :  { %s16339_s13 = smov 0  }
  0x19 LB: > { %19100 = sst [smem:[#allocation18_spill]] %s16195_s22  ;;  %s16373_s14 = sadd.s32 4294967295, %s16231_s13   ;;  %s16231_s13 = sphi %s16339_s13, %s34_s13   ;;  %s16227_s30 = sphi %s16337_s30, %s19216_s30   ;;  %s16223_s29 = sphi %s16335_s29, %s19215_s29   ;;  %s16219_s28 = sphi %s16333_s28, %s19214_s28   ;;  %s16215_s27 = sphi %s16331_s27, %s19213_s27   ;;  %s16211_s26 = sphi %s16329_s26, %s19212_s26   ;;  %s16207_s25 = sphi %s16327_s25, %s19211_s25   ;;  %s16203_s24 = sphi %s16325_s24, %s19206_s24   ;;  %s16199_s23 = sphi %s16323_s23, %s19210_s23   ;;  %s16195_s22 = sphi %s16321_s22, %s19209_s22   ;;  %s16191_s21 = sphi %s16319_s21, %s19204_s21  }
  0x1a   : > { %19101 = sst [smem:[#allocation19_spill]] %s16203_s24  ;;  %s14425_s15 = sadd.s32 4294967294, %s16231_s13  }
  0x1b   : > { %19102 = sst [smem:[#allocation20_spill]] %s16207_s25  ;;  %p68_p0 = scmp.ne.s32.totalorder %s16207_s25, %s16203_s24 }
  0x1c   : > { %19103 = sst [smem:[#allocation21_spill]] %s16215_s27  ;;  %p19062_p1 = scmp.eq.s32.totalorder %s16373_s14, 0 }
  0x1d   : > { %19104 = sst [smem:[#allocation22_spill]] %s16219_s28  ;;  %p220_p2 = scmp.ne.s32.totalorder %s16195_s22, %s16191_s21 }
  0x1e   : > { %19105 = sst [smem:[#allocation23_spill]] %s16373_s14  ;;  %p16383_p4 = por %p19062_p1, %p68_p0 }
  0x1f   : > { %p346_p5 = scmp.eq.s32.totalorder %s14425_s15, 3  ;;  %p16389_p6 = por %p220_p2, %p19062_p1 }
  0x20   : > { %s19106_s16 = scalar_select %p16383_p4, 1, 0 }
  0x21   : > { %s19108_s17 = scalar_select %p16389_p6, 1, 0 }
  0x22   : > { %19107 = sst [smem:[#allocation24_spill]] %s19106_s16  ;;  %p14426_p7 = scmp.ge.s32.totalorder %s16231_s13, 1 }
  0x23   : > { %19109 = sst [smem:[#allocation25_spill]] %s19108_s17  ;;  %p16394_p8 = por %p346_p5, %p68_p0 }
  0x24   : > { %p353_p9 = scmp.lt.s32.totalorder %s16231_s13, 5  ;;  %s16233_s20 = smov [#allocation11]  }
  0x25   : > { %s19110_s18 = scalar_select %p16394_p8, 1, 0 }
  0x26   : > { %p16399_p10 = pnand %p14426_p7, %p353_p9  ;;  %s383_s21 = sshll.u32 %s16233_s20, 4  ;;  %s384_s21 = int_to_ptr.vmem [resolvable:$true] %s383_s21 }
  0x27   : > { %19111 = sst [smem:[#allocation26_spill]] %s19110_s18  ;;  %p63_p13 = scmp.eq.s32.totalorder %s16231_s13, 0 }
  0x28   : > { %s19112_s19 = scalar_select %p16399_p10, 1, 0 }
  0x29   : > { %p15788_p11 = pneg %p16399_p10  ;;  %s15972_s18 = scalar_lea.vmem %s384_s21, 512 }
  0x2a   : > { %19113 = sst [smem:[#allocation27_spill]] %s19112_s19  ;;  %p15973_p2 = scmp.ne.s32.totalorder %s384_s21, %s15972_s18 }
  0x2b   : > { %p16407_p12 = pnand %p15788_p11, %p19062_p1  ;;  %p15980_p9 = scmp.lt.s32.totalorder %s384_s21, %s384_s21 }
  0x2c   : > { %p15981_p3 = scmp.lt.s32.totalorder %s15972_s18, %s15972_s18 }
  0x2d   : > { %p15963_p0 = pneg %p16407_p12 }
  0x2e   : > { %p15982_p8 = por %p15981_p3, %p15980_p9 }
  0x2f   : > { %p15975_p5 = pnand %p15973_p2, %p15963_p0 }
  0x31   : > { %p15976_p7 = pneg %p15975_p5 }
  0x33   : > { %p15983_p6 = pnand %p15982_p8, %p15976_p7 }
  0x35   : > { %15986 = shalt.err (!%p15983_p6)
}
  0x36   : > { %s19043_s20 = smov 128   ;;  %s19046_s24 = smov 8  }
  0x37   : > { %s19115_s10 = sld [smem:[#allocation63_spill]]  ;;  %p214_p3 = scmp.ne.s32.totalorder %s16199_s23, %s16195_s22 }
  0x38   : > { %p15810_p6 = scmp.lt.s32.totalorder %s16231_s13, 4  ;;  %s19045_s28 = sand.u32 1, %s16231_s13  }
  0x39   : > { %p216_p8 = por %p214_p3, %p63_p13  ;;  %s425_s27 = sand.u32 1, %s16199_s23  }
  0x3a   : > { %s16431_s6 = sshll.u32 %s16227_s30, 10  ;;  %s16433_s4 = sshll.u32 %s425_s27, 6 }
  0x3b   : > { %s19116_s7 = sld [smem:[#allocation61_spill]]  ;;  %p16441_p11 = pnand %p15810_p6, %p216_p8 }
  0x3c   : > { %s16448_s11 = scalar_lea.sflag [#allocation7], %s19045_s28  ;;  %s16236_s3 = smov [#allocation6]  }
  0x3d   : > { %15791 = dma.hbm_to_vmem [thread:$0]  (!%p16407_p12), %s19115_s10, 512, %s384_s21, [#allocation10], %s19043_s20, %s19043_s20, %s19046_s24  }
  0x3e   : > { %s427_s21 = scalar_lea.vmem [#allocation6], %s16433_s4  ;;  %19118 = sst [smem:[#allocation28_spill]] %s16448_s11 }
  0x3f   : > { %s434_s18 = sshll.u32 %s427_s21, 4  ;;  %p15989_p12 = pneg %p16441_p11  ;;  %s435_s18 = int_to_ptr.vmem [resolvable:$true] %s434_s18 }
  0x40   : > { %s16000_s27 = scalar_lea.vmem %s435_s18, 1024  ;;  %s16005_s15 = sshll.u32 %s16236_s3, 4  ;;  %s16006_s15 = int_to_ptr.vmem [resolvable:$false] %s16005_s15 }
  0x41   : > { %s433_s5 = scalar_lea.hbm %s19116_s7, %s16431_s6  ;;  %p16001_p0 = scmp.ne.s32.totalorder %s435_s18, %s16000_s27 }
  0x42   : > { %s16007_s20 = scalar_lea.vmem %s16006_s15, 2048  ;;  %p16008_p7 = scmp.lt.s32.totalorder %s435_s18, %s16006_s15 }
  0x43   : > { %p16003_p2 = pnand %p16001_p0, %p15989_p12  ;;  %p16009_p9 = scmp.lt.s32.totalorder %s16007_s20, %s16000_s27 }
  0x45   : > { %p16004_p5 = pneg %p16003_p2  ;;  %p16010_p3 = por %p16009_p9, %p16008_p7 }
  0x47   : > { %p16011_p8 = pnand %p16010_p3, %p16004_p5 }
  0x49   : > { %16014 = shalt.err (!%p16011_p8)
}
  0x4a   : > { %s19119_s21 = smov 128   ;;  %s43_s20 = sadd.s32 1, %s16223_s29 }
  0x4b   : > { %15798 = dma.hbm_to_vmem [thread:$0]  (!%p16441_p11), %s433_s5, 1024, %s435_s18, %s16448_s11, %s19119_s21, %s19119_s21, %s19046_s24  }
  0x4c   : > { %s46_s27 = sadd.s32 1, %s16227_s30  ;;  %p44_p0 = scmp.ge.s32.totalorder %s43_s20, 2 }
  0x4d   : > { %s55_s3 = sadd.s32 1, %s16211_s26  ;;  %p62_p2 = scmp.ne.s32.totalorder %s16211_s26, %s16207_s25 }
  0x4e   : > { %s400_s15 = sand.u32 1, %s16211_s26   ;;  %s19218_s20 = smov (%p44_p0, %s43_s20), 0 }
  0x4f   : > { %19120 = sst [smem:[#allocation29_spill]] %s19218_s20  ;;  %s19220_s27 = smov (!%p44_p0, %s46_s27), %s16227_s30 }
  0x50   : > { %s51_s28 = ssub.s32 %s16223_s29, %s19218_s20  ;;  %p16474_p5 = por %p63_p13, %p62_p2 }
  0x51   : > { %p48_p7 = scmp.ge.s32.totalorder %s19220_s27, 2  ;;  %p19122_p9 = scmp.eq.s32.totalorder %s16373_s14, 3 }
  0x52   : > { %s14429_s18 = sshll.u32 %s400_s15, 4  ;;  %s14430_s24 = sshll.u32 %s16223_s29, 1 }
  0x53   : > { %p16480_p3 = por %p19122_p9, %p62_p2  ;;  %s19222_s27 = smov (%p48_p7, %s19220_s27), 0 }
  0x54   : > { %s50_s10 = ssub.s32 %s16227_s30, %s19222_s27  ;;  %s14431_s20 = sshll.u32 %s16227_s30, 2 }
  0x55   : > { %s19123_s5 = scalar_select %p16480_p3, 1, 0 }
  0x56   : > { %s52_s2 = sor.u32 %s51_s28, %s50_s10  ;;  %p205_p13 = scmp.eq.s32.totalorder %s50_s10, 0 }
  0x57   : > { %19124 = sst [smem:[#allocation30_spill]] %s19123_s5  ;;  %p53_p8 = scmp.eq.s32.totalorder %s52_s2, 0 }
  0x58   : > { %s410_s1 = sadd.s32 %s14431_s20, %s14430_s24  ;;  %s19125_s17 = sadd.s32 1, %s16199_s23 }
  0x59   : > { %s16493_s22 = scalar_select %p205_p13, %s16199_s23, %s19125_s17  }
  0x5a   : > { %s16496_s14 = scalar_select %p53_p8, %s16211_s26, %s55_s3  }
  0x5b   : > { %s14432_s5 = sshll.u32 %s410_s1, 7  ;;  %s404_s16 = scalar_lea.vmem [#allocation3], %s14429_s18 }
  0x5c   : > { %s413_s25 = sshll.u32 %s404_s16, 4  ;;  %s412_s11 = scalar_lea.hbm %s19025_s0, %s14432_s5  ;;  %s414_s25 = int_to_ptr.vmem [resolvable:$true] %s413_s25 }
  0x5d   : > { %p16505_p0 = pnand %p15810_p6, %p16474_p5  ;;  %s454_s24 = scalar_lea.hbm %s19033_s8, %s16431_s6 }
  0x5e   : > { %s448_s17 = scalar_lea.vmem [#allocation8], %s16433_s4  ;;  %s401_s16 = scalar_lea.sflag [#allocation4], %s400_s15 }
  0x5f   : > { %s455_s1 = sshll.u32 %s448_s17, 4  ;;  %p16017_p2 = pneg %p16505_p0  ;;  %s16514_s1 = int_to_ptr.vmem [resolvable:$true] %s455_s1 }
  0x60   : > { %s16028_s9 = scalar_lea.vmem %s414_s25, 256  ;;  %s16237_s7 = smov [#allocation3]  }
  0x61   : > { %p16029_p7 = scmp.ne.s32.totalorder %s414_s25, %s16028_s9  ;;  %s16033_s19 = sshll.u32 %s16237_s7, 4  ;;  %s16034_s19 = int_to_ptr.vmem [resolvable:$false] %s16033_s19 }
  0x62   : > { %s16035_s20 = scalar_lea.vmem %s16034_s19, 512  ;;  %p16036_p6 = scmp.lt.s32.totalorder %s414_s25, %s16034_s19 }
  0x63   : > { %p16031_p9 = pnand %p16029_p7, %p16017_p2  ;;  %p16037_p5 = scmp.lt.s32.totalorder %s16035_s20, %s16028_s9 }
  0x65   : > { %p16032_p13 = pneg %p16031_p9  ;;  %p16038_p8 = por %p16037_p5, %p16036_p6 }
  0x67   : > { %p16039_p1 = pnand %p16038_p8, %p16032_p13 }
  0x69   : > { %16042 = shalt.err (!%p16039_p1)
}
  0x6a   : > { %s19127_s3 = smov 8   ;;  %s16056_s15 = scalar_lea.vmem %s16514_s1, 1024 }
  0x6b   : > { %15795 = dma.hbm_to_vmem [thread:$0]  (!%p16505_p0), %s412_s11, 256, %s414_s25, %s401_s16, %s19119_s21, %s19119_s21, %s19127_s3  }
  0x6c   : > { %p16057_p2 = scmp.ne.s32.totalorder %s16514_s1, %s16056_s15  ;;  %s16238_s5 = smov [#allocation8]  }
  0x6d   : > { %s16061_s18 = sshll.u32 %s16238_s5, 4  ;;  %s16062_s18 = int_to_ptr.vmem [resolvable:$false] %s16061_s18 }
  0x6e   : > { %p16059_p7 = pnand %p16057_p2, %p15989_p12  ;;  %s16063_s2 = scalar_lea.vmem %s16062_s18, 2048 }
  0x6f   : > { %p16064_p1 = scmp.lt.s32.totalorder %s16514_s1, %s16062_s18  ;;  %p16065_p13 = scmp.lt.s32.totalorder %s16063_s2, %s16056_s15 }
  0x70   : > { %p16060_p9 = pneg %p16059_p7 }
  0x71   : > { %p16066_p6 = por %p16065_p13, %p16064_p1 }
  0x73   : > { %p16067_p5 = pnand %p16066_p6, %p16060_p9 }
  0x75   : > { %16070 = shalt.err (!%p16067_p5)
}
  0x76   : > { %s19128_s11 = sld [smem:[#allocation28_spill]]  ;;  %s469_s7 = scalar_lea.vmem [#allocation9], %s16433_s4 }
  0x77   : > { %s19129_s16 = sld [smem:[#allocation62_spill]]  ;;  %s476_s19 = sshll.u32 %s469_s7, 4  ;;  %s477_s19 = int_to_ptr.vmem [resolvable:$true] %s476_s19 }
  0x78   : > { %s19130_s20 = sand.u32 1, %s16231_s13   ;;  %s16084_s5 = scalar_lea.vmem %s477_s19, 1024 }
  0x79   : > { %s466_s15 = scalar_lea.sflag [#allocation10], %s19130_s20  ;;  %p16085_p0 = scmp.ne.s32.totalorder %s477_s19, %s16084_s5 }
  0x7a   : > { %s16239_s18 = smov [#allocation9]  }
  0x7b   : > { %p16087_p8 = pnand %p16085_p0, %p15989_p12  ;;  %s16089_s2 = sshll.u32 %s16239_s18, 4  ;;  %s16090_s2 = int_to_ptr.vmem [resolvable:$false] %s16089_s2 }
  0x7c   : > { %15801 = dma.hbm_to_vmem [thread:$0]  (!%p16441_p11), %s454_s24, 1024, %s16514_s1, %s19128_s11, %s19119_s21, %s19119_s21, %s19127_s3  }
  0x7d   : > { %s475_s9 = scalar_lea.hbm %s19129_s16, %s16431_s6  ;;  %p16088_p2 = pneg %p16087_p8 }
  0x7e   : > { %s16091_s25 = scalar_lea.vmem %s16090_s2, 2048  ;;  %p16092_p7 = scmp.lt.s32.totalorder %s477_s19, %s16090_s2 }
  0x7f   : > { %p16093_p9 = scmp.lt.s32.totalorder %s16091_s25, %s16084_s5 }
  0x81   : > { %p16094_p1 = por %p16093_p9, %p16092_p7 }
  0x83   : > { %p16095_p13 = pnand %p16094_p1, %p16088_p2 }
  0x85   : > { %16098 = shalt.err (!%p16095_p13)
}
  0x86   : > { %15804 = dma.hbm_to_vmem [thread:$0]  (!%p16441_p11), %s475_s9, 1024, %s477_s19, %s466_s15, %s19119_s21, %s19119_s21, %s19127_s3  }
  0x87   : > { %488 = sbr.rel (%p16399_p10) target bundleno = 2358 (0x936), region = 68 }
  0x8c   : > { %s19132_s6 = sld [smem:[#allocation20_spill]] }
  0x92   : > { %s16559_s1 = sand.u32 1, %s19132_s6  }
  0x93   : > { %s14443_s11 = sshll.u32 %s16559_s1, 4  ;;  %s491_s28 = scalar_lea.sflag [#allocation4], %s16559_s1 }
  0x94   : > { %s494_s10 = scalar_lea.vmem [#allocation3], %s14443_s11 }
  0x95   : > { %16170 = dma.done.wait (%p16383_p4), %s491_s28, 256  }
  0x96   : > { %16172 = vsyncadd (%p16383_p4), %s491_s28, 4294967040  ;;  %s19134_s12 = sld [smem:[#allocation23_spill]] }
  0x97   : > { %s19135_s21 = sld [smem:[#allocation18_spill]] }
  0x98   : > { %s19136_s3 = sld [smem:[#allocation25_spill]] }
  0x9c   : > { %s499_s17 = sand.u32 1, %s19134_s12  }
  0x9d   : > { %s501_s16 = sand.u32 1, %s19135_s21   ;;  %s500_s7 = scalar_lea.sflag [#allocation7], %s499_s17 }
  0x9e   : > { %s14444_s9 = sshll.u32 %s501_s16, 6  ;;  %p19137_p10 = scmp.ne.s32.totalorder %s19136_s3, 0 }
  0x9f   : > { %s16571_s19 = scalar_lea.vmem [#allocation6], %s14444_s9 }
  0xa0   : > { %16174 = dma.done.wait (%p19137_p10), %s500_s7, 2048  }
  0xa1   : > { %16176 = vsyncadd (%p19137_p10), %s500_s7, 4294965248  ;;  %s16577_s20 = scalar_lea.vmem [#allocation8], %s14444_s9  ;;  %s518_s15 = scalar_lea.sflag [#allocation10], %s499_s17 }
  0xa2   : > { %s16579_s5 = scalar_lea.vmem [#allocation9], %s14444_s9 }
  0xa3   : > { %16178 = dma.done.wait (%p19137_p10), %s518_s15, 1024  }
  0xa4   : > { %16180 = vsyncadd (%p19137_p10), %s518_s15, 4294966272  ;;  %p19138_p4 = scmp.eq.s32.totalorder %s19134_s12, 0 }
  0xa6   : > { %16182 = dma.done.wait (%p19138_p4), [#allocation10], 512   ;;  %p19139_p11 = pmov %p19138_p4 }
  0xa7   : > { %v19063_v0 = vmov 0.0   ;;  %vm16241_vm0 = vmmov 0   ;;  %vm585_vm1 = vcmask 261120   ;;  %s19140_s25 = sld [smem:[#allocation55_spill]]  ;;  %v16601_v3 = vld [vmem:[%s494_s10] sm:$0xff]  ;;  %v16603_v4 = vld [vmem:[%s494_s10 + $0x8] sm:$0xff] }
  0xa8   : > { %16184 = vsyncadd (%p19139_p11), [#allocation10], 4294966784  ;;  %15000 = vmatprep.subr.mxu0 %v19063_v0  ;;  %15011 = vmatprep.subr.mxu1 %v19063_v0  ;;  %v586_v6 = vsel %vm585_vm1, %v16601_v3, 0.0  ;;  %v593_v7 = vsel %vm585_vm1, %v16603_v4, 0.0  ;;  %v603_v8 = vmul.f32 %v16601_v3, %v16601_v3  ;;  %v604_v9 = vmul.f32 %v16603_v4, %v16603_v4  ;;  %s19142_s16 = sld [smem:[#allocation56_spill]]  ;;  %v16639_v44 = vld [vmem:[%s16571_s19 + $0x10] sm:$0xff] }
  0xa9   : > { %15008 = vmatprep.mubr.msk.f32.mxu0 %vm16241_vm0, %v19063_v0  ;;  %15019 = vmatprep.mubr.msk.f32.mxu1 %vm16241_vm0, %v19063_v0  ;;  %v587_v10 = vrot.slane %v586_v6, 4  ;;  %v594_v11 = vrot.slane %v593_v7, 4  ;;  %vm627_vm2 = vcmask 1041409   ;;  %v16642_v45 = vld [vmem:[%s16571_s19] sm:$0xff]  ;;  %s16242_s9 = smov 120   ;;  %v16652_v47 = vld [vmem:[%s16571_s19 + $0x30] sm:$0xff] }
  0xaa   : > { %v605_v13 = vsel %vm585_vm1, %v603_v8, 0.0  ;;  %v612_v14 = vsel %vm585_vm1, %v604_v9, 0.0  ;;  %1164 = vrot.lane.b32.xlu1 %v16639_v44, %s16242_s9  ;;  %1160 = vrot.lane.b32.xlu0 %v16642_v45, %s16242_s9  ;;  %v16649_v46 = vld [vmem:[%s16571_s19 + $0x20] sm:$0xff]  ;;  %v16659_v48 = vld [vmem:[%s16571_s19 + $0x18] sm:$0xff]  ;;  %s16243_s7 = smov 112   ;;  %vm777_vm3 = vcmask 64512  }
  0xab   : > { %v588_v15 = vadd.f32 %v587_v10, %v586_v6  ;;  %v595_v16 = vadd.f32 %v594_v11, %v593_v7  ;;  %v606_v17 = vrot.slane %v605_v13, 4  ;;  %v613_v18 = vrot.slane %v612_v14, 4  ;;  %v16662_v49 = vld [vmem:[%s16571_s19 + $0x8] sm:$0xff]  ;;  %v16669_v50 = vld [vmem:[%s16571_s19 + $0x38] sm:$0xff]  ;;  %v16714_v53 = vld [vmem:[%s16577_s20] sm:$0xff]  ;;  %s19144_s18 = sld [smem:[#allocation59_spill]] }
  0xac   : > { %v16672_v51 = vld [vmem:[%s16571_s19 + $0x28] sm:$0xff]  ;;  %s16244_s19 = smov 104   ;;  %v16721_v54 = vld [vmem:[%s16577_s20 + $0x10] sm:$0xff]  ;;  %v16724_v55 = vld [vmem:[%s16577_s20 + $0x18] sm:$0xff]  ;;  %s16245_s10 = smov 32   ;;  %vm6437_vm4 = vcmask 1042434  }
  0xad   : > { %s19141_s4 = smov %s19140_s25  ;;  %v624_v1 = vld [vmem:[%s19140_s25 + $0x18] sm:$0xff]  ;;  %v589_v19 = vrot.slane %v588_v15, 2  ;;  %v596_v20 = vrot.slane %v595_v16, 2  ;;  %v607_v21 = vadd.f32 %v606_v17, %v605_v13  ;;  %v614_v22 = vadd.f32 %v613_v18, %v612_v14  ;;  %v16731_v56 = vld [vmem:[%s16577_s20 + $0x20] sm:$0xff]  ;;  %v16741_v58 = vld [vmem:[%s16577_s20 + $0x30] sm:$0xff]  ;;  %s19145_s17 = sld [smem:[#allocation57_spill]] }
  0xae   : > { %v623_v2 = vld [vmem:[%s19141_s4 + $0x10] sm:$0xff]  ;;  %15001 = vmatpush3.msra.mxu0 %v624_v1  ;;  %15012 = vmatpush3.msra.mxu1 %v624_v1  ;;  %v622_v5 = vld [vmem:[%s19141_s4 + $0x8] sm:$0xff]  ;;  %v621_v12 = vld [vmem:[%s19141_s4] sm:$0xff]  ;;  %v932_v1 = vlaneseq  ;;  %s19146_s15 = sld [smem:[#allocation58_spill]]  ;;  %s16247_s24 = smov 96   ;;  %vm6440_vm5 = vcmask 1043459  }
  0xaf   : > { %15002 = vmatprep.subr.mxu0 %v19063_v0  ;;  %15013 = vmatprep.subr.mxu1 %v19063_v0  ;;  %v590_v23 = vadd.f32 %v589_v19, %v588_v15  ;;  %v597_v24 = vadd.f32 %v596_v20, %v595_v16  ;;  %v608_v25 = vrot.slane %v607_v21, 2  ;;  %v615_v26 = vrot.slane %v614_v22, 2  ;;  %v776_v42 = vld [vmem:[%s19142_s16] sm:$0xff]  ;;  %v16711_v52 = vld [vmem:[%s16577_s20 + $0x8] sm:$0xff]  ;;  %v16746_v59 = vld [vmem:[%s16577_s20 + $0x38] sm:$0xff]  ;;  %s19149_s6 = sld [smem:[#allocation60_spill]] }
  0xb0   : > { %15003 = vmatpush3.msra.mxu0 %v623_v2  ;;  %15014 = vmatpush3.msra.mxu1 %v623_v2  ;;  %v16734_v57 = vld [vmem:[%s16577_s20 + $0x28] sm:$0xff]  ;;  %v16760_v2 = vshrl.u32 %v932_v1, 7  ;;  %vm6443_vm6 = vcmask 1044484   ;;  %vm6446_vm7 = vcmask 1045509   ;;  %vm6449_vm8 = vcmask 1046534   ;;  %s19194_s28 = sld [smem:[#allocation21_spill]] }
  0xb1   : > { %15004 = vmatprep.subr.mxu0 %v19063_v0  ;;  %15015 = vmatprep.subr.mxu1 %v19063_v0  ;;  %v591_v27 = vrot.slane %v590_v23, 1  ;;  %v598_v28 = vrot.slane %v597_v24, 1  ;;  %v609_v29 = vadd.f32 %v608_v25, %v607_v21  ;;  %v616_v30 = vadd.f32 %v615_v26, %v614_v22  ;;  %v1019_v7 = vld [vmem:[%s19144_s18 + $0x18] sm:$0xff]  ;;  %v1018_v8 = vld [vmem:[%s19144_s18 + $0x10] sm:$0xff]  ;;  %v1017_v9 = vld [vmem:[%s19144_s18 + $0x8] sm:$0xff]  ;;  %s19195_s12 = sld [smem:[#allocation22_spill]] }
  0xb2   : > { %15005 = vmatpush3.msra.mxu0 %v622_v5  ;;  %15016 = vmatpush3.msra.mxu1 %v622_v5  ;;  %v7901_v5 = vand.u32 127, %v932_v1  ;;  %v1016_v10 = vld [vmem:[%s19144_s18] sm:$0xff]  ;;  %vm6452_vm9 = vcmask 1047559   ;;  %vm14120_vm10 = vcmask 130112   ;;  %vm14131_vm11 = vcmask 195712   ;;  %s19196_s16 = sld [smem:[#allocation64_spill]] }
  0xb3   : > { %15006 = vmatprep.subr.mxu0 %v19063_v0  ;;  %15017 = vmatprep.subr.mxu1 %v19063_v0  ;;  %v592_v31 = vadd.f32 %v591_v27, %v590_v23  ;;  %v599_v32 = vadd.f32 %v598_v28, %v597_v24  ;;  %v610_v33 = vrot.slane %v609_v29, 1  ;;  %v617_v34 = vrot.slane %v616_v30, 1  ;;  %s580_s2 = scalar_lea.vmem [#allocation12], %s14443_s11  ;;  %s14244_s11 = scalar_lea.sflag [#allocation5], %s16559_s1 }
  0xb4   : > { %15007 = vmatpush3.msra.mxu0 %v621_v12  ;;  %15018 = vmatpush3.msra.mxu1 %v621_v12  ;;  %v16763_v6 = vsub.s32 %v7901_v5, %v16760_v2  ;;  %vm14142_vm12 = vcmask 261312   ;;  %s14259_s25 = sshll.u32 %s580_s2, 4  ;;  %s18954_s25 = int_to_ptr.vmem [resolvable:$true] %s14259_s25 }
  0xb5   : > { %15022 = vmatprep.subr.mxu1 %v19063_v0  ;;  %v601_v35 = vmul.f32 0.125, %v592_v31  ;;  %v602_v36 = vmul.f32 0.125, %v599_v32  ;;  %v611_v37 = vadd.f32 %v610_v33, %v609_v29  ;;  %v618_v38 = vadd.f32 %v617_v34, %v616_v30  ;;  %1168 = vrot.lane.b32.xlu1 %v16649_v46, %s16242_s9 }
  0xb6   : > { %1172 = vrot.lane.b32.xlu0 %v16652_v47, %s16242_s9  ;;  %19143 = vst [vmem:[#allocation31_spill] sm:$0xff] %v16763_v6  ;;  %15032 = vmatprep.subr.mxu0 %v1019_v7 }
  0xb7   : > { %v628_v39 = vsel %vm627_vm2, %v602_v36, %v601_v35  ;;  %v619_v40 = vmul.f32 0.125, %v611_v37  ;;  %v620_v41 = vmul.f32 0.125, %v618_v38  ;;  %s14679_s21 = sshll.u32 %s19195_s12, 2  ;;  %s16252_s12 = smov [#allocation12]  }
  0xb8   : > { %15009 = vmatmul.mubr.msk.f32.vlgmr.msra.gmra.mxu0 %vm585_vm1, %v628_v39 }
  0xb9   : > { %v703_v43 = vsel %vm627_vm2, %v620_v41, %v619_v40  ;;  %1166 = vrot.lane.b32.xlu1 %v16659_v48, %s16242_s9  ;;  %15033 = vmatpush3.msra.mxu0 %v1019_v7 }
  0xba   : > { %15020 = vmatmul.mubr.msk.f32.vlgmr.msra.gmra.mxu1 %vm585_vm1, %v703_v43  ;;  %1162 = vrot.lane.b32.xlu0 %v16662_v49, %s16242_s9 }
  0xbb   : > { %15023 = vmatpush3.msra.mxu1 %v776_v42  ;;  %15024 = vmatprep.mubr.msk.f32.mxu1 %vm16241_vm0, %v19063_v0 }
  0xbc   : > { %15027 = vmatprep.subr.mxu1 %v19063_v0  ;;  %15034 = vmatprep.subr.mxu0 %v1018_v8 }
  0xbd   : > { %1174 = vrot.lane.b32.xlu1 %v16669_v50, %s16242_s9  ;;  %15035 = vmatpush3.msra.mxu0 %v1018_v8 }
  0xbe   : > { %1170 = vrot.lane.b32.xlu0 %v16672_v51, %s16242_s9  ;;  %15036 = vmatprep.subr.mxu0 %v1017_v9 }
  0xbf   : > { %15037 = vmatpush3.msra.mxu0 %v1017_v9 }
  0xc0   : > { %15038 = vmatprep.subr.mxu0 %v1016_v10 }
  0xc1   : > { %1176 = vrot.lane.b32.xlu1 %v16642_v45, %s16243_s7  ;;  %15039 = vmatpush3.msra.mxu0 %v1016_v10 }
  0xc2   : > { %1180 = vrot.lane.b32.xlu0 %v16639_v44, %s16243_s7  ;;  %15053 = vmatprep.subr.mxu0 %v19063_v0 }
  0xc5   : > { %1184 = vrot.lane.b32.xlu1 %v16649_v46, %s16243_s7 }
  0xc6   : > { %1188 = vrot.lane.b32.xlu0 %v16652_v47, %s16243_s7 }
  0xc9   : > { %1182 = vrot.lane.b32.xlu1 %v16659_v48, %s16243_s7 }
  0xca   : > { %1178 = vrot.lane.b32.xlu0 %v16662_v49, %s16243_s7 }
  0xcd   : > { %1190 = vrot.lane.b32.xlu1 %v16669_v50, %s16243_s7 }
  0xce   : > { %1186 = vrot.lane.b32.xlu0 %v16672_v51, %s16243_s7 }
  0xd1   : > { %1192 = vrot.lane.b32.xlu1 %v16642_v45, %s16244_s19 }
  0xd2   : > { %1196 = vrot.lane.b32.xlu0 %v16639_v44, %s16244_s19 }
  0xd5   : > { %1204 = vrot.lane.b32.xlu1 %v16652_v47, %s16244_s19 }
  0xd6   : > { %1200 = vrot.lane.b32.xlu0 %v16649_v46, %s16244_s19 }
  0xd9   : > { %1194 = vrot.lane.b32.xlu1 %v16662_v49, %s16244_s19 }
  0xda   : > { %1198 = vrot.lane.b32.xlu0 %v16659_v48, %s16244_s19 }
  0xdd   : > { %1206 = vrot.lane.b32.xlu1 %v16669_v50, %s16244_s19 }
  0xde   : > { %1202 = vrot.lane.b32.xlu0 %v16672_v51, %s16244_s19 }
  0xe1   : > { %1226 = vrot.lane.b32.xlu1 %v16711_v52, %s16242_s9 }
  0xe2   : > { %1224 = vrot.lane.b32.xlu0 %v16714_v53, %s16242_s9 }
  0xe5   : > { %1228 = vrot.lane.b32.xlu1 %v16721_v54, %s16242_s9 }
  0xe6   : > { %1230 = vrot.lane.b32.xlu0 %v16724_v55, %s16242_s9 }
  0xe9   : > { %1232 = vrot.lane.b32.xlu1 %v16731_v56, %s16242_s9 }
  0xea   : > { %1234 = vrot.lane.b32.xlu0 %v16734_v57, %s16242_s9 }
  0xed   : > { %1236 = vrot.lane.b32.xlu1 %v16741_v58, %s16242_s9 }
  0xee   : > { %7228 = vrot.lane.b32.xlu0 %v16714_v53, %s16245_s10 }
  0xf1   : > { %1238 = vrot.lane.b32.xlu1 %v16746_v59, %s16242_s9 }
  0xf2   : > { %7232 = vrot.lane.b32.xlu0 %v16721_v54, %s16245_s10 }
  0xf5   : > { %7230 = vrot.lane.b32.xlu1 %v16711_v52, %s16245_s10 }
  0xf6   : > { %7236 = vrot.lane.b32.xlu0 %v16731_v56, %s16245_s10 }
  0xf9   : > { %7234 = vrot.lane.b32.xlu1 %v16724_v55, %s16245_s10 }
  0xfa   : > { %7240 = vrot.lane.b32.xlu0 %v16741_v58, %s16245_s10 }
  0xfd   : > { %7238 = vrot.lane.b32.xlu1 %v16734_v57, %s16245_s10 }
  0xfe   : > { %1242 = vrot.lane.b32.xlu0 %v16711_v52, %s16243_s7 }
 0x101   : > { %1240 = vrot.lane.b32.xlu1 %v16714_v53, %s16243_s7 }
 0x102   : > { %7242 = vrot.lane.b32.xlu0 %v16746_v59, %s16245_s10 }
 0x105   : > { %1244 = vrot.lane.b32.xlu1 %v16721_v54, %s16243_s7 }
 0x106   : > { %1246 = vrot.lane.b32.xlu0 %v16724_v55, %s16243_s7 }
 0x109   : > { %1248 = vrot.lane.b32.xlu1 %v16731_v56, %s16243_s7 }
 0x10a   : > { %1250 = vrot.lane.b32.xlu0 %v16734_v57, %s16243_s7 }
 0x10d   : > { %1252 = vrot.lane.b32.xlu1 %v16741_v58, %s16243_s7 }
 0x10e   : > { %1254 = vrot.lane.b32.xlu0 %v16746_v59, %s16243_s7 }
 0x111   : > { %1256 = vrot.lane.b32.xlu1 %v16714_v53, %s16244_s19 }
 0x112   : > { %1258 = vrot.lane.b32.xlu0 %v16711_v52, %s16244_s19  ;;  %v16246_v52 = vmov 1966171168  }
 0x113   : > { %v930_v53 = vunpack.c.l.s4 %v16246_v52 }
 0x115   : > { %1260 = vrot.lane.b32.xlu1 %v16721_v54, %s16244_s19 }
 0x11c   : > { %v16778_v11 = vpop.permute.xlu1 %1164  ;;  %v16780_v12 = vpop.permute.xlu0 %1160 }
 0x127   : > { %v16786_v13 = vpop.permute.xlu1 %1168 }
 0x128   : > { %v16788_v14 = vpop.permute.xlu0 %1172 }
 0x12b   : > { %v16794_v15 = vpop.permute.xlu1 %1166 }
 0x12c   : > { %v16796_v16 = vpop.permute.xlu0 %1162 }
 0x12f   : > { %v16802_v17 = vpop.permute.xlu1 %1174 }
 0x130   : > { %v16804_v18 = vpop.permute.xlu0 %1170 }
 0x133   : > { %v16810_v19 = vpop.permute.xlu1 %1176 }
 0x134   : > { %v16812_v20 = vpop.permute.xlu0 %1180 }
 0x137   : > { %v16818_v21 = vpop.permute.xlu1 %1184 }
 0x138   : > { %v16820_v22 = vpop.permute.xlu0 %1188 }
 0x13b   : > { %v16826_v23 = vpop.permute.xlu1 %1182 }
 0x13c   : > { %v16828_v24 = vpop.permute.xlu0 %1178 }
 0x13f   : > { %v16834_v25 = vpop.permute.xlu1 %1190 }
 0x140   : > { %v16836_v26 = vpop.permute.xlu0 %1186 }
 0x143   : > { %v16842_v27 = vpop.permute.xlu1 %1192 }
 0x144   : > { %v16844_v28 = vpop.permute.xlu0 %1196 }
 0x147   : > { %v16850_v29 = vpop.permute.xlu1 %1204 }
 0x148   : > { %v16852_v30 = vpop.permute.xlu0 %1200 }
 0x14b   : > { %v16856_v31 = vpop.permute.xlu1 %1194 }
 0x14c   : > { %v16858_v32 = vpop.permute.xlu0 %1198 }
 0x14f   : > { %v16860_v33 = vpop.permute.xlu1 %1206 }
 0x150   : > { %v16862_v34 = vpop.permute.xlu0 %1202 }
 0x153   : > { %v1227_v35 = vpop.permute.xlu1 %1226 }
 0x154   : > { %v1225_v36 = vpop.permute.xlu0 %1224  ;;  %7246 = vrot.lane.b32.xlu1 %v1227_v35, %s16245_s10 }
 0x155   : > { %7244 = vrot.lane.b32.xlu0 %v1225_v36, %s16245_s10 }
 0x157   : > { %v1229_v37 = vpop.permute.xlu1 %1228 }
 0x158   : > { %v1231_v38 = vpop.permute.xlu0 %1230 }
 0x159   : > { %7248 = vrot.lane.b32.xlu0 %v1229_v37, %s16245_s10  ;;  %7250 = vrot.lane.b32.xlu1 %v1231_v38, %s16245_s10 }
 0x15b   : > { %v1233_v39 = vpop.permute.xlu1 %1232 }
 0x15c   : > { %v1235_v40 = vpop.permute.xlu0 %1234 }
 0x15d   : > { %7252 = vrot.lane.b32.xlu0 %v1233_v39, %s16245_s10  ;;  %7254 = vrot.lane.b32.xlu1 %v1235_v40, %s16245_s10 }
 0x15f   : > { %v1237_v41 = vpop.permute.xlu1 %1236 }
 0x160   : > { %v16890_v35 = vpop.permute.xlu0 %7228 }
 0x161   : > { %7256 = vrot.lane.b32.xlu0 %v1237_v41, %s16245_s10  ;;  %1264 = vrot.lane.b32.xlu1 %v16731_v56, %s16244_s19 }
 0x165   : > { %1268 = vrot.lane.b32.xlu1 %v16741_v58, %s16244_s19 }
 0x178   : > { %v697_v60 = vpop.f32.mrf.mxu0 }
 0x179   : > { %15025 = vmatmul.mubr.msk.f32.vlgmr.msra.gmra.mxu1 %vm777_vm3, %v697_v60 }
 0x17a   : > { %15028 = vmatpush3.msra.mxu1 %v776_v42  ;;  %v15010_v61 = vpop.f32.mrf.mxu0  ;;  %v772_v62 = vpop.f32.mrf.mxu1  ;;  %15029 = vmatprep.mubr.msk.f32.mxu1 %vm16241_vm0, %v19063_v0 }
 0x17b   : > { %15043 = vmatprep.subr.mxu1 %v19063_v0  ;;  %v1239_v42 = vpop.permute.xlu1 %1238  ;;  %v931_v61 = vunpack.c.0.s8 %v930_v53 }
 0x17c   : > { %v15021_v63 = vpop.f32.mrf.mxu1  ;;  %7258 = vrot.lane.b32.xlu0 %v1239_v42, %s16245_s10 }
 0x17d   : > { %15030 = vmatmul.mubr.msk.f32.vlgmr.msra.gmra.mxu1 %vm777_vm3, %v772_v62  ;;  %v16883_v58 = vsub.s32 %v931_v61, %v16760_v2 }
 0x17e   : > { %15044 = vmatpush3.xpose.msk.msra.mxu1 %vm777_vm3, %v16642_v45  ;;  %15045 = vmatprep.mubr.msk.f32.mxu1 %vm16241_vm0, %v19063_v0 }
 0x17f   : > { %15048 = vmatprep.subr.mxu1 %v19063_v0  ;;  %v16892_v36 = vpop.permute.xlu1 %7230 }
 0x180   : > { %1262 = vrot.lane.b32.xlu0 %v16724_v55, %s16244_s19 }
 0x183   : > { %v16902_v52 = vpop.permute.xlu1 %7234 }
 0x184   : > { %1266 = vrot.lane.b32.xlu0 %v16734_v57, %s16244_s19 }
 0x188   : > { %1270 = vrot.lane.b32.xlu0 %v16746_v59, %s16244_s19  ;;  %v953_v59 = vsub.s32 0, %v16760_v2  ;;  %v14453_v2 = vld [vmem:[%s19145_s17] ss:$0 sm:$0xff] }
 0x239   : > { %v847_v43 = vpop.f32.mrf.mxu1 }
 0x23a   : > { %v924_v56 = vmul.f32 %v847_v43, %v847_v43  ;;  %v935_v55 = vrot.slane %v847_v43, %v16883_v58  ;;  %v16900_v43 = vpop.permute.xlu0 %7232 }
 0x23b   : > { %v15026_v54 = vpop.f32.mrf.mxu1 }
 0x23c   : > { %v936_v57 = vcombine.high %v935_v55, %v935_v55  ;;  %v943_v5 = vrot.slane %v935_v55, %v16883_v58 }
 0x23d   : > { %v920_v60 = vpop.f32.mrf.mxu1 }
 0x23e   : > { %v925_v62 = vsub.f32 %v920_v60, %v924_v56  ;;  %v950_v7 = vrot.slane %v936_v57, %v16883_v58  ;;  %v954_v9 = vrot.slane %v943_v5, %v953_v59  ;;  %v14454_v60 = vld [vmem:[%s19146_s15] ss:$0 sm:$0xff] }
 0x23f   : > { %v15031_v63 = vpop.f32.mrf.mxu1 }
 0x240   : > { %v926_v1 = vadd.f32 1e-05, %v925_v62  ;;  %v958_v37 = vrot.slane %v950_v7, %v953_v59  ;;  %v961_v40 = vsub.f32 %v16601_v3, %v954_v9  ;;  %v16908_v62 = vpop.permute.xlu0 %7236  ;;  %v16910_v63 = vpop.permute.xlu1 %7238 }
 0x242   : > { %15917 = vrsqrt.f32 %v926_v1  ;;  %v962_v53 = vsub.f32 %v16603_v4, %v958_v37 }
 0x244   : > { %v16918_v4 = vpop.permute.xlu0 %7240  ;;  %v1241_v5 = vpop.permute.xlu1 %1240 }
 0x245   : > { %7260 = vrot.lane.b32.xlu1 %v1241_v5, %s16245_s10 }
 0x248   : > { %v1245_v7 = vpop.permute.xlu1 %1244 }
 0x24c   : > { %v1249_v9 = vpop.permute.xlu1 %1248 }
 0x24f   : > { %v15918_v8 = vpop.eup %15917 }
 0x250   : > { %v970_v10 = vrot.slane %v15918_v8, %v16883_v58  ;;  %v1253_v37 = vpop.permute.xlu1 %1252 }
 0x252   : > { %v971_v38 = vcombine.high %v970_v10, %v970_v10  ;;  %v978_v39 = vrot.slane %v970_v10, %v16883_v58 }
 0x254   : > { %v985_v41 = vrot.slane %v971_v38, %v16883_v58  ;;  %v989_v42 = vrot.slane %v978_v39, %v953_v59 }
 0x256   : > { %v993_v54 = vrot.slane %v985_v41, %v953_v59  ;;  %v996_v56 = vmul.f32 %v989_v42, %v961_v40  ;;  %v1243_v59 = vpop.permute.xlu0 %1242  ;;  %v1257_v40 = vpop.permute.xlu1 %1256 }
 0x257   : > { %7262 = vrot.lane.b32.xlu0 %v1243_v59, %s16245_s10 }
 0x258   : > { %v997_v3 = vmul.f32 %v993_v54, %v962_v53  ;;  %v1005_v61 = vmul.f32 %v14453_v2, %v996_v56 }
 0x25a   : > { %v1006_v1 = vmul.f32 %v14453_v2, %v997_v3  ;;  %v16912_v55 = vadd.f32 %v14454_v60, %v1005_v61  ;;  %v16929_v8 = vpop.permute.xlu0 %7242  ;;  %v1261_v42 = vpop.permute.xlu1 %1260 }
 0x25b   : > { %7264 = vrot.lane.b32.xlu0 %v1245_v7, %s16245_s10 }
 0x25c   : > { %19147 = vst [vmem:[#allocation32_spill] sm:$0xff] %v16912_v55  ;;  %v16914_v57 = vadd.f32 %v14454_v60, %v1006_v1  ;;  %15040 = vmatprep.mubr.msk.f32.mxu0 %vm585_vm1, %v16912_v55 }
 0x25e   : > { %19148 = vst [vmem:[#allocation33_spill] sm:$0xff] %v16914_v57  ;;  %15041 = vmatmul.mubr.msk.f32.vlgmr.msra.gmra.mxu0 %vm585_vm1, %v16914_v57  ;;  %v1247_v10 = vpop.permute.xlu0 %1246  ;;  %v16944_v54 = vpop.permute.xlu1 %7246 }
 0x25f   : > { %15054 = vmatpush3.xpose.msk.msra.mxu0 %vm777_vm3, %v16639_v44  ;;  %15055 = vmatprep.mubr.msk.f32.mxu0 %vm16241_vm0, %v19063_v0 }
 0x260   : > { %15063 = vmatprep.subr.mxu0 %v19063_v0  ;;  %7266 = vrot.lane.b32.xlu0 %v1247_v10, %s16245_s10 }
 0x262   : > { %v1251_v38 = vpop.permute.xlu0 %1250  ;;  %v16948_v60 = vpop.permute.xlu1 %7250 }
 0x263   : > { %7270 = vrot.lane.b32.xlu1 %v1251_v38, %s16245_s10 }
 0x264   : > { %7268 = vrot.lane.b32.xlu0 %v1249_v9, %s16245_s10  ;;  %v14455_v9 = vld [vmem:[%s19149_s6] ss:$0 sm:$0xff] }
 0x266   : > { %v1255_v39 = vpop.permute.xlu0 %1254  ;;  %v16954_v1 = vpop.permute.xlu1 %7254 }
 0x267   : > { %7274 = vrot.lane.b32.xlu1 %v1255_v39, %s16245_s10 }
 0x268   : > { %7272 = vrot.lane.b32.xlu0 %v1253_v37, %s16245_s10 }
 0x26a   : > { %v1259_v41 = vpop.permute.xlu0 %1258  ;;  %v1265_v59 = vpop.permute.xlu1 %1264 }
 0x26b   : > { %7276 = vrot.lane.b32.xlu1 %v1257_v40, %s16245_s10 }
 0x26c   : > { %7278 = vrot.lane.b32.xlu0 %v1259_v41, %s16245_s10 }
 0x26e   : > { %v16940_v2 = vpop.permute.xlu0 %7244 }
 0x270   : > { %7280 = vrot.lane.b32.xlu0 %v1261_v42, %s16245_s10 }
 0x272   : > { %v16942_v53 = vpop.permute.xlu0 %7248 }
 0x276   : > { %v16946_v56 = vpop.permute.xlu0 %7252 }
 0x27a   : > { %v16950_v3 = vpop.permute.xlu0 %7256 }
 0x27e   : > { %v16952_v61 = vpop.permute.xlu0 %7258 }
 0x282   : > { %v1263_v5 = vpop.permute.xlu0 %1262 }
 0x283   : > { %7282 = vrot.lane.b32.xlu0 %v1263_v5, %s16245_s10 }
 0x286   : > { %v1267_v7 = vpop.permute.xlu0 %1266 }
 0x287   : > { %7284 = vrot.lane.b32.xlu0 %v1265_v59, %s16245_s10  ;;  %7286 = vrot.lane.b32.xlu1 %v1267_v7, %s16245_s10 }
 0x31e   : > { %v15042_v10 = vpop.f32.mrf.mxu0 }
 0x31f   : > { %v16962_v37 = vadd.f32 %v15042_v10, %v14455_v9 }
 0x320   : > { %v1099_v38 = vpop.f32.mrf.mxu0 }
 0x321   : > { %19150 = vst [vmem:[#allocation34_spill] sm:$0xff] %v16962_v37  ;;  %v16964_v39 = vadd.f32 %v14455_v9, %v1099_v38  ;;  %6529 = vrot.lane.b32.xlu0 %v16962_v37, %s16247_s24  ;;  %1128 = vrot.lane.b32.xlu1 %v16962_v37, %s16242_s9  ;;  %v16971_v40 = vmul.f32 0.35355338, %v16962_v37 }
 0x323   : > { %19151 = vst [vmem:[#allocation35_spill] sm:$0xff] %v16964_v39  ;;  %19152 = vst [vmem:[#allocation36_spill] sm:$0xff] %v16971_v40  ;;  %v16974_v41 = vmul.f32 0.35355338, %v16964_v39 }
 0x325   : > { %19153 = vst [vmem:[#allocation37_spill] sm:$0xff] %v16974_v41  ;;  %1134 = vrot.lane.b32.xlu1 %v16962_v37, %s16243_s7  ;;  %1122 = vrot.lane.b32.xlu0 %v16971_v40, %s16244_s19  ;;  %v1367_v42 = vrot.slane %v16974_v41, %v16883_v58  ;;  %v1360_v5 = vcombine.high %v16974_v41, %v16974_v41 }
 0x327   : > { %v1383_v59 = vrot.slane %v1367_v42, %v16883_v58  ;;  %v1375_v7 = vcombine.high %v1367_v42, %v1367_v42  ;;  %v1374_v10 = vrot.slane %v1360_v5, %v16883_v58 }
 0x329   : > { %1140 = vrot.lane.b32.xlu1 %v16962_v37, %s16244_s19  ;;  %6424 = vrot.lane.b32.xlu0 %v16964_v39, %s16247_s24  ;;  %v1405_v9 = vcombine.high %v1383_v59, %v1383_v59  ;;  %v1397_v38 = vrot.slane %v1375_v7, %v16883_v58  ;;  %v1390_v42 = vrot.slane %v1374_v10, %v16883_v58 }
 0x32a   : > { %15046 = vmatmul.mubr.msk.f32.vlgmr.msra.gmra.mxu1 %vm777_vm3, %v1383_v59  ;;  %v1376_v59 = vcombine.high %v1374_v10, %v1374_v10  ;;  %v1269_v10 = vpop.permute.xlu1 %1268 }
 0x32b   : > { %15049 = vmatpush3.xpose.msk.msra.mxu1 %vm777_vm3, %v16662_v49  ;;  %15056 = vmatmul.mubr.msk.f32.vlgmr.msra.gmra.mxu0 %vm777_vm3, %v1405_v9  ;;  %v1407_v5 = vcombine.high %v1397_v38, %v1397_v38  ;;  %v1406_v7 = vcombine.high %v1390_v42, %v1390_v42  ;;  %v1416_v9 = vrot.slane %v16971_v40, %v16883_v58 }
 0x32c   : > { %15064 = vmatpush3.xpose.msk.msra.mxu0 %vm777_vm3, %v16649_v46  ;;  %15050 = vmatprep.mubr.msk.f32.mxu1 %vm16241_vm0, %v19063_v0 }
 0x32d   : > { %15058 = vmatprep.subr.mxu1 %v19063_v0  ;;  %1114 = vrot.lane.b32.xlu1 %v16971_v40, %s16242_s9 }
 0x32e   : > { %1138 = vrot.lane.b32.xlu0 %v16964_v39, %s16244_s19  ;;  %15051 = vmatmul.mubr.msk.f32.vlgmr.msra.gmra.mxu1 %vm777_vm3, %v1397_v38  ;;  %v1404_v38 = vrot.slane %v1376_v59, %v16883_v58 }
 0x32f   : > { %15059 = vmatpush3.xpose.msk.msra.mxu1 %vm777_vm3, %v16659_v48  ;;  %15065 = vmatprep.mubr.msk.f32.mxu0 %vm16241_vm0, %v19063_v0 }
 0x330   : > { %15073 = vmatprep.subr.mxu0 %v19063_v0  ;;  %15066 = vmatmul.mubr.msk.f32.vlgmr.msra.gmra.mxu0 %vm777_vm3, %v1390_v42  ;;  %v1432_v42 = vrot.slane %v1416_v9, %v16883_v58  ;;  %v1408_v59 = vcombine.high %v1404_v38, %v1404_v38 }
 0x331   : > { %15074 = vmatpush3.xpose.msk.msra.mxu0 %vm777_vm3, %v16652_v47  ;;  %15060 = vmatprep.mubr.msk.f32.mxu1 %vm16241_vm0, %v19063_v0 }
 0x332   : > { %15068 = vmatprep.subr.mxu1 %v19063_v0  ;;  %1118 = vrot.lane.b32.xlu1 %v16971_v40, %s16243_s7 }
 0x333   : > { %1112 = vrot.lane.b32.xlu0 %v16974_v41, %s16242_s9  ;;  %15061 = vmatmul.mubr.msk.f32.vlgmr.msra.gmra.mxu1 %vm777_vm3, %v1407_v5  ;;  %v1409_v5 = vcombine.high %v16971_v40, %v16971_v40 }
 0x334   : > { %15069 = vmatpush3.xpose.msk.msra.mxu1 %vm777_vm3, %v16672_v51  ;;  %15075 = vmatprep.mubr.msk.f32.mxu0 %vm16241_vm0, %v19063_v0 }
 0x335   : > { %15083 = vmatprep.subr.mxu0 %v19063_v0  ;;  %15076 = vmatmul.mubr.msk.f32.vlgmr.msra.gmra.mxu0 %vm777_vm3, %v1406_v7  ;;  %v1424_v7 = vcombine.high %v1416_v9, %v1416_v9  ;;  %v1277_v9 = vld [vmem:[%s16579_s5 + $0x28] sm:$0xff] }
 0x336   : > { %15084 = vmatpush3.xpose.msk.msra.mxu0 %vm777_vm3, %v16642_v45  ;;  %15070 = vmatprep.mubr.msk.f32.mxu1 %vm16241_vm0, %v19063_v0  ;;  %v1273_v45 = vld [vmem:[%s16579_s5 + $0x8] sm:$0xff] }
 0x337   : > { %15078 = vmatprep.subr.mxu1 %v19063_v0  ;;  %1126 = vrot.lane.b32.xlu1 %v16964_v39, %s16242_s9 }
 0x338   : > { %7288 = vrot.lane.b32.xlu0 %v1269_v10, %s16245_s10  ;;  %15071 = vmatmul.mubr.msk.f32.vlgmr.msra.gmra.mxu1 %vm777_vm3, %v1404_v38  ;;  %v1454_v10 = vcombine.high %v1432_v42, %v1432_v42  ;;  %v1423_v38 = vrot.slane %v1409_v5, %v16883_v58 }
 0x339   : > { %15079 = vmatpush3.xpose.msk.msra.mxu1 %vm777_vm3, %v16669_v50  ;;  %15085 = vmatprep.mubr.msk.f32.mxu0 %vm16241_vm0, %v19063_v0 }
 0x33a   : > { %15093 = vmatprep.subr.mxu0 %v19063_v0  ;;  %15086 = vmatmul.mubr.msk.f32.vlgmr.msra.gmra.mxu0 %vm777_vm3, %v1432_v42  ;;  %v1439_v42 = vrot.slane %v1423_v38, %v16883_v58 }
 0x33b   : > { %15094 = vmatpush3.xpose.msk.msra.mxu0 %vm777_vm3, %v16639_v44  ;;  %15080 = vmatprep.mubr.msk.f32.mxu1 %vm16241_vm0, %v19063_v0  ;;  %v1271_v44 = vpop.permute.xlu0 %1270 }
 0x33c   : > { %15088 = vmatprep.subr.mxu1 %v19063_v0  ;;  %1132 = vrot.lane.b32.xlu1 %v16964_v39, %s16243_s7 }
 0x33d   : > { %1290 = vrot.lane.b32.xlu0 %v1273_v45, %s16242_s9  ;;  %15081 = vmatmul.mubr.msk.f32.vlgmr.msra.gmra.mxu1 %vm777_vm3, %v1408_v59  ;;  %v1279_v45 = vld [vmem:[%s16579_s5 + $0x38] sm:$0xff]  ;;  %v1455_v59 = vcombine.high %v1439_v42, %v1439_v42 }
 0x33e   : > { %15089 = vmatpush3.xpose.msk.msra.mxu1 %vm777_vm3, %v16662_v49  ;;  %15095 = vmatprep.mubr.msk.f32.mxu0 %vm16241_vm0, %v19063_v0  ;;  %v1446_v49 = vrot.slane %v1424_v7, %v16883_v58 }
 0x33f   : > { %15103 = vmatprep.subr.mxu0 %v19063_v0  ;;  %15096 = vmatmul.mubr.msk.f32.vlgmr.msra.gmra.mxu0 %vm777_vm3, %v1454_v10 }
 0x340   : > { %15104 = vmatpush3.xpose.msk.msra.mxu0 %vm777_vm3, %v16649_v46  ;;  %15090 = vmatprep.mubr.msk.f32.mxu1 %vm16241_vm0, %v19063_v0  ;;  %v1272_v46 = vld [vmem:[%s16579_s5] sm:$0xff]  ;;  %v1456_v5 = vcombine.high %v1446_v49, %v1446_v49 }
 0x341   : > { %15098 = vmatprep.subr.mxu1 %v19063_v0  ;;  %7290 = vrot.lane.b32.xlu1 %v1271_v44, %s16245_s10  ;;  %v1276_v44 = vld [vmem:[%s16579_s5 + $0x20] sm:$0xff]  ;;  %s14678_s10 = sshll.u32 %s19194_s28, 1  ;;  %s16099_s28 = scalar_lea.vmem %s18954_s25, 256 }
 0x342   : > { %1298 = vrot.lane.b32.xlu0 %v1277_v9, %s16242_s9  ;;  %15091 = vmatmul.mubr.msk.f32.vlgmr.msra.gmra.mxu1 %vm777_vm3, %v1446_v49  ;;  %v7333_v9 = vmul.f32 %v16892_v36, %v16971_v40  ;;  %v7334_v49 = vmul.f32 %v16900_v43, %v16971_v40  ;;  %s14256_s20 = sadd.s32 %s14679_s21, %s14678_s10  ;;  %p16100_p12 = scmp.ne.s32.totalorder %s18954_s25, %s16099_s28 }
 0x343   : > { %15099 = vmatpush3.xpose.msk.msra.mxu1 %vm777_vm3, %v16659_v48  ;;  %15105 = vmatprep.mubr.msk.f32.mxu0 %vm16241_vm0, %v19063_v0  ;;  %v1425_v48 = vcombine.high %v1423_v38, %v1423_v38  ;;  %v7332_v38 = vmul.f32 %v16890_v35, %v16971_v40  ;;  %s14680_s6 = sshll.u32 %s14256_s20, 7  ;;  %s16103_s10 = sshll.u32 %s16252_s12, 4  ;;  %s16104_s10 = int_to_ptr.vmem [resolvable:$false] %s16103_s10 }
 0x344   : > { %15113 = vmatprep.subr.mxu0 %v19063_v0  ;;  %15106 = vmatmul.mubr.msk.f32.vlgmr.msra.gmra.mxu0 %vm777_vm3, %v1439_v42  ;;  %v7335_v42 = vmul.f32 %v16902_v52, %v16971_v40  ;;  %p16101_p6 = pnand %p16100_p12, %p16480_p3  ;;  %s16105_s21 = scalar_lea.vmem %s16104_s10, 512 }
 0x345   : > { %15114 = vmatpush3.xpose.msk.msra.mxu0 %vm777_vm3, %v16652_v47  ;;  %15100 = vmatprep.mubr.msk.f32.mxu1 %vm16241_vm0, %v19063_v0  ;;  %v1274_v47 = vld [vmem:[%s16579_s5 + $0x10] sm:$0xff]  ;;  %v1453_v7 = vrot.slane %v1425_v48, %v16883_v58  ;;  %v7338_v48 = vmul.f32 %v16918_v4, %v16971_v40  ;;  %p16106_p0 = scmp.lt.s32.totalorder %s18954_s25, %s16104_s10  ;;  %p16107_p8 = scmp.lt.s32.totalorder %s16105_s21, %s16099_s28 }
 0x346   : > { %15108 = vmatprep.subr.mxu1 %v19063_v0  ;;  %1288 = vrot.lane.b32.xlu1 %v1272_v46, %s16242_s9  ;;  %p16102_p5 = pneg %p16101_p6 }
 0x347   : > { %1302 = vrot.lane.b32.xlu0 %v1279_v45, %s16242_s9  ;;  %15101 = vmatmul.mubr.msk.f32.vlgmr.msra.gmra.mxu1 %vm777_vm3, %v1456_v5  ;;  %v1457_v10 = vcombine.high %v1453_v7, %v1453_v7  ;;  %v17147_v45 = vpop.permute.xlu0 %7262  ;;  %v7337_v5 = vmul.f32 %v16910_v63, %v16971_v40  ;;  %p16108_p2 = por %p16107_p8, %p16106_p0 }
 0x348   : > { %15109 = vmatpush3.xpose.msk.msra.mxu1 %vm777_vm3, %v16672_v51  ;;  %15115 = vmatprep.mubr.msk.f32.mxu0 %vm16241_vm0, %v19063_v0  ;;  %v1275_v51 = vld [vmem:[%s16579_s5 + $0x18] sm:$0xff] }
 0x349   : > { %15123 = vmatprep.subr.mxu0 %v19063_v0  ;;  %15116 = vmatmul.mubr.msk.f32.vlgmr.msra.gmra.mxu0 %vm777_vm3, %v1455_v59  ;;  %v7339_v59 = vmul.f32 %v16929_v8, %v16971_v40  ;;  %p16109_p7 = pnand %p16108_p2, %p16102_p5 }
 0x34a   : > { %15124 = vmatpush3.xpose.msk.msra.mxu0 %vm777_vm3, %v16780_v12  ;;  %15110 = vmatprep.mubr.msk.f32.mxu1 %vm16241_vm0, %v19063_v0 }
 0x34b   : > { %15118 = vmatprep.subr.mxu1 %v19063_v0  ;;  %1292 = vrot.lane.b32.xlu1 %v1274_v47, %s16242_s9  ;;  %v17158_v47 = vpop.permute.xlu0 %7264 }
 0x34c   : > { %1312 = vrot.lane.b32.xlu0 %v1272_v46, %s16243_s7  ;;  %15111 = vmatmul.mubr.msk.f32.vlgmr.msra.gmra.mxu1 %vm777_vm3, %v1453_v7  ;;  %v7336_v46 = vmul.f32 %v16908_v62, %v16971_v40  ;;  %v7324_v7 = vmul.f32 %v16890_v35, %v16974_v41  ;;  %v7328_v35 = vmul.f32 %v16908_v62, %v16974_v41 }
 0x34d   : > { %15119 = vmatpush3.xpose.msk.msra.mxu1 %vm777_vm3, %v16669_v50  ;;  %15120 = vmatprep.mubr.msk.f32.mxu1 %vm16241_vm0, %v19063_v0  ;;  %v1278_v50 = vld [vmem:[%s16579_s5 + $0x30] sm:$0xff]  ;;  %v7331_v62 = vmul.f32 %v16929_v8, %v16974_v41 }
 0x34e   : > { %15128 = vmatprep.subr.mxu1 %v19063_v0  ;;  %15125 = vmatprep.mubr.msk.f32.mxu0 %vm16241_vm0, %v19063_v0 }
 0x34f   : > { %1294 = vrot.lane.b32.xlu1 %v1275_v51, %s16242_s9  ;;  %15133 = vmatprep.subr.mxu0 %v19063_v0  ;;  %v7325_v51 = vmul.f32 %v16892_v36, %v16974_v41 }
 0x350   : > { %1116 = vrot.lane.b32.xlu0 %v16974_v41, %s16243_s7  ;;  %15121 = vmatmul.mubr.msk.f32.vlgmr.msra.gmra.mxu1 %vm777_vm3, %v1457_v10  ;;  %v7326_v10 = vmul.f32 %v16900_v43, %v16974_v41  ;;  %v7329_v43 = vmul.f32 %v16910_v63, %v16974_v41 }
 0x351   : > { %15129 = vmatpush3.xpose.msk.msra.mxu1 %vm777_vm3, %v16796_v16  ;;  %15130 = vmatprep.mubr.msk.f32.mxu1 %vm16241_vm0, %v19063_v0 }
 0x352   : > { %15138 = vmatprep.subr.mxu1 %v19063_v0 }
 0x353   : > { %1296 = vrot.lane.b32.xlu1 %v1276_v44, %s16242_s9  ;;  %v17169_v44 = vpop.permute.xlu0 %7266 }
 0x354   : > { %1120 = vrot.lane.b32.xlu0 %v16974_v41, %s16244_s19 }
 0x357   : > { %1300 = vrot.lane.b32.xlu1 %v1278_v50, %s16242_s9  ;;  %v7327_v50 = vmul.f32 %v16902_v52, %v16974_v41  ;;  %v17178_v36 = vpop.permute.xlu0 %7268  ;;  %s16249_s9 = smov 8  }
 0x358   : > { %7468 = vrot.lane.b32.xlu0 %v7332_v38, %s16247_s24  ;;  %v7330_v38 = vmul.f32 %v16918_v4, %v16974_v41 }
 0x35b   : > { %7470 = vrot.lane.b32.xlu1 %v7333_v9, %s16247_s24  ;;  %v17185_v9 = vpop.permute.xlu1 %7260  ;;  %v17187_v52 = vpop.permute.xlu0 %7272 }
 0x35c   : > { %7472 = vrot.lane.b32.xlu0 %v7334_v49, %s16247_s24 }
 0x35f   : > { %7474 = vrot.lane.b32.xlu1 %v7335_v42, %s16247_s24  ;;  %v17193_v49 = vpop.permute.xlu1 %7270  ;;  %v17195_v42 = vpop.permute.xlu0 %7278 }
 0x360   : > { %7476 = vrot.lane.b32.xlu0 %v7336_v46, %s16247_s24 }
 0x363   : > { %7478 = vrot.lane.b32.xlu1 %v7337_v5, %s16247_s24  ;;  %v17197_v63 = vpop.permute.xlu0 %7280  ;;  %v17199_v46 = vpop.permute.xlu1 %7274 }
 0x364   : > { %7480 = vrot.lane.b32.xlu0 %v7338_v48, %s16247_s24 }
 0x367   : > { %7482 = vrot.lane.b32.xlu1 %v7339_v59, %s16247_s24  ;;  %v17201_v4 = vpop.permute.xlu1 %7276  ;;  %v17203_v5 = vpop.permute.xlu0 %7282 }
 0x368   : > { %7452 = vrot.lane.b32.xlu0 %v7324_v7, %s16247_s24 }
 0x36b   : > { %7454 = vrot.lane.b32.xlu1 %v7325_v51, %s16247_s24  ;;  %v17205_v48 = vpop.permute.xlu1 %7286  ;;  %v17207_v59 = vpop.permute.xlu0 %7284 }
 0x36c   : > { %7456 = vrot.lane.b32.xlu0 %v7326_v10, %s16247_s24 }
 0x36f   : > { %7458 = vrot.lane.b32.xlu1 %v7327_v50, %s16247_s24 }
 0x370   : > { %7460 = vrot.lane.b32.xlu0 %v7328_v35, %s16247_s24 }
 0x373   : > { %7462 = vrot.lane.b32.xlu1 %v7329_v43, %s16247_s24 }
 0x377   : > { %7464 = vrot.lane.b32.xlu1 %v7330_v38, %s16247_s24 }
 0x37b   : > { %7466 = vrot.lane.b32.xlu1 %v7331_v62, %s16247_s24 }
 0x393   : > { %v17209_v7 = vpop.permute.xlu0 %6529  ;;  %v17211_v8 = vpop.permute.xlu1 %1128 }
 0x394   : > { %19154 = vst [vmem:[#allocation38_spill] sm:$0xff] %v17209_v7  ;;  %19155 = vst [vmem:[#allocation39_spill] sm:$0xff] %v17211_v8  ;;  %6727 = vrot.lane.b32.xlu0 %v17211_v8, %s16247_s24  ;;  %v17242_v39 = vmul.f32 0.35355338, %v17211_v8 }
 0x397   : > { %v17215_v51 = vpop.permute.xlu1 %1134  ;;  %v17217_v10 = vpop.permute.xlu0 %1122 }
 0x398   : > { %19156 = vst [vmem:[#allocation40_spill] sm:$0xff] %v17215_v51  ;;  %6925 = vrot.lane.b32.xlu1 %v17215_v51, %s16247_s24 }
 0x39b   : > { %v17221_v50 = vpop.permute.xlu1 %1140  ;;  %v17223_v35 = vpop.permute.xlu0 %6424 }
 0x39c   : > { %19157 = vst [vmem:[#allocation41_spill] sm:$0xff] %v17221_v50  ;;  %19158 = vst [vmem:[#allocation42_spill] sm:$0xff] %v17223_v35  ;;  %7123 = vrot.lane.b32.xlu1 %v17221_v50, %s16247_s24 }
 0x39f   : > { %v17227_v43 = vpop.permute.xlu1 %1114 }
 0x3a0   : > { %v17229_v38 = vpop.permute.xlu0 %1138 }
 0x3a4   : > { %v17231_v62 = vpop.permute.xlu1 %1118 }
 0x3a5   : > { %v17233_v0 = vpop.permute.xlu0 %1112 }
 0x3a6   : > { %19159 = vst [vmem:[#allocation43_spill] sm:$0xff] %v17233_v0  ;;  %v1465_v55 = vrot.slane %v17233_v0, %v16883_v58  ;;  %v1458_v57 = vcombine.high %v17233_v0, %v17233_v0  ;;  %v19161_v0 = vmov 0.0  }
 0x3a8   : > { %v1473_v6 = vcombine.high %v1465_v55, %v1465_v55  ;;  %v1481_v40 = vrot.slane %v1465_v55, %v16883_v58  ;;  %v1472_v35 = vrot.slane %v1458_v57, %v16883_v58 }
 0x3a9   : > { %v17239_v37 = vpop.permute.xlu1 %1126 }
 0x3aa   : > { %19160 = vst [vmem:[#allocation44_spill] sm:$0xff] %v17239_v37  ;;  %6628 = vrot.lane.b32.xlu0 %v17239_v37, %s16247_s24  ;;  %v17247_v41 = vpop.permute.xlu0 %7288  ;;  %v1495_v7 = vrot.slane %v1473_v6, %v16883_v58  ;;  %15126 = vmatmul.mubr.msk.f32.vlgmr.msra.gmra.mxu0 %vm777_vm3, %v1481_v40  ;;  %v1503_v8 = vcombine.high %v1481_v40, %v1481_v40 }
 0x3ab   : > { %15134 = vmatpush3.xpose.msk.msra.mxu0 %vm777_vm3, %v16778_v11  ;;  %15135 = vmatprep.mubr.msk.f32.mxu0 %vm16241_vm0, %v19161_v0  ;;  %v7348_v6 = vmul.f32 %v16940_v2, %v17242_v39  ;;  %v1474_v40 = vcombine.high %v1472_v35, %v1472_v35 }
 0x3ac   : > { %15131 = vmatmul.mubr.msk.f32.vlgmr.msra.gmra.mxu1 %vm777_vm3, %v1495_v7  ;;  %15143 = vmatprep.subr.mxu0 %v19161_v0  ;;  %v1505_v57 = vcombine.high %v1495_v7, %v1495_v7  ;;  %v7350_v7 = vmul.f32 %v16942_v53, %v17242_v39 }
 0x3ad   : > { %15139 = vmatpush3.xpose.msk.msra.mxu1 %vm777_vm3, %v16794_v15  ;;  %15140 = vmatprep.mubr.msk.f32.mxu1 %vm16241_vm0, %v19161_v0 }
 0x3ae   : > { %v17257_v55 = vpop.permute.xlu1 %1132  ;;  %7500 = vrot.lane.b32.xlu0 %v7348_v6, %s16247_s24  ;;  %15136 = vmatmul.mubr.msk.f32.vlgmr.msra.gmra.mxu0 %vm777_vm3, %v1503_v8  ;;  %v1502_v8 = vrot.slane %v1474_v40, %v16883_v58 }
 0x3af   : > { %19162 = vst [vmem:[#allocation45_spill] sm:$0xff] %v17257_v55  ;;  %6826 = vrot.lane.b32.xlu1 %v17257_v55, %s16247_s24  ;;  %v17268_v37 = vpop.permute.xlu0 %1290  ;;  %15144 = vmatpush3.xpose.msk.msra.mxu0 %vm777_vm3, %v16786_v13  ;;  %v1488_v55 = vrot.slane %v1472_v35, %v16883_v58  ;;  %v1514_v35 = vrot.slane %v17227_v43, %v16883_v58 }
 0x3b0   : > { %19163 = vst [vmem:[#allocation46_spill] sm:$0xff] %v17268_v37  ;;  %15148 = vmatprep.subr.mxu1 %v19161_v0  ;;  %15141 = vmatmul.mubr.msk.f32.vlgmr.msra.gmra.mxu1 %vm777_vm3, %v1505_v57  ;;  %v7349_v57 = vmul.f32 %v16944_v54, %v17242_v39 }
 0x3b1   : > { %15149 = vmatpush3.xpose.msk.msra.mxu1 %vm777_vm3, %v16804_v18  ;;  %15145 = vmatprep.mubr.msk.f32.mxu0 %vm16241_vm0, %v19161_v0  ;;  %v1504_v40 = vcombine.high %v1488_v55, %v1488_v55  ;;  %v1522_v37 = vcombine.high %v1514_v35, %v1514_v35 }
 0x3b2   : > { %15153 = vmatprep.subr.mxu0 %v19161_v0  ;;  %7504 = vrot.lane.b32.xlu0 %v7350_v7, %s16247_s24  ;;  %v7352_v7 = vmul.f32 %v16946_v56, %v17242_v39 }
 0x3b3   : > { %7024 = vrot.lane.b32.xlu1 %v17229_v38, %s16247_s24  ;;  %15146 = vmatmul.mubr.msk.f32.vlgmr.msra.gmra.mxu0 %vm777_vm3, %v1488_v55  ;;  %v7351_v55 = vmul.f32 %v16948_v60, %v17242_v39 }
 0x3b4   : > { %15154 = vmatpush3.xpose.msk.msra.mxu0 %vm777_vm3, %v16788_v14  ;;  %15150 = vmatprep.mubr.msk.f32.mxu1 %vm16241_vm0, %v19161_v0  ;;  %v17295_v6 = vpop.permute.xlu0 %1298 }
 0x3b5   : > { %19164 = vst [vmem:[#allocation47_spill] sm:$0xff] %v17295_v6  ;;  %15158 = vmatprep.subr.mxu1 %v19161_v0  ;;  %15151 = vmatmul.mubr.msk.f32.vlgmr.msra.gmra.mxu1 %vm777_vm3, %v1502_v8  ;;  %v1506_v6 = vcombine.high %v1502_v8, %v1502_v8  ;;  %v17329_v8 = vmul.f32 0.35355338, %v17215_v51 }
 0x3b6   : > { %15159 = vmatpush3.xpose.msk.msra.mxu1 %vm777_vm3, %v16802_v17  ;;  %15155 = vmatprep.mubr.msk.f32.mxu0 %vm16241_vm0, %v19161_v0 }
 0x3b7   : > { %15163 = vmatprep.subr.mxu0 %v19161_v0  ;;  %7502 = vrot.lane.b32.xlu1 %v7349_v57, %s16247_s24  ;;  %v1530_v57 = vrot.slane %v1514_v35, %v16883_v58  ;;  %v7353_v35 = vmul.f32 %v16954_v1, %v17242_v39 }
 0x3b8   : > { %7508 = vrot.lane.b32.xlu0 %v7352_v7, %s16247_s24  ;;  %15156 = vmatmul.mubr.msk.f32.vlgmr.msra.gmra.mxu0 %vm777_vm3, %v1504_v40  ;;  %v17333_v40 = vpop.permute.xlu1 %7290 }
 0x3b9   : > { %15164 = vmatpush3.xpose.msk.msra.mxu0 %vm777_vm3, %v16780_v12  ;;  %15160 = vmatprep.mubr.msk.f32.mxu1 %vm16241_vm0, %v19161_v0  ;;  %v17320_v7 = vpop.permute.xlu0 %1302  ;;  %v7354_v12 = vmul.f32 %v16950_v3, %v17242_v39 }
 0x3ba   : > { %15168 = vmatprep.subr.mxu1 %v19161_v0  ;;  %15161 = vmatmul.mubr.msk.f32.vlgmr.msra.gmra.mxu1 %vm777_vm3, %v1506_v6  ;;  %19165 = vst [vmem:[#allocation48_spill] sm:$0xff] %v17320_v7  ;;  %v1507_v6 = vcombine.high %v17227_v43, %v17227_v43 }
 0x3bb   : > { %15169 = vmatpush3.xpose.msk.msra.mxu1 %vm777_vm3, %v16796_v16  ;;  %15165 = vmatprep.mubr.msk.f32.mxu0 %vm16241_vm0, %v19161_v0  ;;  %v1544_v16 = vrot.slane %v1522_v37, %v16883_v58  ;;  %v1552_v37 = vcombine.high %v1530_v57, %v1530_v57 }
 0x3bc   : > { %15173 = vmatprep.subr.mxu0 %v19161_v0  ;;  %7506 = vrot.lane.b32.xlu1 %v7351_v55, %s16247_s24  ;;  %v1521_v55 = vrot.slane %v1507_v6, %v16883_v58  ;;  %v17359_v51 = vpop.permute.xlu1 %1288  ;;  %v7366_v6 = vmul.f32 %v17158_v47, %v17329_v8 }
 0x3bd   : > { %7512 = vrot.lane.b32.xlu0 %v7354_v12, %s16247_s24  ;;  %15166 = vmatmul.mubr.msk.f32.vlgmr.msra.gmra.mxu0 %vm777_vm3, %v1530_v57  ;;  %v1554_v7 = vcombine.high %v1544_v16, %v1544_v16  ;;  %19167 = vst [vmem:[#allocation50_spill] sm:$0xff] %v17359_v51  ;;  %v7355_v57 = vmul.f32 %v16952_v61, %v17242_v39 }
 0x3be   : > { %15174 = vmatpush3.xpose.msk.msra.mxu0 %vm777_vm3, %v16778_v11  ;;  %15170 = vmatprep.mubr.msk.f32.mxu1 %vm16241_vm0, %v19161_v0  ;;  %v7365_v11 = vmul.f32 %v17147_v45, %v17329_v8  ;;  %v17355_v12 = vpop.permute.xlu0 %1312 }
 0x3bf   : > { %15178 = vmatprep.subr.mxu1 %v19161_v0  ;;  %15171 = vmatmul.mubr.msk.f32.vlgmr.msra.gmra.mxu1 %vm777_vm3, %v1544_v16  ;;  %19166 = vst [vmem:[#allocation49_spill] sm:$0xff] %v17355_v12  ;;  %v1537_v16 = vrot.slane %v1521_v55, %v16883_v58 }
 0x3c0   : > { %15179 = vmatpush3.xpose.msk.msra.mxu1 %vm777_vm3, %v16794_v15  ;;  %15175 = vmatprep.mubr.msk.f32.mxu0 %vm16241_vm0, %v19161_v0  ;;  %v1523_v15 = vcombine.high %v1521_v55, %v1521_v55 }
 0x3c1   : > { %15183 = vmatprep.subr.mxu0 %v19161_v0  ;;  %7510 = vrot.lane.b32.xlu1 %v7353_v35, %s16247_s24  ;;  %v7364_v35 = vmul.f32 %v17185_v9, %v17329_v8  ;;  %v1553_v55 = vcombine.high %v1537_v16, %v1537_v16 }
 0x3c2   : > { %7534 = vrot.lane.b32.xlu0 %v7365_v11, %s16247_s24  ;;  %15176 = vmatmul.mubr.msk.f32.vlgmr.msra.gmra.mxu0 %vm777_vm3, %v1552_v37  ;;  %v17404_v37 = vmul.f32 0.35355338, %v17221_v50 }
 0x3c3   : > { %15184 = vmatpush3.xpose.msk.msra.mxu0 %vm777_vm3, %v16786_v13  ;;  %15180 = vmatprep.mubr.msk.f32.mxu1 %vm16241_vm0, %v19161_v0  ;;  %v17379_v13 = vpop.permute.xlu0 %1116 }
 0x3c4   : > { %15188 = vmatprep.subr.mxu1 %v19161_v0  ;;  %15181 = vmatmul.mubr.msk.f32.vlgmr.msra.gmra.mxu1 %vm777_vm3, %v1554_v7  ;;  %v17384_v7 = vpop.permute.xlu1 %1292  ;;  %v1563_v39 = vrot.slane %v17379_v13, %v16883_v58 }
 0x3c5   : > { %15189 = vmatpush3.xpose.msk.msra.mxu1 %vm777_vm3, %v16804_v18  ;;  %15185 = vmatprep.mubr.msk.f32.mxu0 %vm16241_vm0, %v19161_v0  ;;  %v1551_v18 = vrot.slane %v1523_v15, %v16883_v58  ;;  %19168 = vst [vmem:[#allocation51_spill] sm:$0xff] %v17384_v7 }
 0x3c6   : > { %15193 = vmatprep.subr.mxu0 %v19161_v0  ;;  %7514 = vrot.lane.b32.xlu1 %v7355_v57, %s16247_s24  ;;  %v7367_v57 = vmul.f32 %v17169_v44, %v17329_v8 }
 0x3c7   : > { %7536 = vrot.lane.b32.xlu0 %v7366_v6, %s16247_s24  ;;  %15186 = vmatmul.mubr.msk.f32.vlgmr.msra.gmra.mxu0 %vm777_vm3, %v1537_v16  ;;  %v1555_v11 = vcombine.high %v1551_v18, %v1551_v18  ;;  %v1556_v6 = vcombine.high %v17379_v13, %v17379_v13  ;;  %v1579_v16 = vrot.slane %v1563_v39, %v16883_v58 }
 0x3c8   : > { %15190 = vmatprep.mubr.msk.f32.mxu1 %vm16241_vm0, %v19161_v0  ;;  %15194 = vmatpush3.xpose.msk.msra.mxu0 %vm777_vm3, %v16788_v14  ;;  %v7368_v14 = vmul.f32 %v17178_v36, %v17329_v8  ;;  %v17410_v15 = vpop.permute.xlu1 %1294 }
 0x3c9   : > { %15198 = vmatprep.subr.mxu1 %v19161_v0  ;;  %15191 = vmatmul.mubr.msk.f32.vlgmr.msra.gmra.mxu1 %vm777_vm3, %v1551_v18  ;;  %19169 = vst [vmem:[#allocation52_spill] sm:$0xff] %v17410_v15  ;;  %v7381_v18 = vmul.f32 %v17195_v42, %v17404_v37 }
 0x3ca   : > { %15199 = vmatpush3.xpose.msk.msra.mxu1 %vm777_vm3, %v16802_v17  ;;  %15195 = vmatprep.mubr.msk.f32.mxu0 %vm16241_vm0, %v19161_v0  ;;  %v1571_v17 = vcombine.high %v1563_v39, %v1563_v39  ;;  %v1570_v39 = vrot.slane %v1556_v6, %v16883_v58 }
 0x3cb   : > { %15203 = vmatprep.subr.mxu0 %v19161_v0  ;;  %7532 = vrot.lane.b32.xlu1 %v7364_v35, %s16247_s24 }
 0x3cc   : > { %7540 = vrot.lane.b32.xlu0 %v7368_v14, %s16247_s24  ;;  %15196 = vmatmul.mubr.msk.f32.vlgmr.msra.gmra.mxu0 %vm777_vm3, %v1553_v55  ;;  %v1593_v35 = vrot.slane %v1571_v17, %v16883_v58  ;;  %v17439_v55 = vpop.permute.xlu1 %1296  ;;  %v7369_v14 = vmul.f32 %v17193_v49, %v17329_v8  ;;  %v7382_v17 = vmul.f32 %v17197_v63, %v17404_v37 }
 0x3cd   : > { %15204 = vmatpush3.xpose.msk.msra.mxu0 %vm777_vm3, %v16810_v19  ;;  %15200 = vmatprep.mubr.msk.f32.mxu1 %vm16241_vm0, %v19161_v0  ;;  %19170 = vst [vmem:[#allocation53_spill] sm:$0xff] %v17439_v55  ;;  %v1572_v6 = vcombine.high %v1570_v39, %v1570_v39 }
 0x3ce   : > { %15208 = vmatprep.subr.mxu1 %v19161_v0  ;;  %15201 = vmatmul.mubr.msk.f32.vlgmr.msra.gmra.mxu1 %vm777_vm3, %v1555_v11  ;;  %v1601_v11 = vcombine.high %v1579_v16, %v1579_v16 }
 0x3cf   : > { %15209 = vmatpush3.xpose.msk.msra.mxu1 %vm777_vm3, %v16828_v24  ;;  %15205 = vmatprep.mubr.msk.f32.mxu0 %vm16241_vm0, %v19161_v0 }
 0x3d0   : > { %15213 = vmatprep.subr.mxu0 %v19161_v0  ;;  %7538 = vrot.lane.b32.xlu1 %v7367_v57, %s16247_s24  ;;  %v1603_v57 = vcombine.high %v1593_v35, %v1593_v35 }
 0x3d1   : > { %7566 = vrot.lane.b32.xlu0 %v7381_v18, %s16247_s24  ;;  %15206 = vmatmul.mubr.msk.f32.vlgmr.msra.gmra.mxu0 %vm777_vm3, %v1579_v16  ;;  %v7370_v16 = vmul.f32 %v17187_v52, %v17329_v8  ;;  %v1586_v18 = vrot.slane %v1570_v39, %v16883_v58  ;;  %v1612_v39 = vrot.slane %v17231_v62, %v16883_v58 }
 0x3d2   : > { %15214 = vmatpush3.xpose.msk.msra.mxu0 %vm777_vm3, %v16812_v20  ;;  %15210 = vmatprep.mubr.msk.f32.mxu1 %vm16241_vm0, %v19161_v0 }
 0x3d3   : > { %15218 = vmatprep.subr.mxu1 %v19161_v0  ;;  %15211 = vmatmul.mubr.msk.f32.vlgmr.msra.gmra.mxu1 %vm777_vm3, %v1593_v35  ;;  %v17464_v35 = vpop.permute.xlu1 %1300 }
 0x3d4   : > { %15219 = vmatpush3.xpose.msk.msra.mxu1 %vm777_vm3, %v16826_v23  ;;  %15215 = vmatprep.mubr.msk.f32.mxu0 %vm16241_vm0, %v19161_v0  ;;  %19171 = vst [vmem:[#allocation54_spill] sm:$0xff] %v17464_v35 }
 0x3d5   : > { %15223 = vmatprep.subr.mxu0 %v19161_v0  ;;  %7542 = vrot.lane.b32.xlu1 %v7369_v14, %s16247_s24  ;;  %v7384_v14 = vmul.f32 %v17207_v59, %v17404_v37 }
 0x3d6   : > { %7568 = vrot.lane.b32.xlu0 %v7382_v17, %s16247_s24  ;;  %15216 = vmatmul.mubr.msk.f32.vlgmr.msra.gmra.mxu0 %vm777_vm3, %v1601_v11  ;;  %v1600_v11 = vrot.slane %v1572_v6, %v16883_v58  ;;  %v7371_v17 = vmul.f32 %v17199_v46, %v17329_v8 }
 0x3d7   : > { %15224 = vmatpush3.xpose.msk.msra.mxu0 %vm777_vm3, %v16818_v21  ;;  %15220 = vmatprep.mubr.msk.f32.mxu1 %vm16241_vm0, %v19161_v0  ;;  %v17491_v6 = vpop.permute.xlu1 %7470 }
 0x3d8   : > { %15228 = vmatprep.subr.mxu1 %v19161_v0  ;;  %15221 = vmatmul.mubr.msk.f32.vlgmr.msra.gmra.mxu1 %vm777_vm3, %v1603_v57  ;;  %v1602_v57 = vcombine.high %v1586_v18, %v1586_v18  ;;  %v1604_v8 = vcombine.high %v1600_v11, %v1600_v11 }
 0x3d9   : > { %15229 = vmatpush3.xpose.msk.msra.mxu1 %vm777_vm3, %v16836_v26  ;;  %15225 = vmatprep.mubr.msk.f32.mxu0 %vm16241_vm0, %v19161_v0 }
 0x3da   : > { %15233 = vmatprep.subr.mxu0 %v19161_v0  ;;  %7544 = vrot.lane.b32.xlu1 %v7370_v16, %s16247_s24  ;;  %v1620_v16 = vcombine.high %v1612_v39, %v1612_v39 }
 0x3db   : > { %7572 = vrot.lane.b32.xlu0 %v7384_v14, %s16247_s24  ;;  %15226 = vmatmul.mubr.msk.f32.vlgmr.msra.gmra.mxu0 %vm777_vm3, %v1586_v18  ;;  %v1605_v18 = vcombine.high %v17231_v62, %v17231_v62  ;;  %v1628_v14 = vrot.slane %v1612_v39, %v16883_v58  ;;  %v17516_v39 = vpop.permute.xlu1 %7474 }
 0x3dc   : > { %15234 = vmatpush3.xpose.msk.msra.mxu0 %vm777_vm3, %v16820_v22  ;;  %15230 = vmatprep.mubr.msk.f32.mxu1 %vm16241_vm0, %v19161_v0 }
 0x3dd   : > { %15238 = vmatprep.subr.mxu1 %v19161_v0  ;;  %15231 = vmatmul.mubr.msk.f32.vlgmr.msra.gmra.mxu1 %vm777_vm3, %v1600_v11  ;;  %v1642_v11 = vrot.slane %v1620_v16, %v16883_v58  ;;  %v1650_v16 = vcombine.high %v1628_v14, %v1628_v14 }
 0x3de   : > { %15239 = vmatpush3.xpose.msk.msra.mxu1 %vm777_vm3, %v16834_v25  ;;  %15235 = vmatprep.mubr.msk.f32.mxu0 %vm16241_vm0, %v19161_v0 }
 0x3df   : > { %15243 = vmatprep.subr.mxu0 %v19161_v0  ;;  %7546 = vrot.lane.b32.xlu1 %v7371_v17, %s16247_s24  ;;  %v7380_v17 = vmul.f32 %v17201_v4, %v17404_v37  ;;  %v17541_v35 = vpop.permute.xlu1 %7478 }
 0x3e0   : > { %15236 = vmatmul.mubr.msk.f32.vlgmr.msra.gmra.mxu0 %vm777_vm3, %v1602_v57  ;;  %15240 = vmatprep.mubr.msk.f32.mxu1 %vm16241_vm0, %v19161_v0  ;;  %v17522_v57 = vpop.permute.xlu0 %1120 }
 0x3e1   : > { %15244 = vmatpush3.xpose.msk.msra.mxu0 %vm777_vm3, %v16810_v19  ;;  %15248 = vmatprep.subr.mxu1 %v19161_v0  ;;  %v1619_v19 = vrot.slane %v1605_v18, %v16883_v58  ;;  %v1661_v55 = vrot.slane %v17522_v57, %v16883_v58 }
 0x3e2   : > { %15241 = vmatmul.mubr.msk.f32.vlgmr.msra.gmra.mxu1 %vm777_vm3, %v1604_v8  ;;  %15245 = vmatprep.mubr.msk.f32.mxu0 %vm16241_vm0, %v19161_v0 }
 0x3e3   : > { %15249 = vmatpush3.xpose.msk.msra.mxu1 %vm777_vm3, %v16828_v24  ;;  %15253 = vmatprep.subr.mxu0 %v19161_v0  ;;  %v7383_v24 = vmul.f32 %v17203_v5, %v17404_v37  ;;  %v1621_v18 = vcombine.high %v1619_v19, %v1619_v19  ;;  %v1635_v12 = vrot.slane %v1619_v19, %v16883_v58 }
 0x3e4   : > { %7564 = vrot.lane.b32.xlu1 %v7380_v17, %s16247_s24  ;;  %15246 = vmatmul.mubr.msk.f32.vlgmr.msra.gmra.mxu0 %vm777_vm3, %v1628_v14  ;;  %v1652_v17 = vcombine.high %v1642_v11, %v1642_v11 }
 0x3e5   : > { %15254 = vmatpush3.xpose.msk.msra.mxu0 %vm777_vm3, %v16812_v20  ;;  %15250 = vmatprep.mubr.msk.f32.mxu1 %vm16241_vm0, %v19161_v0  ;;  %v1649_v19 = vrot.slane %v1621_v18, %v16883_v58  ;;  %v7386_v18 = vmul.f32 %v17247_v41, %v17404_v37 }
 0x3e6   : > { %15258 = vmatprep.subr.mxu1 %v19161_v0  ;;  %15251 = vmatmul.mubr.msk.f32.vlgmr.msra.gmra.mxu1 %vm777_vm3, %v1642_v11  ;;  %v7385_v11 = vmul.f32 %v17205_v48, %v17404_v37 }
 0x3e7   : > { %15259 = vmatpush3.xpose.msk.msra.mxu1 %vm777_vm3, %v16826_v23  ;;  %15255 = vmatprep.mubr.msk.f32.mxu0 %vm16241_vm0, %v19161_v0 }
 0x3e8   : > { %15263 = vmatprep.subr.mxu0 %v19161_v0  ;;  %7570 = vrot.lane.b32.xlu1 %v7383_v24, %s16247_s24 }
 0x3e9   : > { %15256 = vmatmul.mubr.msk.f32.vlgmr.msra.gmra.mxu0 %vm777_vm3, %v1650_v16  ;;  %15260 = vmatprep.mubr.msk.f32.mxu1 %vm16241_vm0, %v19161_v0  ;;  %v17548_v16 = vpop.permute.xlu0 %7468 }
 0x3ea   : > { %v1822_v20 = vpop.f32.mrf.mxu1  ;;  %15264 = vmatpush3.xpose.msk.msra.mxu0 %vm777_vm3, %v16818_v21  ;;  %15268 = vmatprep.subr.mxu1 %v19161_v0 }
 0x3eb   : > { %v1970_v8 = vpop.f32.mrf.mxu0  ;;  %15261 = vmatmul.mubr.msk.f32.vlgmr.msra.gmra.mxu1 %vm777_vm3, %v1652_v17  ;;  %15265 = vmatprep.mubr.msk.f32.mxu0 %vm16241_vm0, %v19161_v0 }
 0x3ec   : > { %v15047_v14 = vpop.f32.mrf.mxu1  ;;  %15269 = vmatpush3.xpose.msk.msra.mxu1 %vm777_vm3, %v16836_v26  ;;  %15273 = vmatprep.subr.mxu0 %v19161_v0  ;;  %v6436_v17 = vrot.slane %v1970_v8, 6 }
 0x3ed   : > { %v15057_v23 = vpop.f32.mrf.mxu0  ;;  %7574 = vrot.lane.b32.xlu1 %v7385_v11, %s16247_s24  ;;  %15266 = vmatmul.mubr.msk.f32.vlgmr.msra.gmra.mxu0 %vm777_vm3, %v1635_v12  ;;  %v17581_v15 = vpop.permute.xlu0 %7472 }
 0x3ee   : > { %v1896_v24 = vpop.f32.mrf.mxu1  ;;  %15274 = vmatpush3.xpose.msk.msra.mxu0 %vm777_vm3, %v16820_v22  ;;  %15270 = vmatprep.mubr.msk.f32.mxu1 %vm16241_vm0, %v19161_v0 }
 0x3ef   : > { %v6434_v21 = vrot.slane %v1896_v24, 7  ;;  %15278 = vmatprep.subr.mxu1 %v19161_v0  ;;  %15271 = vmatmul.mubr.msk.f32.vlgmr.msra.gmra.mxu1 %vm777_vm3, %v1649_v19  ;;  %v1651_v24 = vcombine.high %v1635_v12, %v1635_v12 }
 0x3f0   : > { %v15052_v14 = vpop.f32.mrf.mxu1  ;;  %v2118_v23 = vpop.f32.mrf.mxu0  ;;  %15279 = vmatpush3.xpose.msk.msra.mxu1 %vm777_vm3, %v16834_v25  ;;  %15275 = vmatprep.mubr.msk.f32.mxu0 %vm16241_vm0, %v19161_v0  ;;  %v1653_v25 = vcombine.high %v1649_v19, %v1649_v19  ;;  %v1677_v19 = vrot.slane %v1661_v55, %v16883_v58 }
 0x3f1   : > { %v6435_v26 = vsel %vm627_vm2, %v6434_v21, %v1822_v20  ;;  %v17572_v20 = vpop.permute.xlu1 %7482  ;;  %15283 = vmatprep.subr.mxu0 %v19161_v0  ;;  %7576 = vrot.lane.b32.xlu1 %v7386_v18, %s16247_s24  ;;  %v1669_v14 = vcombine.high %v1661_v55, %v1661_v55  ;;  %v6442_v12 = vrot.slane %v2118_v23, 4 }
 0x3f2   : > { %v6438_v8 = vsel %vm6437_vm4, %v6436_v17, %v6435_v26  ;;  %v15067_v11 = vpop.f32.mrf.mxu0  ;;  %15276 = vmatmul.mubr.msk.f32.vlgmr.msra.gmra.mxu0 %vm777_vm3, %v1651_v24  ;;  %15280 = vmatprep.mubr.msk.f32.mxu1 %vm16241_vm0, %v19161_v0  ;;  %v7387_v24 = vmul.f32 %v17333_v40, %v17404_v37 }
 0x3f3   : > { %v2044_v22 = vpop.f32.mrf.mxu1  ;;  %v1654_v11 = vcombine.high %v17522_v57, %v17522_v57  ;;  %15284 = vmatpush3.xpose.msk.msra.mxu0 %vm777_vm3, %v16842_v27  ;;  %15288 = vmatprep.subr.mxu1 %v19161_v0 }
 0x3f4   : > { %v6439_v21 = vrot.slane %v2044_v22, 5  ;;  %15281 = vmatmul.mubr.msk.f32.vlgmr.msra.gmra.mxu1 %vm777_vm3, %v1653_v25  ;;  %15285 = vmatprep.mubr.msk.f32.mxu0 %vm16241_vm0, %v19161_v0 }
 0x3f5   : > { %v15062_v17 = vpop.f32.mrf.mxu1  ;;  %v2266_v26 = vpop.f32.mrf.mxu0  ;;  %15289 = vmatpush3.xpose.msk.msra.mxu1 %vm777_vm3, %v16856_v31  ;;  %15293 = vmatprep.subr.mxu0 %v19161_v0  ;;  %v1668_v55 = vrot.slane %v1654_v11, %v16883_v58 }
 0x3f6   : > { %v6441_v18 = vsel %vm6440_vm5, %v6439_v21, %v6438_v8  ;;  %v1691_v8 = vrot.slane %v1669_v14, %v16883_v58  ;;  %7578 = vrot.lane.b32.xlu1 %v7387_v24, %s16247_s24  ;;  %15286 = vmatmul.mubr.msk.f32.vlgmr.msra.gmra.mxu0 %vm777_vm3, %v1677_v19  ;;  %v6448_v21 = vrot.slane %v2266_v26, 2  ;;  %v17610_v24 = vpop.permute.xlu0 %7476 }
 0x3f7   : > { %v6444_v23 = vsel %vm6443_vm6, %v6442_v12, %v6441_v18  ;;  %v15077_v22 = vpop.f32.mrf.mxu0  ;;  %15294 = vmatpush3.xpose.msk.msra.mxu0 %vm777_vm3, %v16844_v28  ;;  %15290 = vmatprep.mubr.msk.f32.mxu1 %vm16241_vm0, %v19161_v0  ;;  %v1699_v18 = vcombine.high %v1677_v19, %v1677_v19 }
 0x3f8   : > { %v2192_v17 = vpop.f32.mrf.mxu1  ;;  %v17605_v22 = vpop.permute.xlu1 %7454  ;;  %15298 = vmatprep.subr.mxu1 %v19161_v0  ;;  %15291 = vmatmul.mubr.msk.f32.vlgmr.msra.gmra.mxu1 %vm777_vm3, %v1691_v8  ;;  %v1701_v19 = vcombine.high %v1691_v8, %v1691_v8  ;;  %v7668_v8 = vsel %vm777_vm3, %v17548_v16, 0.0 }
 0x3f9   : > { %v6445_v37 = vrot.slane %v2192_v17, 3  ;;  %15299 = vmatpush3.xpose.msk.msra.mxu1 %vm777_vm3, %v16858_v32  ;;  %15295 = vmatprep.mubr.msk.f32.mxu0 %vm16241_vm0, %v19161_v0 }
 0x3fa   : > { %v15072_v25 = vpop.f32.mrf.mxu1  ;;  %v2412_v12 = vpop.f32.mrf.mxu0  ;;  %15303 = vmatprep.subr.mxu0 %v19161_v0  ;;  %15296 = vmatmul.mubr.msk.f32.vlgmr.msra.gmra.mxu0 %vm777_vm3, %v1699_v18  ;;  %v1684_v18 = vrot.slane %v1668_v55, %v16883_v58 }
 0x3fb   : > { %v6447_v14 = vsel %vm6446_vm7, %v6445_v37, %v6444_v23  ;;  %v1670_v25 = vcombine.high %v1668_v55, %v1668_v55  ;;  %15304 = vmatpush3.xpose.msk.msra.mxu0 %vm777_vm3, %v16852_v30  ;;  %15300 = vmatprep.mubr.msk.f32.mxu1 %vm16241_vm0, %v19161_v0 }
 0x3fc   : > { %v15087_v26 = vpop.f32.mrf.mxu0  ;;  %v6450_v11 = vsel %vm6449_vm8, %v6448_v21, %v6447_v14  ;;  %15308 = vmatprep.subr.mxu1 %v19161_v0  ;;  %15301 = vmatmul.mubr.msk.f32.vlgmr.msra.gmra.mxu1 %vm777_vm3, %v1701_v19 }
 0x3fd   : > { %v2340_v17 = vpop.f32.mrf.mxu1  ;;  %15309 = vmatpush3.xpose.msk.msra.mxu1 %vm777_vm3, %v16862_v34  ;;  %7669 = vadd.xlane.f32.xlu0 %v7668_v8  ;;  %v17633_v26 = vpop.permute.xlu1 %7458  ;;  %v1698_v16 = vrot.slane %v1670_v25, %v16883_v58  ;;  %v1700_v8 = vcombine.high %v1684_v18, %v1684_v18 }
 0x3fe   : > { %v6451_v23 = vrot.slane %v2340_v17, 1  ;;  %15305 = vmatprep.mubr.msk.f32.mxu0 %vm16241_vm0, %v19161_v0  ;;  %15313 = vmatprep.subr.mxu0 %v19161_v0  ;;  %v17639_v17 = vpop.permute.xlu0 %7480 }
 0x3ff   : > { %v15082_v37 = vpop.f32.mrf.mxu1  ;;  %v2556_v21 = vpop.f32.mrf.mxu0  ;;  %15306 = vmatmul.mubr.msk.f32.vlgmr.msra.gmra.mxu0 %vm777_vm3, %v1684_v18  ;;  %15310 = vmatprep.mubr.msk.f32.mxu1 %vm16241_vm0, %v19161_v0 }
 0x400   : > { %v17631_v14 = vsel %vm6452_vm9, %v6451_v23, %v6450_v11  ;;  %v1710_v11 = vrot.slane %v17217_v10, %v16883_v58  ;;  %15314 = vmatpush3.xpose.msk.msra.mxu0 %vm777_vm3, %v16850_v29  ;;  %15318 = vmatprep.subr.mxu1 %v19161_v0  ;;  %v7674_v23 = vsel %vm777_vm3, %v17581_v15, 0.0  ;;  %v6541_v37 = vrot.slane %v2556_v21, 6 }
 0x401   : > { %v15097_v19 = vpop.f32.mrf.mxu0  ;;  %15311 = vmatmul.mubr.msk.f32.vlgmr.msra.gmra.mxu1 %vm777_vm3, %v1698_v16  ;;  %7675 = vadd.xlane.f32.xlu0 %v7674_v23  ;;  %v1702_v15 = vcombine.high %v1698_v16, %v1698_v16  ;;  %v17660_v21 = vpop.permute.xlu1 %7462 }
 0x402   : > { %v2484_v55 = vpop.f32.mrf.mxu1  ;;  %15319 = vmatpush3.xpose.msk.msra.mxu1 %vm777_vm3, %v16860_v33  ;;  %15315 = vmatprep.mubr.msk.f32.mxu0 %vm16241_vm0, %v19161_v0  ;;  %v1718_v23 = vcombine.high %v1710_v11, %v1710_v11 }
 0x403   : > { %v6539_v25 = vrot.slane %v2484_v55, 7  ;;  %15323 = vmatprep.subr.mxu0 %v19161_v0  ;;  %15316 = vmatmul.mubr.msk.f32.vlgmr.msra.gmra.mxu0 %vm777_vm3, %v1700_v8  ;;  %v1726_v8 = vrot.slane %v1710_v11, %v16883_v58  ;;  %v7683_v11 = vsel %vm777_vm3, %v17541_v35, 0.0 }
 0x404   : > { %v15092_v19 = vpop.f32.mrf.mxu1  ;;  %v2700_v7 = vpop.f32.mrf.mxu0  ;;  %15324 = vmatpush3.xpose.msk.msra.mxu0 %vm777_vm3, %v16842_v27  ;;  %15320 = vmatprep.mubr.msk.f32.mxu1 %vm16241_vm0, %v19161_v0  ;;  %v1740_v51 = vrot.slane %v1718_v23, %v16883_v58 }
 0x405   : > { %v6540_v50 = vsel %vm627_vm2, %v6539_v25, %v2412_v12  ;;  %v1703_v12 = vcombine.high %v17217_v10, %v17217_v10  ;;  %v17668_v25 = vpop.permute.xlu0 %7452  ;;  %15328 = vmatprep.subr.mxu1 %v19161_v0  ;;  %15321 = vmatmul.mubr.msk.f32.vlgmr.msra.gmra.mxu1 %vm777_vm3, %v1702_v15  ;;  %v6545_v27 = vrot.slane %v2700_v7, 4  ;;  %v1748_v23 = vcombine.high %v1726_v8, %v1726_v8 }
 0x406   : > { %v6542_v18 = vsel %vm6437_vm4, %v6541_v37, %v6540_v50  ;;  %v15107_v55 = vpop.f32.mrf.mxu0  ;;  %v7677_v50 = vsel %vm777_vm3, %v17516_v39, 0.0  ;;  %15329 = vmatpush3.xpose.msk.msra.mxu1 %vm777_vm3, %v16856_v31  ;;  %15325 = vmatprep.mubr.msk.f32.mxu0 %vm16241_vm0, %v19161_v0 }
 0x407   : > { %v2628_v19 = vpop.f32.mrf.mxu1  ;;  %7678 = vadd.xlane.f32.xlu0 %v7677_v50  ;;  %15333 = vmatprep.subr.mxu0 %v19161_v0  ;;  %v1717_v7 = vrot.slane %v1703_v12, %v16883_v58 }
 0x408   : > { %v6543_v16 = vrot.slane %v2628_v19, 5  ;;  %15326 = vmatmul.mubr.msk.f32.vlgmr.msra.gmra.mxu0 %vm777_vm3, %v1726_v8  ;;  %15330 = vmatprep.mubr.msk.f32.mxu1 %vm16241_vm0, %v19161_v0  ;;  %v17692_v19 = vpop.permute.xlu1 %7464 }
 0x409   : > { %v15102_v37 = vpop.f32.mrf.mxu1  ;;  %v2844_v55 = vpop.f32.mrf.mxu0  ;;  %15334 = vmatpush3.xpose.msk.msra.mxu0 %vm777_vm3, %v16844_v28  ;;  %15338 = vmatprep.subr.mxu1 %v19161_v0  ;;  %v1719_v8 = vcombine.high %v1717_v7, %v1717_v7 }
 0x40a   : > { %v6544_v15 = vsel %vm6440_vm5, %v6543_v16, %v6542_v18  ;;  %15331 = vmatmul.mubr.msk.f32.vlgmr.msra.gmra.mxu1 %vm777_vm3, %v1740_v51  ;;  %v17695_v16 = vpop.permute.xlu0 %7456  ;;  %15335 = vmatprep.mubr.msk.f32.mxu0 %vm16241_vm0, %v19161_v0  ;;  %v6549_v28 = vrot.slane %v2844_v55, 2 }
 0x40b   : > { %v6546_v31 = vsel %vm6443_vm6, %v6545_v27, %v6544_v15  ;;  %v15117_v39 = vpop.f32.mrf.mxu0  ;;  %7684 = vadd.xlane.f32.xlu0 %v7683_v11  ;;  %15339 = vmatpush3.xpose.msk.msra.mxu1 %vm777_vm3, %v16858_v32  ;;  %v1750_v27 = vcombine.high %v1740_v51, %v1740_v51  ;;  %v7689_v51 = vsel %vm777_vm3, %v17572_v20, 0.0  ;;  %v1733_v15 = vrot.slane %v1717_v7, %v16883_v58 }
 0x40c   : > { %v2772_v18 = vpop.f32.mrf.mxu1  ;;  %15343 = vmatprep.subr.mxu0 %v19161_v0  ;;  %15336 = vmatmul.mubr.msk.f32.vlgmr.msra.gmra.mxu0 %vm777_vm3, %v1748_v23  ;;  %v1747_v20 = vrot.slane %v1719_v8, %v16883_v58  ;;  %v19172_v23 = vld [vmem:[#allocation42_spill] sm:$0xff] }
 0x40d   : > { %v6547_v50 = vrot.slane %v2772_v18, 3  ;;  %15344 = vmatpush3.xpose.msk.msra.mxu0 %vm777_vm3, %v16852_v30  ;;  %15340 = vmatprep.mubr.msk.f32.mxu1 %vm16241_vm0, %v19161_v0 }
 0x40e   : > { %v15112_v12 = vpop.f32.mrf.mxu1  ;;  %15348 = vmatprep.subr.mxu1 %v19161_v0  ;;  %15341 = vmatmul.mubr.msk.f32.vlgmr.msra.gmra.mxu1 %vm777_vm3, %v1750_v27  ;;  %v17725_v11 = vpop.permute.xlu0 %7460  ;;  %v1751_v18 = vcombine.high %v1747_v20, %v1747_v20 }
 0x40f   : > { %v6548_v35 = vsel %vm6446_vm7, %v6547_v50, %v6546_v31  ;;  %15349 = vmatpush3.xpose.msk.msra.mxu1 %vm777_vm3, %v16862_v34  ;;  %7690 = vadd.xlane.f32.xlu0 %v7689_v51  ;;  %v17716_v31 = vpop.permute.xlu1 %7466  ;;  %v1749_v34 = vcombine.high %v1733_v15, %v1733_v15  ;;  %v19174_v50 = vld [vmem:[#allocation37_spill] sm:$0xff] }
 0x410   : > { %v2916_v32 = vpop.f32.mrf.mxu1  ;;  %v6550_v37 = vsel %vm6449_vm8, %v6549_v28, %v6548_v35  ;;  %15345 = vmatprep.mubr.msk.f32.mxu0 %vm16241_vm0, %v19161_v0  ;;  %15353 = vmatprep.subr.mxu0 %v19161_v0  ;;  %v7671_v28 = vsel %vm777_vm3, %v17491_v6, 0.0  ;;  %v19175_v35 = vld [vmem:[#allocation36_spill] sm:$0xff]  ;;  %v7680_v6 = vsel %vm777_vm3, %v17610_v24, 0.0  ;;  %v7686_v24 = vsel %vm777_vm3, %v17639_v17, 0.0 }
 0x411   : > { %v6551_v55 = vrot.slane %v2916_v32, 1  ;;  %15346 = vmatmul.mubr.msk.f32.vlgmr.msra.gmra.mxu0 %vm777_vm3, %v1733_v15  ;;  %15350 = vmatprep.mubr.msk.f32.mxu1 %vm16241_vm0, %v19161_v0  ;;  %v19176_v32 = vld [vmem:[#allocation43_spill] sm:$0xff]  ;;  %v17813_v17 = vld [vmem:[%s16579_s5 + $0x8] sm:$0xff] }
 0x412   : > { %v15122_v30 = vpop.f32.mrf.mxu1  ;;  %15354 = vmatpush3.xpose.msk.msra.mxu0 %vm777_vm3, %v16850_v29  ;;  %15358 = vmatprep.subr.mxu1 %v19161_v0  ;;  %v6728_v29 = vpop.permute.xlu0 %6727 }
 0x413   : > { %v17722_v39 = vsel %vm6452_vm9, %v6551_v55, %v6550_v37  ;;  %15351 = vmatmul.mubr.msk.f32.vlgmr.msra.gmra.mxu1 %vm777_vm3, %v1747_v20  ;;  %15355 = vmatprep.mubr.msk.f32.mxu0 %vm16241_vm0, %v19161_v0  ;;  %v6926_v7 = vpop.permute.xlu1 %6925  ;;  %v19177_v37 = vld [vmem:[#allocation44_spill] sm:$0xff]  ;;  %v7226_v20 = vmul.f32 0.35355338, %v17229_v38 }
 0x414   : > { %15359 = vmatpush3.xpose.msk.msra.mxu1 %vm777_vm3, %v16860_v33  ;;  %15363 = vmatprep.subr.mxu0 %v19161_v0  ;;  %v19173_v33 = vld [vmem:[#allocation38_spill] sm:$0xff]  ;;  %v7222_v51 = vmul.f32 0.35355338, %v19177_v37 }
 0x415   : > { %15356 = vmatmul.mubr.msk.f32.vlgmr.msra.gmra.mxu0 %vm777_vm3, %v1749_v34  ;;  %15360 = vmatprep.mubr.msk.f32.mxu1 %vm16241_vm0, %v19161_v0 }
 0x416   : > { %15364 = vmatpush3.xpose.msk.msra.mxu0 %vm777_vm3, %v19172_v23  ;;  %15368 = vmatprep.subr.mxu1 %v19161_v0  ;;  %v7341_v15 = vmul.f32 %v16944_v54, %v7222_v51  ;;  %v7343_v30 = vmul.f32 %v16948_v60, %v7222_v51  ;;  %v7373_v54 = vmul.f32 %v17195_v42, %v7226_v20 }
 0x417   : > { %15361 = vmatmul.mubr.msk.f32.vlgmr.msra.gmra.mxu1 %vm777_vm3, %v1751_v18  ;;  %15365 = vmatprep.mubr.msk.f32.mxu0 %vm16241_vm0, %v19161_v0  ;;  %v7124_v27 = vpop.permute.xlu1 %7123  ;;  %v7374_v60 = vmul.f32 %v17197_v63, %v7226_v20 }
 0x418   : > { %15369 = vmatpush3.xpose.msk.msra.mxu1 %vm777_vm3, %v19173_v33  ;;  %15370 = vmatprep.mubr.msk.f32.mxu1 %vm16241_vm0, %v19161_v0 }
 0x419   : > { %15366 = vmatmul.mubr.msk.f32.vlgmr.msra.gmra.mxu0 %vm777_vm3, %v19174_v50  ;;  %15378 = vmatprep.subr.mxu1 %v19161_v0 }
 0x41a   : > { %7672 = vadd.xlane.f32.xlu1 %v7671_v28  ;;  %15373 = vmatprep.subr.mxu0 %v19161_v0  ;;  %v7644_v28 = vsel %vm777_vm3, %v17668_v25, 0.0  ;;  %v7653_v25 = vsel %vm777_vm3, %v17633_v26, 0.0 }
 0x41b   : > { %15371 = vmatmul.mubr.msk.f32.vlgmr.msra.gmra.mxu1 %vm777_vm3, %v19175_v35  ;;  %15375 = vmatprep.mubr.msk.f32.mxu0 %vm16241_vm0, %v19161_v0 }
 0x41c   : > { %v6629_v12 = vpop.permute.xlu0 %6628  ;;  %15379 = vmatpush3.xpose.msk.msra.mxu1 %vm777_vm3, %v6728_v29  ;;  %15380 = vmatprep.mubr.msk.f32.mxu1 %vm16241_vm0, %v19161_v0 }
 0x41d   : > { %15374 = vmatpush3.xpose.msk.msra.mxu0 %vm777_vm3, %v6629_v12  ;;  %15388 = vmatprep.subr.mxu1 %v19161_v0  ;;  %v7378_v12 = vmul.f32 %v17247_v41, %v7226_v20 }
 0x41e   : > { %7681 = vadd.xlane.f32.xlu1 %v7680_v6  ;;  %15383 = vmatprep.subr.mxu0 %v19161_v0 }
 0x41f   : > { %15381 = vmatmul.mubr.msk.f32.vlgmr.msra.gmra.mxu1 %vm777_vm3, %v17227_v43  ;;  %v7340_v43 = vmul.f32 %v16940_v2, %v7222_v51  ;;  %v7342_v2 = vmul.f32 %v16942_v53, %v7222_v51  ;;  %v7344_v53 = vmul.f32 %v16946_v56, %v7222_v51 }
 0x420   : > { %15376 = vmatmul.mubr.msk.f32.vlgmr.msra.gmra.mxu0 %vm777_vm3, %v19176_v32  ;;  %15389 = vmatpush3.xpose.msk.msra.mxu1 %vm777_vm3, %v6926_v7  ;;  %v7501_v7 = vpop.permute.xlu0 %7500 }
 0x421   : > { %v6827_v8 = vpop.permute.xlu1 %6826  ;;  %15390 = vmatprep.mubr.msk.f32.mxu1 %vm16241_vm0, %v19161_v0  ;;  %15398 = vmatprep.subr.mxu1 %v19161_v0 }
 0x422   : > { %15384 = vmatpush3.xpose.msk.msra.mxu0 %vm777_vm3, %v6827_v8  ;;  %7687 = vadd.xlane.f32.xlu1 %v7686_v24 }
 0x423   : > { %15385 = vmatprep.mubr.msk.f32.mxu0 %vm16241_vm0, %v19161_v0  ;;  %15391 = vmatmul.mubr.msk.f32.vlgmr.msra.gmra.mxu1 %vm777_vm3, %v17231_v62  ;;  %v15951_v62 = vld [vmem:[%s16579_s5] sm:$0xff] }
 0x424   : > { %15393 = vmatprep.subr.mxu0 %v19161_v0  ;;  %15399 = vmatpush3.xpose.msk.msra.mxu1 %vm777_vm3, %v7124_v27 }
 0x425   : > { %v7025_v55 = vpop.permute.xlu1 %7024  ;;  %15400 = vmatprep.mubr.msk.f32.mxu1 %vm16241_vm0, %v19161_v0  ;;  %7484 = vrot.lane.b32.xlu0 %v7340_v43, %s16247_s24 }
 0x426   : > { %15386 = vmatmul.mubr.msk.f32.vlgmr.msra.gmra.mxu0 %vm777_vm3, %v17379_v13  ;;  %15408 = vmatprep.subr.mxu1 %v19161_v0 }
 0x427   : > { %15394 = vmatpush3.xpose.msk.msra.mxu0 %vm777_vm3, %v7025_v55  ;;  %15395 = vmatprep.mubr.msk.f32.mxu0 %vm16241_vm0, %v19161_v0 }
 0x428   : > { %15401 = vmatmul.mubr.msk.f32.vlgmr.msra.gmra.mxu1 %vm777_vm3, %v17217_v10  ;;  %15403 = vmatprep.subr.mxu0 %v19161_v0  ;;  %v19178_v10 = vld [vmem:[#allocation45_spill] sm:$0xff] }
 0x429   : > { %15410 = vmatprep.mubr.msk.f32.mxu1 %vm16241_vm0, %v19161_v0  ;;  %7488 = vrot.lane.b32.xlu0 %v7342_v2, %s16247_s24  ;;  %v7224_v13 = vmul.f32 0.35355338, %v19178_v10  ;;  %v17847_v29 = vpop.permute.xlu1 %7502 }
 0x42a   : > { %15396 = vmatmul.mubr.msk.f32.vlgmr.msra.gmra.mxu0 %vm777_vm3, %v17522_v57  ;;  %15409 = vmatpush3.msra.mxu1 %v17813_v17 }
 0x42b   : > { %15404 = vmatpush3.msra.mxu0 %v15951_v62  ;;  %15405 = vmatprep.mubr.msk.f32.mxu0 %vm16241_vm0, %v19161_v0  ;;  %v7357_v57 = vmul.f32 %v17147_v45, %v7224_v13  ;;  %v7358_v56 = vmul.f32 %v17158_v47, %v7224_v13  ;;  %v7360_v34 = vmul.f32 %v17178_v36, %v7224_v13 }
 0x42c   : > { %15413 = vmatprep.subr.mxu0 %v19161_v0  ;;  %15418 = vmatprep.subr.mxu1 %v19161_v0  ;;  %v7345_v45 = vmul.f32 %v16954_v1, %v7222_v51  ;;  %v7346_v47 = vmul.f32 %v16950_v3, %v7222_v51  ;;  %v7347_v36 = vmul.f32 %v16952_v61, %v7222_v51 }
 0x42d   : > { %7492 = vrot.lane.b32.xlu0 %v7344_v53, %s16247_s24  ;;  %v7376_v1 = vmul.f32 %v17207_v59, %v7226_v20  ;;  %v7356_v42 = vmul.f32 %v17185_v9, %v7224_v13  ;;  %v7359_v3 = vmul.f32 %v17169_v44, %v7224_v13  ;;  %v7361_v63 = vmul.f32 %v17193_v49, %v7224_v13  ;;  %v17851_v59 = vpop.permute.xlu0 %7504 }
 0x42e   : > { %v7362_v61 = vmul.f32 %v17187_v52, %v7224_v13  ;;  %v17854_v9 = vpop.permute.xlu1 %7506  ;;  %v7363_v18 = vmul.f32 %v17199_v46, %v7224_v13  ;;  %v7372_v49 = vmul.f32 %v17201_v4, %v7226_v20  ;;  %v7375_v52 = vmul.f32 %v17203_v5, %v7226_v20 }
 0x42f   : > { %v7377_v46 = vmul.f32 %v17205_v48, %v7226_v20  ;;  %v7650_v5 = vsel %vm777_vm3, %v17695_v16, 0.0  ;;  %v7379_v48 = vmul.f32 %v17333_v40, %v7226_v20  ;;  %v7659_v40 = vsel %vm777_vm3, %v17660_v21, 0.0 }
 0x430   : > { %v7665_v20 = vsel %vm777_vm3, %v17716_v31, 0.0 }
 0x431   : > { %7518 = vrot.lane.b32.xlu0 %v7357_v57, %s16247_s24  ;;  %v17858_v44 = vpop.permute.xlu0 %7508 }
 0x433   : > { %7486 = vrot.lane.b32.xlu1 %v7341_v15, %s16247_s24  ;;  %v17861_v23 = vpop.permute.xlu1 %7510 }
 0x435   : > { %7520 = vrot.lane.b32.xlu0 %v7358_v56, %s16247_s24  ;;  %v17865_v33 = vpop.permute.xlu0 %7512 }
 0x437   : > { %7490 = vrot.lane.b32.xlu1 %v7343_v30, %s16247_s24 }
 0x438   : > { %v17868_v50 = vpop.permute.xlu1 %7514 }
 0x439   : > { %7524 = vrot.lane.b32.xlu0 %v7360_v34, %s16247_s24  ;;  %v17874_v4 = vpop.permute.xlu0 %7534 }
 0x43b   : > { %7494 = vrot.lane.b32.xlu1 %v7345_v45, %s16247_s24 }
 0x43d   : > { %7550 = vrot.lane.b32.xlu0 %v7373_v54, %s16247_s24  ;;  %v17877_v27 = vpop.permute.xlu1 %7532  ;;  %v17883_v6 = vpop.permute.xlu0 %7536 }
 0x43f   : > { %7496 = vrot.lane.b32.xlu1 %v7346_v47, %s16247_s24 }
 0x441   : > { %7552 = vrot.lane.b32.xlu0 %v7374_v60, %s16247_s24  ;;  %v17893_v13 = vpop.permute.xlu0 %7540 }
 0x442   : > { %v17888_v32 = vpop.permute.xlu1 %7538 }
 0x443   : > { %7498 = vrot.lane.b32.xlu1 %v7347_v36, %s16247_s24 }
 0x445   : > { %7556 = vrot.lane.b32.xlu0 %v7376_v1, %s16247_s24  ;;  %v17902_v60 = vpop.permute.xlu0 %7566  ;;  %v7716_v1 = vsel %vm777_vm3, %v7501_v7, 0.0 }
 0x447   : > { %7516 = vrot.lane.b32.xlu1 %v7356_v42, %s16247_s24  ;;  %v17897_v30 = vpop.permute.xlu1 %7542 }
 0x44b   : > { %7522 = vrot.lane.b32.xlu1 %v7359_v3, %s16247_s24 }
 0x44c   : > { %v17906_v31 = vpop.permute.xlu1 %7544 }
 0x44f   : > { %7526 = vrot.lane.b32.xlu1 %v7361_v63, %s16247_s24 }
 0x453   : > { %7528 = vrot.lane.b32.xlu1 %v7362_v61, %s16247_s24 }
 0x457   : > { %7530 = vrot.lane.b32.xlu1 %v7363_v18, %s16247_s24 }
 0x45b   : > { %7548 = vrot.lane.b32.xlu1 %v7372_v49, %s16247_s24 }
 0x45f   : > { %7554 = vrot.lane.b32.xlu1 %v7375_v52, %s16247_s24 }
 0x463   : > { %7558 = vrot.lane.b32.xlu1 %v7377_v46, %s16247_s24  ;;  %v7722_v46 = vsel %vm777_vm3, %v17851_v59, 0.0 }
 0x464   : > { %7645 = vadd.xlane.f32.xlu0 %v7644_v28 }
 0x467   : > { %7560 = vrot.lane.b32.xlu1 %v7378_v12, %s16247_s24  ;;  %v17911_v12 = vpop.permute.xlu0 %7568 }
 0x468   : > { %7651 = vadd.xlane.f32.xlu0 %v7650_v5 }
 0x46a   : > { %v2990_v35 = vpop.f32.mrf.mxu0 }
 0x46b   : > { %7562 = vrot.lane.b32.xlu1 %v7379_v48, %s16247_s24 }
 0x46c   : > { %v15127_v8 = vpop.f32.mrf.mxu0  ;;  %v3064_v41 = vpop.f32.mrf.mxu1  ;;  %7654 = vadd.xlane.f32.xlu0 %v7653_v25  ;;  %v7725_v25 = vsel %vm777_vm3, %v17854_v9, 0.0 }
 0x46d   : > { %v6638_v51 = vrot.slane %v3064_v41, 7  ;;  %v17918_v41 = vpop.permute.xlu1 %7546 }
 0x46e   : > { %v15132_v16 = vpop.f32.mrf.mxu1  ;;  %v3138_v24 = vpop.f32.mrf.mxu0 }
 0x46f   : > { %v6639_v43 = vsel %vm627_vm2, %v6638_v51, %v2990_v35  ;;  %v6640_v55 = vrot.slane %v3138_v24, 6  ;;  %v17921_v24 = vpop.permute.xlu0 %7572 }
 0x470   : > { %v15137_v2 = vpop.f32.mrf.mxu0  ;;  %v3212_v62 = vpop.f32.mrf.mxu1  ;;  %7660 = vadd.xlane.f32.xlu0 %v7659_v40 }
 0x471   : > { %v6641_v26 = vsel %vm6437_vm4, %v6640_v55, %v6639_v43  ;;  %v6642_v53 = vrot.slane %v3212_v62, 5  ;;  %v7731_v55 = vsel %vm777_vm3, %v17861_v23, 0.0 }
 0x472   : > { %v15142_v57 = vpop.f32.mrf.mxu1 }
 0x473   : > { %v6643_v15 = vsel %vm6440_vm5, %v6642_v53, %v6641_v26  ;;  %v3286_v56 = vpop.f32.mrf.mxu0  ;;  %v17926_v53 = vpop.permute.xlu1 %7564 }
 0x474   : > { %v6644_v34 = vrot.slane %v3286_v56, 4  ;;  %7666 = vadd.xlane.f32.xlu0 %v7665_v20 }
 0x475   : > { %v15147_v21 = vpop.f32.mrf.mxu0  ;;  %v3360_v45 = vpop.f32.mrf.mxu1 }
 0x476   : > { %v6645_v54 = vsel %vm6443_vm6, %v6644_v34, %v6643_v15  ;;  %v6646_v47 = vrot.slane %v3360_v45, 3  ;;  %v7737_v15 = vsel %vm777_vm3, %v17868_v50, 0.0 }
 0x477   : > { %v15152_v36 = vpop.f32.mrf.mxu1 }
 0x478   : > { %v6647_v42 = vsel %vm6446_vm7, %v6646_v47, %v6645_v54  ;;  %v3434_v3 = vpop.f32.mrf.mxu0  ;;  %7717 = vadd.xlane.f32.xlu0 %v7716_v1  ;;  %v7767_v47 = vsel %vm777_vm3, %v17874_v4, 0.0 }
 0x479   : > { %v6648_v63 = vrot.slane %v3434_v3, 2  ;;  %v7571_v3 = vpop.permute.xlu1 %7570 }
 0x47a   : > { %v15157_v61 = vpop.f32.mrf.mxu0  ;;  %v3508_v18 = vpop.f32.mrf.mxu1 }
 0x47b   : > { %v6650_v49 = vrot.slane %v3508_v18, 1  ;;  %v6649_v52 = vsel %vm6449_vm8, %v6648_v63, %v6647_v42  ;;  %v7647_v61 = vsel %vm777_vm3, %v17605_v22, 0.0  ;;  %v7776_v22 = vsel %vm777_vm3, %v17893_v13, 0.0 }
 0x47c   : > { %v15162_v28 = vpop.f32.mrf.mxu1  ;;  %7723 = vadd.xlane.f32.xlu0 %v7722_v46 }
 0x47d   : > { %v3580_v7 = vpop.f32.mrf.mxu0  ;;  %v17914_v5 = vsel %vm6452_vm9, %v6650_v49, %v6649_v52  ;;  %v7773_v52 = vsel %vm777_vm3, %v17888_v32, 0.0 }
 0x47f   : > { %v15167_v48 = vpop.f32.mrf.mxu0  ;;  %v3652_v35 = vpop.f32.mrf.mxu1 }
 0x480   : > { %v6737_v8 = vrot.slane %v3652_v35, 7  ;;  %7726 = vadd.xlane.f32.xlu0 %v7725_v25  ;;  %v7656_v35 = vsel %vm777_vm3, %v17725_v11, 0.0  ;;  %v17949_v25 = vpop.permute.xlu1 %7574  ;;  %v7782_v11 = vsel %vm777_vm3, %v17906_v31, 0.0 }
 0x481   : > { %v15172_v51 = vpop.f32.mrf.mxu1 }
 0x482   : > { %v6738_v59 = vsel %vm627_vm2, %v6737_v8, %v3580_v7  ;;  %v3724_v16 = vpop.f32.mrf.mxu0 }
 0x483   : > { %v6739_v43 = vrot.slane %v3724_v16, 6  ;;  %v7662_v16 = vsel %vm777_vm3, %v17692_v19, 0.0  ;;  %v7719_v19 = vsel %vm777_vm3, %v17847_v29, 0.0 }
 0x484   : > { %v15177_v40 = vpop.f32.mrf.mxu0  ;;  %v3796_v2 = vpop.f32.mrf.mxu1  ;;  %7732 = vadd.xlane.f32.xlu0 %v7731_v55 }
 0x485   : > { %v6740_v62 = vsel %vm6437_vm4, %v6739_v43, %v6738_v59  ;;  %v6741_v9 = vrot.slane %v3796_v2, 5 }
 0x486   : > { %v15182_v26 = vpop.f32.mrf.mxu1  ;;  %v17931_v56 = vpop.xlane.xlu0 %7669 }
 0x487   : > { %v6742_v57 = vsel %vm6440_vm5, %v6741_v9, %v6740_v62  ;;  %v3868_v20 = vpop.f32.mrf.mxu0  ;;  %v7577_v62 = vpop.permute.xlu1 %7576 }
 0x488   : > { %7738 = vadd.xlane.f32.xlu0 %v7737_v15  ;;  %v6743_v34 = vrot.slane %v3868_v20, 4  ;;  %v7815_v20 = vsel %vm777_vm3, %v17902_v60, 0.0 }
 0x489   : > { %v15187_v23 = vpop.f32.mrf.mxu0  ;;  %v3940_v21 = vpop.f32.mrf.mxu1 }
 0x48a   : > { %v6744_v45 = vsel %vm6443_vm6, %v6743_v34, %v6742_v57  ;;  %v6745_v54 = vrot.slane %v3940_v21, 3  ;;  %v17937_v50 = vpop.xlane.xlu0 %7675 }
 0x48b   : > { %v15192_v36 = vpop.f32.mrf.mxu1  ;;  %v17971_v29 = vpop.permute.xlu1 %7578 }
 0x48c   : > { %7768 = vadd.xlane.f32.xlu0 %v7767_v47  ;;  %v6746_v1 = vsel %vm6446_vm7, %v6745_v54, %v6744_v45  ;;  %v4012_v42 = vpop.f32.mrf.mxu0  ;;  %v7728_v36 = vsel %vm777_vm3, %v17858_v44, 0.0  ;;  %v7824_v44 = vsel %vm777_vm3, %v17921_v24, 0.0 }
 0x48d   : > { %v6747_v63 = vrot.slane %v4012_v42, 2  ;;  %v7821_v42 = vsel %vm777_vm3, %v7571_v3, 0.0 }
 0x48e   : > { %v15197_v18 = vpop.f32.mrf.mxu0  ;;  %v4084_v49 = vpop.f32.mrf.mxu1 }
 0x48f   : > { %7648 = vadd.xlane.f32.xlu1 %v7647_v61  ;;  %v6749_v46 = vrot.slane %v4084_v49, 1  ;;  %v6748_v4 = vsel %vm6449_vm8, %v6747_v63, %v6746_v1 }
 0x490   : > { %7774 = vadd.xlane.f32.xlu0 %v7773_v52  ;;  %v15202_v28 = vpop.f32.mrf.mxu1  ;;  %v17953_v8 = vpop.xlane.xlu0 %7678  ;;  %v7734_v52 = vsel %vm777_vm3, %v17865_v33, 0.0  ;;  %v7764_v33 = vsel %vm777_vm3, %v17877_v27, 0.0 }
 0x491   : > { %v4158_v7 = vpop.f32.mrf.mxu0  ;;  %v17945_v48 = vsel %vm6452_vm9, %v6749_v46, %v6748_v4 }
 0x493   : > { %7657 = vadd.xlane.f32.xlu1 %v7656_v35  ;;  %v15207_v32 = vpop.f32.mrf.mxu0  ;;  %v4232_v51 = vpop.f32.mrf.mxu1 }
 0x494   : > { %7777 = vadd.xlane.f32.xlu0 %v7776_v22  ;;  %v6836_v59 = vrot.slane %v4232_v51, 7  ;;  %v17961_v57 = vpop.xlane.xlu0 %7684 }
 0x495   : > { %v15212_v43 = vpop.f32.mrf.mxu1 }
 0x496   : > { %v4306_v55 = vpop.f32.mrf.mxu0  ;;  %v6837_v40 = vsel %vm627_vm2, %v6836_v59, %v4158_v7 }
 0x497   : > { %7663 = vadd.xlane.f32.xlu1 %v7662_v16  ;;  %v6838_v2 = vrot.slane %v4306_v55, 6  ;;  %v7830_v16 = vsel %vm777_vm3, %v7577_v62, 0.0 }
 0x498   : > { %7783 = vadd.xlane.f32.xlu0 %v7782_v11  ;;  %v15217_v13 = vpop.f32.mrf.mxu0  ;;  %v4380_v26 = vpop.f32.mrf.mxu1 }
 0x499   : > { %v6839_v9 = vsel %vm6437_vm4, %v6838_v2, %v6837_v40  ;;  %v6840_v15 = vrot.slane %v4380_v26, 5  ;;  %v17974_v63 = vpop.xlane.xlu0 %7690 }
 0x49a   : > { %v15222_v31 = vpop.f32.mrf.mxu1 }
 0x49b   : > { %7720 = vadd.xlane.f32.xlu1 %v7719_v19  ;;  %v4454_v34 = vpop.f32.mrf.mxu0  ;;  %v6841_v23 = vsel %vm6440_vm5, %v6840_v15, %v6839_v9  ;;  %v7770_v9 = vsel %vm777_vm3, %v17883_v6, 0.0 }
 0x49c   : > { %7816 = vadd.xlane.f32.xlu0 %v7815_v20  ;;  %v6842_v21 = vrot.slane %v4454_v34, 4 }
 0x49d   : > { %v15227_v45 = vpop.f32.mrf.mxu0  ;;  %v4528_v54 = vpop.f32.mrf.mxu1 }
 0x49e   : > { %v6843_v47 = vsel %vm6443_vm6, %v6842_v21, %v6841_v23  ;;  %v6844_v1 = vrot.slane %v4528_v54, 3  ;;  %v7485_v51 = vpop.permute.xlu0 %7484  ;;  %v7779_v45 = vsel %vm777_vm3, %v17897_v30, 0.0 }
 0x49f   : > { %7729 = vadd.xlane.f32.xlu1 %v7728_v36  ;;  %v15232_v60 = vpop.f32.mrf.mxu1  ;;  %v7692_v26 = vsel %vm777_vm3, %v7485_v51, 0.0  ;;  %v7812_v51 = vsel %vm777_vm3, %v17926_v53, 0.0 }
 0x4a0   : > { %7822 = vadd.xlane.f32.xlu0 %v7821_v42  ;;  %v6845_v61 = vsel %vm6446_vm7, %v6844_v1, %v6843_v47  ;;  %v4602_v18 = vpop.f32.mrf.mxu0 }
 0x4a1   : > { %v6846_v49 = vrot.slane %v4602_v18, 2 }
 0x4a2   : > { %v15237_v46 = vpop.f32.mrf.mxu0  ;;  %v4676_v4 = vpop.f32.mrf.mxu1 }
 0x4a3   : > { %v17981_v28 = vpop.xlane.xlu1 %7672  ;;  %7735 = vadd.xlane.f32.xlu1 %v7734_v52  ;;  %v6848_v3 = vrot.slane %v4676_v4, 1  ;;  %v6847_v7 = vsel %vm6449_vm8, %v6846_v49, %v6845_v61  ;;  %v7489_v19 = vpop.permute.xlu0 %7488  ;;  %v7785_v49 = vsel %vm777_vm3, %v17918_v41, 0.0 }
 0x4a4   : > { %7825 = vadd.xlane.f32.xlu0 %v7824_v44  ;;  %v15242_v35 = vpop.f32.mrf.mxu1  ;;  %v4748_v22 = vpop.f32.mrf.mxu0  ;;  %v7698_v54 = vsel %vm777_vm3, %v7489_v19, 0.0 }
 0x4a5   : > { %v17985_v32 = vsel %vm6452_vm9, %v6848_v3, %v6847_v7 }
 0x4a6   : > { %v4820_v59 = vpop.f32.mrf.mxu1  ;;  %v15247_v43 = vpop.f32.mrf.mxu0 }
 0x4a7   : > { %v17990_v24 = vpop.xlane.xlu1 %7681  ;;  %7765 = vadd.xlane.f32.xlu1 %v7764_v33  ;;  %v6935_v55 = vrot.slane %v4820_v59, 7 }
 0x4a8   : > { %7831 = vadd.xlane.f32.xlu0 %v7830_v16  ;;  %v15252_v11 = vpop.f32.mrf.mxu1 }
 0x4a9   : > { %v6936_v40 = vsel %vm627_vm2, %v6935_v55, %v4748_v22  ;;  %v4892_v2 = vpop.f32.mrf.mxu0  ;;  %v7493_v11 = vpop.permute.xlu0 %7492 }
 0x4aa   : > { %v6937_v13 = vrot.slane %v4892_v2, 6 }
 0x4ab   : > { %v17996_v27 = vpop.xlane.xlu1 %7687  ;;  %7771 = vadd.xlane.f32.xlu1 %v7770_v9  ;;  %v15257_v62 = vpop.f32.mrf.mxu0 }
 0x4ac   : > { %7693 = vadd.xlane.f32.xlu0 %v7692_v26  ;;  %v6938_v15 = vsel %vm6437_vm4, %v6937_v13, %v6936_v40  ;;  %v4964_v20 = vpop.f32.mrf.mxu1  ;;  %v7818_v13 = vsel %vm777_vm3, %v17911_v12, 0.0 }
 0x4ad   : > { %v6939_v31 = vrot.slane %v4964_v20, 5  ;;  %v5036_v34 = vpop.f32.mrf.mxu0 }
 0x4ae   : > { %v15262_v23 = vpop.f32.mrf.mxu1  ;;  %v6941_v21 = vrot.slane %v5036_v34, 4  ;;  %v7827_v34 = vsel %vm777_vm3, %v17949_v25, 0.0 }
 0x4af   : > { %v6940_v6 = vsel %vm6440_vm5, %v6939_v31, %v6938_v15  ;;  %v18003_v47 = vpop.permute.xlu1 %7486  ;;  %7780 = vadd.xlane.f32.xlu1 %v7779_v45  ;;  %v15267_v36 = vpop.f32.mrf.mxu0 }
 0x4b0   : > { %7699 = vadd.xlane.f32.xlu0 %v7698_v54  ;;  %v6942_v1 = vsel %vm6443_vm6, %v6941_v21, %v6940_v6  ;;  %v5108_v42 = vpop.f32.mrf.mxu1  ;;  %v7519_v45 = vpop.permute.xlu0 %7518 }
 0x4b1   : > { %v6943_v60 = vrot.slane %v5108_v42, 3 }
 0x4b2   : > { %v15272_v61 = vpop.f32.mrf.mxu1  ;;  %v5180_v18 = vpop.f32.mrf.mxu0 }
 0x4b3   : > { %v6944_v30 = vsel %vm6446_vm7, %v6943_v60, %v6942_v1  ;;  %v6945_v52 = vrot.slane %v5180_v18, 2  ;;  %v7491_v46 = vpop.permute.xlu1 %7490  ;;  %7786 = vadd.xlane.f32.xlu1 %v7785_v49  ;;  %v7833_v18 = vsel %vm777_vm3, %v17971_v29, 0.0 }
 0x4b4   : > { %v15277_v4 = vpop.f32.mrf.mxu0  ;;  %v7701_v44 = vsel %vm777_vm3, %v7491_v46, 0.0  ;;  %v5252_v3 = vpop.f32.mrf.mxu1 }
 0x4b5   : > { %7702 = vadd.xlane.f32.xlu0 %v7701_v44  ;;  %v6946_v7 = vsel %vm6449_vm8, %v6945_v52, %v6944_v30  ;;  %v6947_v35 = vrot.slane %v5252_v3, 1 }
 0x4b6   : > { %v5326_v22 = vpop.f32.mrf.mxu0  ;;  %v15282_v33 = vpop.f32.mrf.mxu1 }
 0x4b7   : > { %v7495_v59 = vpop.permute.xlu1 %7494  ;;  %7813 = vadd.xlane.f32.xlu1 %v7812_v51  ;;  %v18015_v43 = vsel %vm6452_vm9, %v6947_v35, %v6946_v7  ;;  %v7521_v7 = vpop.permute.xlu0 %7520 }
 0x4b8   : > { %v15287_v41 = vpop.f32.mrf.mxu0  ;;  %v7707_v16 = vsel %vm777_vm3, %v7495_v59, 0.0  ;;  %v5400_v55 = vpop.f32.mrf.mxu1 }
 0x4b9   : > { %7708 = vadd.xlane.f32.xlu0 %v7707_v16  ;;  %v7034_v40 = vrot.slane %v5400_v55, 7  ;;  %v7746_v16 = vsel %vm777_vm3, %v7521_v7, 0.0 }
 0x4ba   : > { %v5474_v2 = vpop.f32.mrf.mxu0  ;;  %v15292_v9 = vpop.f32.mrf.mxu1 }
 0x4bb   : > { %v7036_v26 = vrot.slane %v5474_v2, 6  ;;  %v7497_v53 = vpop.permute.xlu1 %7496  ;;  %7819 = vadd.xlane.f32.xlu1 %v7818_v13  ;;  %v7035_v62 = vsel %vm627_vm2, %v7034_v40, %v5326_v22  ;;  %v7695_v22 = vsel %vm777_vm3, %v18003_v47, 0.0  ;;  %v7704_v2 = vsel %vm777_vm3, %v7493_v11, 0.0  ;;  %v7525_v11 = vpop.permute.xlu0 %7524 }
 0x4bc   : > { %v15297_v19 = vpop.f32.mrf.mxu0  ;;  %v5548_v20 = vpop.f32.mrf.mxu1 }
 0x4bd   : > { %v7037_v15 = vsel %vm6437_vm4, %v7036_v26, %v7035_v62  ;;  %v7038_v31 = vrot.slane %v5548_v20, 5 }
 0x4be   : > { %v15302_v23 = vpop.f32.mrf.mxu1 }
 0x4bf   : > { %v5622_v21 = vpop.f32.mrf.mxu0  ;;  %7828 = vadd.xlane.f32.xlu1 %v7827_v34  ;;  %v7039_v12 = vsel %vm6440_vm5, %v7038_v31, %v7037_v15  ;;  %v7499_v54 = vpop.permute.xlu1 %7498  ;;  %v7710_v34 = vsel %vm777_vm3, %v7497_v53, 0.0 }
 0x4c0   : > { %v7040_v6 = vrot.slane %v5622_v21, 4  ;;  %v7713_v42 = vsel %vm777_vm3, %v7499_v54, 0.0 }
 0x4c1   : > { %v15307_v36 = vpop.f32.mrf.mxu0  ;;  %v5696_v1 = vpop.f32.mrf.mxu1  ;;  %7714 = vadd.xlane.f32.xlu0 %v7713_v42 }
 0x4c2   : > { %v7041_v60 = vsel %vm6443_vm6, %v7040_v6, %v7039_v12  ;;  %v7042_v61 = vrot.slane %v5696_v1, 3 }
 0x4c3   : > { %v15312_v25 = vpop.f32.mrf.mxu1  ;;  %v5770_v49 = vpop.f32.mrf.mxu0  ;;  %7834 = vadd.xlane.f32.xlu1 %v7833_v18 }
 0x4c4   : > { %v7043_v30 = vsel %vm6446_vm7, %v7042_v61, %v7041_v60  ;;  %v7044_v52 = vrot.slane %v5770_v49, 2  ;;  %v7517_v46 = vpop.permute.xlu1 %7516  ;;  %v7743_v60 = vsel %vm777_vm3, %v7519_v45, 0.0 }
 0x4c5   : > { %v15317_v4 = vpop.f32.mrf.mxu0  ;;  %v5844_v44 = vpop.f32.mrf.mxu1  ;;  %v7740_v3 = vsel %vm777_vm3, %v7517_v46, 0.0 }
 0x4c6   : > { %v7046_v35 = vrot.slane %v5844_v44, 1  ;;  %7741 = vadd.xlane.f32.xlu0 %v7740_v3  ;;  %v7045_v51 = vsel %vm6449_vm8, %v7044_v52, %v7043_v30  ;;  %v19179_v52 = vld [vmem:[#allocation31_spill] sm:$0xff]  ;;  %v7551_v4 = vpop.permute.xlu0 %7550 }
 0x4c7   : > { %v15322_v29 = vpop.f32.mrf.mxu1  ;;  %7696 = vadd.xlane.f32.xlu1 %v7695_v22  ;;  %v7941_v46 = vrot.slane %v17981_v28, %v19179_v52 }
 0x4c8   : > { %v5916_v33 = vpop.f32.mrf.mxu0  ;;  %v7523_v59 = vpop.permute.xlu1 %7522  ;;  %v18034_v41 = vsel %vm6452_vm9, %v7046_v35, %v7045_v51  ;;  %v7752_v35 = vsel %vm777_vm3, %v7525_v11, 0.0  ;;  %v7937_v29 = vrot.slane %v17931_v56, %v19179_v52 }
 0x4c9   : > { %v7749_v15 = vsel %vm777_vm3, %v7523_v59, 0.0 }
 0x4ca   : > { %v15327_v55 = vpop.f32.mrf.mxu0  ;;  %v5988_v40 = vpop.f32.mrf.mxu1  ;;  %7747 = vadd.xlane.f32.xlu0 %v7746_v16 }
 0x4cb   : > { %v7133_v13 = vrot.slane %v5988_v40, 7  ;;  %7705 = vadd.xlane.f32.xlu1 %v7704_v2  ;;  %v8165_v55 = vsel %vm627_vm2, %v7941_v46, %v7937_v29 }
 0x4cc   : > { %v15332_v9 = vpop.f32.mrf.mxu1  ;;  %v6060_v47 = vpop.f32.mrf.mxu0 }
 0x4cd   : > { %v7134_v26 = vsel %vm627_vm2, %v7133_v13, %v5916_v33  ;;  %v7135_v62 = vrot.slane %v6060_v47, 6  ;;  %v7527_v19 = vpop.permute.xlu1 %7526  ;;  %v7945_v47 = vrot.slane %v17937_v50, %v19179_v52  ;;  %v7953_v50 = vrot.slane %v17990_v24, %v19179_v52 }
 0x4ce   : > { %v15337_v20 = vpop.f32.mrf.mxu0  ;;  %v6132_v31 = vpop.f32.mrf.mxu1  ;;  %7750 = vadd.xlane.f32.xlu0 %v7749_v15  ;;  %v7755_v6 = vsel %vm777_vm3, %v7527_v19, 0.0 }
 0x4cf   : > { %v7136_v23 = vsel %vm6437_vm4, %v7135_v62, %v7134_v26  ;;  %v7137_v21 = vrot.slane %v6132_v31, 5  ;;  %7711 = vadd.xlane.f32.xlu1 %v7710_v34  ;;  %v7553_v19 = vpop.permute.xlu0 %7552  ;;  %v8166_v15 = vsel %vm6437_vm4, %v7945_v47, %v8165_v55  ;;  %v7791_v34 = vsel %vm777_vm3, %v7551_v4, 0.0 }
 0x4d0   : > { %v15342_v12 = vpop.f32.mrf.mxu1  ;;  %v7794_v11 = vsel %vm777_vm3, %v7553_v19, 0.0 }
 0x4d1   : > { %v7138_v54 = vsel %vm6440_vm5, %v7137_v21, %v7136_v23  ;;  %v6204_v36 = vpop.f32.mrf.mxu0  ;;  %v7529_v1 = vpop.permute.xlu1 %7528 }
 0x4d2   : > { %v7139_v42 = vrot.slane %v6204_v36, 4  ;;  %7756 = vadd.xlane.f32.xlu0 %v7755_v6  ;;  %v7758_v40 = vsel %vm777_vm3, %v7529_v1, 0.0 }
 0x4d3   : > { %v15347_v61 = vpop.f32.mrf.mxu0  ;;  %v6276_v18 = vpop.f32.mrf.mxu1  ;;  %7744 = vadd.xlane.f32.xlu1 %v7743_v60  ;;  %v7961_v60 = vrot.slane %v17996_v27, %v19179_v52 }
 0x4d4   : > { %v7140_v53 = vsel %vm6443_vm6, %v7139_v42, %v7138_v54  ;;  %v7141_v25 = vrot.slane %v6276_v18, 3  ;;  %v7557_v61 = vpop.permute.xlu0 %7556 }
 0x4d5   : > { %v15352_v49 = vpop.f32.mrf.mxu1  ;;  %v6348_v30 = vpop.f32.mrf.mxu0  ;;  %v7800_v4 = vsel %vm777_vm3, %v7557_v61, 0.0 }
 0x4d6   : > { %v7142_v44 = vsel %vm6446_vm7, %v7141_v25, %v7140_v53  ;;  %v7143_v3 = vrot.slane %v6348_v30, 2  ;;  %v7531_v7 = vpop.permute.xlu1 %7530 }
 0x4d7   : > { %v7761_v45 = vsel %vm777_vm3, %v7531_v7, 0.0  ;;  %v15357_v22 = vpop.f32.mrf.mxu0  ;;  %v6420_v51 = vpop.f32.mrf.mxu1  ;;  %7753 = vadd.xlane.f32.xlu1 %v7752_v35 }
 0x4d8   : > { %v7145_v33 = vrot.slane %v6420_v51, 1  ;;  %7762 = vadd.xlane.f32.xlu0 %v7761_v45  ;;  %v7144_v59 = vsel %vm6449_vm8, %v7143_v3, %v7142_v44 }
 0x4d9   : > { %v15362_v28 = vpop.f32.mrf.mxu1  ;;  %v6525_v16 = vpop.f32.mrf.mxu0 }
 0x4da   : > { %v18057_v2 = vadd.f32 %v6525_v16, %v17631_v14  ;;  %v7549_v13 = vpop.permute.xlu1 %7548  ;;  %v7146_v9 = vsel %vm6452_vm9, %v7145_v33, %v7144_v59  ;;  %v7949_v14 = vrot.slane %v17953_v8, %v19179_v52 }
 0x4db   : > { %v7788_v56 = vsel %vm777_vm3, %v7549_v13, 0.0  ;;  %v15367_v26 = vpop.f32.mrf.mxu0  ;;  %v6624_v62 = vpop.f32.mrf.mxu1  ;;  %7759 = vadd.xlane.f32.xlu1 %v7758_v40 }
 0x4dc   : > { %7789 = vadd.xlane.f32.xlu0 %v7788_v56  ;;  %v8167_v6 = vsel %vm6440_vm5, %v7949_v14, %v8166_v15  ;;  %v6625_v44 = vadd.f32 %v6624_v62, %v17722_v39 }
 0x4dd   : > { %v15372_v20 = vpop.f32.mrf.mxu1  ;;  %v8168_v24 = vsel %vm6443_vm6, %v7953_v50, %v8167_v6 }
 0x4de   : > { %v7555_v31 = vpop.permute.xlu1 %7554 }
 0x4df   : > { %v6822_v21 = vpop.f32.mrf.mxu1  ;;  %7792 = vadd.xlane.f32.xlu1 %v7791_v34  ;;  %v7797_v1 = vsel %vm777_vm3, %v7555_v31, 0.0 }
 0x4e0   : > { %v6723_v23 = vpop.f32.mrf.mxu0  ;;  %v18075_v54 = vadd.f32 %v6822_v21, %v17945_v48  ;;  %7795 = vadd.xlane.f32.xlu0 %v7794_v11  ;;  %v7957_v48 = vrot.slane %v17961_v57, %v19179_v52 }
 0x4e1   : > { %v18071_v12 = vadd.f32 %v6723_v23, %v17914_v5  ;;  %v15382_v36 = vpop.f32.mrf.mxu1 }
 0x4e2   : > { %v15377_v8 = vpop.f32.mrf.mxu0  ;;  %v7559_v42 = vpop.permute.xlu1 %7558  ;;  %v8169_v30 = vsel %vm6446_vm7, %v7957_v48, %v8168_v24 }
 0x4e3   : > { %v7803_v5 = vsel %vm777_vm3, %v7559_v42, 0.0  ;;  %v7020_v18 = vpop.f32.mrf.mxu1  ;;  %7798 = vadd.xlane.f32.xlu1 %v7797_v1  ;;  %v8170_v3 = vsel %vm6449_vm8, %v7961_v60, %v8169_v30 }
 0x4e4   : > { %v18085_v53 = vadd.f32 %v7020_v18, %v18015_v43  ;;  %7804 = vadd.xlane.f32.xlu0 %v7803_v5  ;;  %v7965_v43 = vrot.slane %v17974_v63, %v19179_v52 }
 0x4e5   : > { %v15392_v25 = vpop.f32.mrf.mxu1 }
 0x4e6   : > { %v6921_v49 = vpop.f32.mrf.mxu0  ;;  %v7561_v46 = vpop.permute.xlu1 %7560  ;;  %v8171_v51 = vsel %vm6452_vm9, %v7965_v43, %v8170_v3 }
 0x4e7   : > { %v18090_v27 = vadd.f32 %v6921_v49, %v17985_v32  ;;  %7801 = vadd.xlane.f32.xlu1 %v7800_v4  ;;  %v7806_v29 = vsel %vm777_vm3, %v7561_v46, 0.0  ;;  %v18103_v39 = vadd.f32 %v8171_v51, %v6625_v44 }
 0x4e8   : > { %v7218_v7 = vpop.f32.mrf.mxu1  ;;  %v15387_v57 = vpop.f32.mrf.mxu0 }
 0x4e9   : > { %v18096_v35 = vadd.f32 %v7218_v7, %v7146_v9  ;;  %v8233_v16 = vsel %vm777_vm3, %v18103_v39, -inf }
 0x4ea   : > { %v15402_v45 = vpop.f32.mrf.mxu1  ;;  %v7119_v22 = vpop.f32.mrf.mxu0 }
 0x4eb   : > { %v7563_v32 = vpop.permute.xlu1 %7562  ;;  %v18101_v33 = vadd.f32 %v7119_v22, %v18034_v41  ;;  %7807 = vadd.xlane.f32.xlu1 %v7806_v29 }
 0x4ec   : > { %v7809_v59 = vsel %vm777_vm3, %v7563_v32, 0.0  ;;  %v15397_v28 = vpop.f32.mrf.mxu0 }
 0x4ed   : > { %7810 = vadd.xlane.f32.xlu0 %v7809_v59  ;;  %v7646_v63 = vpop.xlane.xlu0 %7645 }
 0x4ee   : > { %v7905_v20 = vrot.slane %v7646_v63, %v19179_v52 }
 0x4f1   : > { %8234 = vmax.xlane.f32.xlu0 %v8233_v16  ;;  %v7652_v55 = vpop.xlane.xlu0 %7651 }
 0x4f2   : > { %v7913_v34 = vrot.slane %v7652_v55, %v19179_v52 }
 0x4f5   : > { %v7655_v40 = vpop.xlane.xlu0 %7654 }
 0x4f6   : > { %v7917_v23 = vrot.slane %v7655_v40, %v19179_v52 }
 0x4f9   : > { %v7661_v13 = vpop.xlane.xlu0 %7660 }
 0x4fa   : > { %v7925_v42 = vrot.slane %v7661_v13, %v19179_v52 }
 0x4fd   : > { %v7667_v9 = vpop.xlane.xlu0 %7666 }
 0x4fe   : > { %v7933_v5 = vrot.slane %v7667_v9, %v19179_v52 }
 0x501   : > { %v7718_v47 = vpop.xlane.xlu0 %7717 }
 0x502   : > { %v8001_v30 = vrot.slane %v7718_v47, %v19179_v52 }
 0x505   : > { %v7724_v56 = vpop.xlane.xlu0 %7723 }
 0x506   : > { %v8009_v3 = vrot.slane %v7724_v56, %v19179_v52 }
 0x509   : > { %v7727_v41 = vpop.xlane.xlu0 %7726 }
 0x50a   : > { %v8013_v7 = vrot.slane %v7727_v41, %v19179_v52 }
 0x50d   : > { %v7733_v26 = vpop.xlane.xlu0 %7732 }
 0x50e   : > { %v8021_v59 = vrot.slane %v7733_v26, %v19179_v52 }
 0x511   : > { %v7739_v62 = vpop.xlane.xlu0 %7738 }
 0x512   : > { %v8029_v55 = vrot.slane %v7739_v62, %v19179_v52 }
 0x515   : > { %v18108_v19 = vpop.xlane.xlu0 %7768 }
 0x518   : > { %v7649_v15 = vpop.xlane.xlu1 %7648 }
 0x519   : > { %v18111_v14 = vpop.xlane.xlu0 %7774  ;;  %v7909_v31 = vrot.slane %v7649_v15, %v19179_v52 }
 0x51b   : > { %v8158_v50 = vsel %vm627_vm2, %v7909_v31, %v7905_v20 }
 0x51c   : > { %v8159_v21 = vsel %vm6437_vm4, %v7913_v34, %v8158_v50  ;;  %v7658_v11 = vpop.xlane.xlu1 %7657 }
 0x51d   : > { %v18118_v6 = vpop.xlane.xlu0 %7777  ;;  %v7921_v8 = vrot.slane %v7658_v11, %v19179_v52  ;;  %v8160_v36 = vsel %vm6440_vm5, %v7917_v23, %v8159_v21 }
 0x51f   : > { %v8161_v1 = vsel %vm6443_vm6, %v7921_v8, %v8160_v36 }
 0x520   : > { %v7664_v24 = vpop.xlane.xlu1 %7663  ;;  %v8162_v18 = vsel %vm6446_vm7, %v7925_v42, %v8161_v1 }
 0x521   : > { %v18124_v60 = vpop.xlane.xlu0 %7783  ;;  %v7929_v61 = vrot.slane %v7664_v24, %v19179_v52 }
 0x523   : > { %v8163_v48 = vsel %vm6449_vm8, %v7929_v61, %v8162_v18  ;;  %v8069_v61 = vrot.slane %v18108_v19, %v19179_v52  ;;  %v8077_v19 = vrot.slane %v18111_v14, %v19179_v52 }
 0x524   : > { %v7721_v25 = vpop.xlane.xlu1 %7720  ;;  %v8164_v49 = vsel %vm6452_vm9, %v7933_v5, %v8163_v48 }
 0x525   : > { %v18132_v46 = vpop.xlane.xlu0 %7816  ;;  %v8005_v4 = vrot.slane %v7721_v25, %v19179_v52  ;;  %v18136_v44 = vadd.f32 %v8164_v49, %v18057_v2 }
 0x527   : > { %v8179_v57 = vsel %vm627_vm2, %v8005_v4, %v8001_v30  ;;  %v8230_v43 = vsel %vm777_vm3, %v18136_v44, -inf }
 0x528   : > { %v8180_v45 = vsel %vm6437_vm4, %v8009_v3, %v8179_v57  ;;  %v7730_v22 = vpop.xlane.xlu1 %7729  ;;  %8231 = vmax.xlane.f32.xlu1 %v8230_v43 }
 0x529   : > { %v18144_v51 = vpop.xlane.xlu0 %7822  ;;  %v8017_v29 = vrot.slane %v7730_v22, %v19179_v52  ;;  %v8181_v2 = vsel %vm6440_vm5, %v8013_v7, %v8180_v45 }
 0x52b   : > { %v8182_v32 = vsel %vm6443_vm6, %v8017_v29, %v8181_v2  ;;  %v8133_v29 = vrot.slane %v18132_v46, %v19179_v52 }
 0x52c   : > { %v7736_v28 = vpop.xlane.xlu1 %7735  ;;  %v8183_v40 = vsel %vm6446_vm7, %v8021_v59, %v8182_v32 }
 0x52d   : > { %v18150_v63 = vpop.xlane.xlu0 %7825  ;;  %v8025_v16 = vrot.slane %v7736_v28, %v19179_v52  ;;  %v8081_v28 = vrot.slane %v18118_v6, %v19179_v52 }
 0x52f   : > { %v8184_v13 = vsel %vm6449_vm8, %v8025_v16, %v8183_v40 }
 0x530   : > { %v7766_v9 = vpop.xlane.xlu1 %7765  ;;  %v8185_v47 = vsel %vm6452_vm9, %v8029_v55, %v8184_v13 }
 0x531   : > { %v18157_v56 = vpop.xlane.xlu0 %7831  ;;  %v18160_v41 = vadd.f32 %v8185_v47, %v18075_v54  ;;  %v18171_v54 = vld [vmem:[%s16579_s5 + $0x10] sm:$0xff]  ;;  %v8065_v42 = vrot.slane %v7766_v9, %v19179_v52  ;;  %v8141_v47 = vrot.slane %v18144_v51, %v19179_v52 }
 0x533   : > { %v8239_v26 = vsel %vm777_vm3, %v18160_v41, -inf  ;;  %v8193_v25 = vsel %vm627_vm2, %v8069_v61, %v8065_v42 }
 0x534   : > { %v7772_v15 = vpop.xlane.xlu1 %7771  ;;  %8240 = vmax.xlane.f32.xlu0 %v8239_v26 }
 0x535   : > { %v7694_v20 = vpop.xlane.xlu0 %7693 }
 0x536   : > { %v7969_v18 = vrot.slane %v7694_v20, %v19179_v52 }
 0x538   : > { %v7781_v62 = vpop.xlane.xlu1 %7780 }
 0x539   : > { %1314 = vrot.lane.b32.xlu1 %v17813_v17, %s16243_s7  ;;  %v7700_v34 = vpop.xlane.xlu0 %7699  ;;  %v8073_v17 = vrot.slane %v7772_v15, %v19179_v52  ;;  %v8085_v40 = vrot.slane %v7781_v62, %v19179_v52 }
 0x53a   : > { %v7977_v49 = vrot.slane %v7700_v34, %v19179_v52  ;;  %v8089_v34 = vrot.slane %v18124_v60, %v19179_v52 }
 0x53b   : > { %v8194_v30 = vsel %vm6437_vm4, %v8073_v17, %v8193_v25 }
 0x53c   : > { %v18166_v31 = vpop.xlane.xlu1 %7786  ;;  %v8195_v59 = vsel %vm6440_vm5, %v8077_v19, %v8194_v30  ;;  %v8153_v19 = vrot.slane %v18157_v56, %v19179_v52 }
 0x53d   : > { %v8196_v26 = vsel %vm6443_vm6, %v8081_v28, %v8195_v59 }
 0x53e   : > { %v7703_v50 = vpop.xlane.xlu0 %7702  ;;  %v8197_v51 = vsel %vm6446_vm7, %v8085_v40, %v8196_v26 }
 0x53f   : > { %v7981_v4 = vrot.slane %v7703_v50, %v19179_v52 }
 0x540   : > { %v7814_v23 = vpop.xlane.xlu1 %7813 }
 0x541   : > { %v8129_v3 = vrot.slane %v7814_v23, %v19179_v52 }
 0x542   : > { %v7709_v11 = vpop.xlane.xlu0 %7708 }
 0x543   : > { %v8207_v16 = vsel %vm627_vm2, %v8133_v29, %v8129_v3  ;;  %v7989_v13 = vrot.slane %v7709_v11, %v19179_v52  ;;  %v8093_v11 = vrot.slane %v18166_v31, %v19179_v52 }
 0x544   : > { %v7820_v21 = vpop.xlane.xlu1 %7819 }
 0x545   : > { %v8137_v43 = vrot.slane %v7820_v21, %v19179_v52  ;;  %v8145_v21 = vrot.slane %v18150_v63, %v19179_v52 }
 0x547   : > { %v8208_v46 = vsel %vm6437_vm4, %v8137_v43, %v8207_v16 }
 0x548   : > { %v18168_v8 = vpop.xlane.xlu1 %7828  ;;  %v8209_v62 = vsel %vm6440_vm5, %v8141_v47, %v8208_v46 }
 0x549   : > { %v8149_v17 = vrot.slane %v18168_v8, %v19179_v52  ;;  %v8210_v63 = vsel %vm6443_vm6, %v8145_v21, %v8209_v62  ;;  %v8198_v8 = vsel %vm6449_vm8, %v8089_v34, %v8197_v51 }
 0x54a   : > { %1316 = vrot.lane.b32.xlu0 %v18171_v54, %s16243_s7  ;;  %v7715_v36 = vpop.xlane.xlu0 %7714 }
 0x54b   : > { %v7997_v6 = vrot.slane %v7715_v36, %v19179_v52  ;;  %v8211_v30 = vsel %vm6446_vm7, %v8149_v17, %v8210_v63 }
 0x54c   : > { %v18175_v1 = vpop.xlane.xlu1 %7834 }
 0x54f   : > { %v7742_v24 = vpop.xlane.xlu0 %7741 }
 0x550   : > { %v7697_v5 = vpop.xlane.xlu1 %7696  ;;  %v8033_v60 = vrot.slane %v7742_v24, %v19179_v52 }
 0x551   : > { %v7973_v48 = vrot.slane %v7697_v5, %v19179_v52 }
 0x553   : > { %v8172_v7 = vsel %vm627_vm2, %v7973_v48, %v7969_v18  ;;  %v7748_v57 = vpop.xlane.xlu0 %7747 }
 0x554   : > { %v8173_v45 = vsel %vm6437_vm4, %v7977_v49, %v8172_v7  ;;  %v7706_v22 = vpop.xlane.xlu1 %7705  ;;  %v8041_v18 = vrot.slane %v7748_v57, %v19179_v52 }
 0x555   : > { %v7985_v2 = vrot.slane %v7706_v22, %v19179_v52  ;;  %v8174_v32 = vsel %vm6440_vm5, %v7981_v4, %v8173_v45  ;;  %v8157_v4 = vrot.slane %v18175_v1, %v19179_v52 }
 0x557   : > { %v8175_v14 = vsel %vm6443_vm6, %v7985_v2, %v8174_v32  ;;  %v7751_v55 = vpop.xlane.xlu0 %7750  ;;  %v8212_v2 = vsel %vm6449_vm8, %v8153_v19, %v8211_v30 }
 0x558   : > { %v7712_v9 = vpop.xlane.xlu1 %7711  ;;  %v8176_v20 = vsel %vm6446_vm7, %v7989_v13, %v8175_v14  ;;  %v8045_v48 = vrot.slane %v7751_v55, %v19179_v52  ;;  %v8213_v59 = vsel %vm6452_vm9, %v8157_v4, %v8212_v2 }
 0x559   : > { %v7993_v15 = vrot.slane %v7712_v9, %v19179_v52  ;;  %v18259_v40 = vadd.f32 %v8213_v59, %v18096_v35 }
 0x55b   : > { %v8177_v23 = vsel %vm6449_vm8, %v7993_v15, %v8176_v20  ;;  %v7757_v50 = vpop.xlane.xlu0 %7756 }
 0x55c   : > { %v7745_v42 = vpop.xlane.xlu1 %7744  ;;  %v8178_v36 = vsel %vm6452_vm9, %v7997_v6, %v8177_v23  ;;  %v8053_v45 = vrot.slane %v7757_v50, %v19179_v52  ;;  %v8251_v6 = vsel %vm777_vm3, %v18259_v40, -inf }
 0x55d   : > { %v8037_v61 = vrot.slane %v7745_v42, %v19179_v52  ;;  %v18226_v5 = vadd.f32 %v8178_v36, %v18071_v12  ;;  %v8199_v12 = vsel %vm6452_vm9, %v8093_v11, %v8198_v8 }
 0x55e   : > { %v18247_v29 = vadd.f32 %v8199_v12, %v18085_v53 }
 0x55f   : > { %v8186_v31 = vsel %vm627_vm2, %v8037_v61, %v8033_v60  ;;  %v8236_v25 = vsel %vm777_vm3, %v18226_v5, -inf }
 0x560   : > { %v8187_v24 = vsel %vm6437_vm4, %v8041_v18, %v8186_v31  ;;  %v7754_v49 = vpop.xlane.xlu1 %7753  ;;  %8237 = vmax.xlane.f32.xlu1 %v8236_v25  ;;  %v8245_v55 = vsel %vm777_vm3, %v18247_v29, -inf  ;;  %v18286_v25 = vld [vmem:[%s16579_s5 + $0x18] sm:$0xff] }
 0x561   : > { %v7763_v3 = vpop.xlane.xlu0 %7762  ;;  %v8049_v7 = vrot.slane %v7754_v49, %v19179_v52  ;;  %v8188_v57 = vsel %vm6440_vm5, %v8045_v48, %v8187_v24 }
 0x562   : > { %v8061_v28 = vrot.slane %v7763_v3, %v19179_v52 }
 0x563   : > { %v8189_v43 = vsel %vm6443_vm6, %v8049_v7, %v8188_v57 }
 0x564   : > { %v7760_v22 = vpop.xlane.xlu1 %7759  ;;  %v8190_v16 = vsel %vm6446_vm7, %v8053_v45, %v8189_v43  ;;  %v18305_v45 = vld [vmem:[%s16579_s5 + $0x28] sm:$0xff] }
 0x565   : > { %v7790_v32 = vpop.xlane.xlu0 %7789  ;;  %v8057_v1 = vrot.slane %v7760_v22, %v19179_v52 }
 0x566   : > { %v8097_v26 = vrot.slane %v7790_v32, %v19179_v52  ;;  %v18311_v32 = vld [vmem:[%s16579_s5 + $0x38] sm:$0xff] }
 0x567   : > { %v8191_v56 = vsel %vm6449_vm8, %v8057_v1, %v8190_v16 }
 0x568   : > { %v7793_v14 = vpop.xlane.xlu1 %7792  ;;  %v8192_v53 = vsel %vm6452_vm9, %v8061_v28, %v8191_v56 }
 0x569   : > { %8246 = vmax.xlane.f32.xlu0 %v8245_v55  ;;  %v18262_v13 = vadd.f32 %v8192_v53, %v18090_v27  ;;  %v8101_v46 = vrot.slane %v7793_v14, %v19179_v52  ;;  %v7796_v9 = vpop.xlane.xlu0 %7795  ;;  %v18325_v53 = vld [vmem:[%s16579_s5 + $0x20] sm:$0xff] }
 0x56a   : > { %v8105_v27 = vrot.slane %v7796_v9, %v19179_v52 }
 0x56b   : > { %v8242_v47 = vsel %vm777_vm3, %v18262_v13, -inf  ;;  %v8200_v35 = vsel %vm627_vm2, %v8101_v46, %v8097_v26  ;;  %v18333_v26 = vld [vmem:[%s16579_s5] sm:$0xff] }
 0x56c   : > { %v7799_v15 = vpop.xlane.xlu1 %7798  ;;  %8243 = vmax.xlane.f32.xlu1 %v8242_v47  ;;  %v8201_v23 = vsel %vm6437_vm4, %v8105_v27, %v8200_v35 }
 0x56d   : > { %8252 = vmax.xlane.f32.xlu0 %v8251_v6  ;;  %v8109_v20 = vrot.slane %v7799_v15, %v19179_v52  ;;  %v7805_v62 = vpop.xlane.xlu0 %7804  ;;  %v18338_v15 = vld [vmem:[%s16579_s5 + $0x8] sm:$0xff] }
 0x56e   : > { %v8117_v11 = vrot.slane %v7805_v62, %v19179_v52 }
 0x56f   : > { %v8202_v21 = vsel %vm6440_vm5, %v8109_v20, %v8201_v23  ;;  %v18351_v23 = vld [vmem:[%s16579_s5 + $0x30] sm:$0xff]  ;;  %s16248_s5 = smov 64  }
 0x570   : > { %v7802_v34 = vpop.xlane.xlu1 %7801 }
 0x571   : > { %v8113_v50 = vrot.slane %v7802_v34, %v19179_v52 }
 0x573   : > { %v8203_v51 = vsel %vm6443_vm6, %v8113_v50, %v8202_v21 }
 0x574   : > { %v7808_v42 = vpop.xlane.xlu1 %7807  ;;  %v8204_v61 = vsel %vm6446_vm7, %v8117_v11, %v8203_v51 }
 0x575   : > { %v8121_v17 = vrot.slane %v7808_v42, %v19179_v52 }
 0x576   : > { %v7811_v36 = vpop.xlane.xlu0 %7810 }
 0x577   : > { %v8125_v60 = vrot.slane %v7811_v36, %v19179_v52  ;;  %v8205_v63 = vsel %vm6449_vm8, %v8121_v17, %v8204_v61 }
 0x579   : > { %v8206_v18 = vsel %vm6452_vm9, %v8125_v60, %v8205_v63 }
 0x57a   : > { %v8228_v48 = vadd.f32 %v8206_v18, %v18101_v33  ;;  %v8235_v8 = vpop.xlane.xlu0 %8234 }
 0x57b   : > { %v8255_v24 = vsub.f32 %v18103_v39, %v8235_v8 }
 0x57c   : > { %v8248_v31 = vsel %vm777_vm3, %v8228_v48, -inf }
 0x57d   : > { %8249 = vmax.xlane.f32.xlu0 %v8248_v31  ;;  %1318 = vrot.lane.b32.xlu1 %v18286_v25, %s16243_s7  ;;  %v8264_v12 = vmul.f32 1.442695, %v8255_v24 }
 0x5b1   : > { %v8232_v52 = vpop.xlane.xlu1 %8231 }
 0x5b2   : > { %v8254_v49 = vsub.f32 %v18136_v44, %v8232_v52 }
 0x5b4   : > { %v8262_v30 = vmul.f32 1.442695, %v8254_v49 }
 0x5b6   : > { %15919 = vpow2.f32 %v8262_v30 }
 0x5b7   : > { %15921 = vpow2.f32 %v8264_v12 }
 0x5bd   : > { %v8241_v33 = vpop.xlane.xlu0 %8240 }
 0x5be   : > { %v8257_v4 = vsub.f32 %v18160_v41, %v8241_v33  ;;  %v18302_v41 = vpop.permute.xlu1 %1314 }
 0x5c0   : > { %v8268_v3 = vmul.f32 1.442695, %v8257_v4 }
 0x5c2   : > { %15923 = vpow2.f32 %v8268_v3 }
 0x5c3   : > { %v15920_v7 = vpop.eup %15919 }
 0x5c4   : > { %v8278_v57 = vsel %vm777_vm3, %v15920_v7, 0.0  ;;  %v18294_v19 = vpop.eup %15921 }
 0x5c5   : > { %8279 = vadd.xlane.f32.xlu1 %v8278_v57  ;;  %v8281_v39 = vsel %vm777_vm3, %v18294_v19, 0.0 }
 0x5c9   : > { %8282 = vadd.xlane.f32.xlu1 %v8281_v39 }
 0x5cf   : > { %v18298_v44 = vpop.eup %15923 }
 0x5d0   : > { %v8287_v43 = vsel %vm777_vm3, %v18298_v44, 0.0 }
 0x5d1   : > { %8288 = vadd.xlane.f32.xlu0 %v8287_v43  ;;  %v19180_v43 = vld [vmem:[#allocation35_spill] sm:$0xff] }
 0x5e7   : > { %1322 = vrot.lane.b32.xlu0 %v18305_v45, %s16243_s7 }
 0x5e9   : > { %v8238_v22 = vpop.xlane.xlu1 %8237 }
 0x5ea   : > { %v8256_v2 = vsub.f32 %v18226_v5, %v8238_v22 }
 0x5eb   : > { %1326 = vrot.lane.b32.xlu0 %v18311_v32, %s16243_s7 }
 0x5ec   : > { %v8266_v1 = vmul.f32 1.442695, %v8256_v2 }
 0x5ee   : > { %15925 = vpow2.f32 %v8266_v1 }
 0x5f5   : > { %v8244_v59 = vpop.xlane.xlu1 %8243 }
 0x5f6   : > { %v8258_v28 = vsub.f32 %v18262_v13, %v8244_v59  ;;  %v18329_v13 = vpop.permute.xlu0 %1316 }
 0x5f8   : > { %v8270_v16 = vmul.f32 1.442695, %v8258_v28 }
 0x5f9   : > { %v18357_v21 = vpop.permute.xlu1 %1318 }
 0x5fa   : > { %15927 = vpow2.f32 %v8270_v16  ;;  %v8247_v46 = vpop.xlane.xlu0 %8246 }
 0x5fb   : > { %v18316_v56 = vpop.eup %15925  ;;  %v8259_v9 = vsub.f32 %v18247_v29, %v8247_v46  ;;  %v19185_v46 = vld [vmem:[#allocation40_spill] sm:$0xff] }
 0x5fc   : > { %v8284_v14 = vsel %vm777_vm3, %v18316_v56, 0.0 }
 0x5fd   : > { %8285 = vadd.xlane.f32.xlu1 %v8284_v14  ;;  %v8272_v47 = vmul.f32 1.442695, %v8259_v9 }
 0x5fe   : > { %v8253_v6 = vpop.xlane.xlu0 %8252 }
 0x5ff   : > { %15929 = vpow2.f32 %v8272_v47  ;;  %v8261_v51 = vsub.f32 %v18259_v40, %v8253_v6 }
 0x601   : > { %v8276_v42 = vmul.f32 1.442695, %v8261_v51 }
 0x606   : > { %v8250_v35 = vpop.xlane.xlu0 %8249 }
 0x607   : > { %v18320_v5 = vpop.eup %15927  ;;  %v8260_v29 = vsub.f32 %v8228_v48, %v8250_v35 }
 0x608   : > { %v8290_v55 = vsel %vm777_vm3, %v18320_v5, 0.0 }
 0x609   : > { %v8274_v34 = vmul.f32 1.442695, %v8260_v29 }
 0x60a   : > { %8291 = vadd.xlane.f32.xlu0 %v8290_v55 }
 0x60b   : > { %15931 = vpow2.f32 %v8274_v34 }
 0x60c   : > { %v18344_v20 = vpop.eup %15929 }
 0x60d   : > { %v8293_v27 = vsel %vm777_vm3, %v18344_v20, 0.0 }
 0x60e   : > { %1320 = vrot.lane.b32.xlu1 %v18325_v53, %s16243_s7 }
 0x618   : > { %v18348_v62 = vpop.eup %15931 }
 0x619   : > { %v8296_v50 = vsel %vm777_vm3, %v18348_v62, 0.0 }
 0x620   : > { %1336 = vrot.lane.b32.xlu0 %v18333_v26, %s16244_s19 }
 0x624   : > { %1338 = vrot.lane.b32.xlu0 %v18338_v15, %s16244_s19 }
 0x628   : > { %1340 = vrot.lane.b32.xlu0 %v18171_v54, %s16244_s19 }
 0x632   : > { %8294 = vadd.xlane.f32.xlu1 %v8293_v27 }
 0x643   : > { %1324 = vrot.lane.b32.xlu1 %v18351_v23, %s16243_s7  ;;  %s16250_s7 = smov 16  }
 0x647   : > { %8297 = vadd.xlane.f32.xlu0 %v8296_v50 }
 0x64e   : > { %v8280_v11 = vpop.xlane.xlu1 %8279 }
 0x64f   : > { %15933 = vrcp.f32 %v8280_v11 }
 0x650   : > { %15935 = vpow2.f32 %v8276_v42  ;;  %v19187_v42 = vld [vmem:[#allocation51_spill] sm:$0xff] }
 0x652   : > { %v8283_v36 = vpop.xlane.xlu1 %8282 }
 0x653   : > { %15937 = vrcp.f32 %v8283_v36 }
 0x65a   : > { %v8289_v47 = vpop.xlane.xlu0 %8288 }
 0x65c   : > { %v15934_v17 = vpop.eup %15933 }
 0x65d   : > { %v18360_v60 = vmul.f32 %v15934_v17, %v15920_v7  ;;  %1342 = vrot.lane.b32.xlu0 %v18286_v25, %s16244_s19  ;;  %v18371_v48 = vpop.eup %15935  ;;  %v19188_v17 = vld [vmem:[#allocation52_spill] sm:$0xff] }
 0x65e   : > { %v8299_v49 = vsel %vm777_vm3, %v18371_v48, 0.0 }
 0x65f   : > { %v8333_v61 = vrot.slane %v18360_v60, %v16883_v58  ;;  %v8326_v63 = vcombine.high %v18360_v60, %v18360_v60 }
 0x660   : > { %v15938_v24 = vpop.eup %15937 }
 0x661   : > { %1344 = vrot.lane.b32.xlu0 %v18325_v53, %s16244_s19  ;;  %v8349_v40 = vrot.slane %v8333_v61, %v16883_v58  ;;  %v8341_v18 = vcombine.high %v8333_v61, %v8333_v61  ;;  %v8340_v8 = vrot.slane %v8326_v63, %v16883_v58  ;;  %v18389_v33 = vmul.f32 %v15938_v24, %v18294_v19 }
 0x663   : > { %15406 = vmatmul.mubr.msk.f32.vlgmr.msra.gmra.mxu0 %vm777_vm3, %v8349_v40  ;;  %v8363_v31 = vrot.slane %v8341_v18, %v16883_v58  ;;  %v8371_v52 = vcombine.high %v8349_v40, %v8349_v40  ;;  %v8342_v30 = vcombine.high %v8340_v8, %v8340_v8  ;;  %v8356_v4 = vrot.slane %v8340_v8, %v16883_v58  ;;  %v19189_v18 = vld [vmem:[#allocation53_spill] sm:$0xff] }
 0x664   : > { %15414 = vmatpush3.msra.mxu0 %v18171_v54  ;;  %15415 = vmatprep.mubr.msk.f32.mxu0 %vm16241_vm0, %v19161_v0  ;;  %v8382_v7 = vrot.slane %v18389_v33, %v16883_v58  ;;  %v8375_v2 = vcombine.high %v18389_v33, %v18389_v33 }
 0x665   : > { %15411 = vmatmul.mubr.msk.f32.vlgmr.msra.gmra.mxu1 %vm777_vm3, %v8363_v31  ;;  %1346 = vrot.lane.b32.xlu0 %v18305_v45, %s16244_s19  ;;  %v8373_v12 = vcombine.high %v8363_v31, %v8363_v31  ;;  %v8370_v3 = vrot.slane %v8342_v30, %v16883_v58  ;;  %v8372_v57 = vcombine.high %v8356_v4, %v8356_v4 }
 0x666   : > { %15419 = vmatpush3.msra.mxu1 %v18286_v25  ;;  %15420 = vmatprep.mubr.msk.f32.mxu1 %vm16241_vm0, %v19161_v0  ;;  %v8390_v39 = vcombine.high %v8382_v7, %v8382_v7  ;;  %v8398_v22 = vrot.slane %v8382_v7, %v16883_v58  ;;  %v8389_v28 = vrot.slane %v8375_v2, %v16883_v58 }
 0x667   : > { %15416 = vmatmul.mubr.msk.f32.vlgmr.msra.gmra.mxu0 %vm777_vm3, %v8371_v52  ;;  %8300 = vadd.xlane.f32.xlu1 %v8299_v49  ;;  %v8374_v19 = vcombine.high %v8370_v3, %v8370_v3  ;;  %v19191_v52 = vld [vmem:[#allocation54_spill] sm:$0xff] }
 0x668   : > { %15423 = vmatprep.subr.mxu0 %v19161_v0  ;;  %15425 = vmatprep.mubr.msk.f32.mxu0 %vm16241_vm0, %v19161_v0  ;;  %v8412_v1 = vrot.slane %v8390_v39, %v16883_v58  ;;  %v8420_v59 = vcombine.high %v8398_v22, %v8398_v22  ;;  %v8391_v14 = vcombine.high %v8389_v28, %v8389_v28 }
 0x669   : > { %15421 = vmatmul.mubr.msk.f32.vlgmr.msra.gmra.mxu1 %vm777_vm3, %v8373_v12  ;;  %1348 = vrot.lane.b32.xlu0 %v18351_v23, %s16244_s19  ;;  %v8405_v55 = vrot.slane %v8389_v28, %v16883_v58  ;;  %v19192_v12 = vld [vmem:[#allocation48_spill] sm:$0xff] }
 0x66a   : > { %15424 = vmatpush3.msra.mxu0 %v18325_v53  ;;  %15428 = vmatprep.subr.mxu1 %v19161_v0  ;;  %v8422_v16 = vcombine.high %v8412_v1, %v8412_v1 }
 0x66b   : > { %15426 = vmatmul.mubr.msk.f32.vlgmr.msra.gmra.mxu0 %vm777_vm3, %v8356_v4  ;;  %15429 = vmatpush3.msra.mxu1 %v18305_v45 }
 0x66c   : > { %15430 = vmatprep.mubr.msk.f32.mxu1 %vm16241_vm0, %v19161_v0  ;;  %15433 = vmatprep.subr.mxu0 %v19161_v0 }
 0x66d   : > { %15431 = vmatmul.mubr.msk.f32.vlgmr.msra.gmra.mxu1 %vm777_vm3, %v8370_v3  ;;  %1350 = vrot.lane.b32.xlu0 %v18311_v32, %s16244_s19  ;;  %s16251_s19 = smov 24  }
 0x66e   : > { %15434 = vmatpush3.msra.mxu0 %v18351_v23  ;;  %15435 = vmatprep.mubr.msk.f32.mxu0 %vm16241_vm0, %v19161_v0 }
 0x66f   : > { %15436 = vmatmul.mubr.msk.f32.vlgmr.msra.gmra.mxu0 %vm777_vm3, %v8372_v57  ;;  %15438 = vmatprep.subr.mxu1 %v19161_v0 }
 0x670   : > { %15439 = vmatpush3.msra.mxu1 %v18311_v32  ;;  %15440 = vmatprep.mubr.msk.f32.mxu1 %vm16241_vm0, %v19161_v0 }
 0x671   : > { %15441 = vmatmul.mubr.msk.f32.vlgmr.msra.gmra.mxu1 %vm777_vm3, %v8374_v19  ;;  %15443 = vmatprep.subr.mxu0 %v19161_v0 }
 0x672   : > { %13326 = vrot.lane.b32.xlu0 %v19180_v43, %s16248_s5  ;;  %15444 = vmatpush3.msra.mxu0 %v18333_v26  ;;  %v18493_v26 = vpop.permute.xlu0 %1322 }
 0x673   : > { %15445 = vmatprep.mubr.msk.f32.mxu0 %vm16241_vm0, %v19161_v0  ;;  %15448 = vmatprep.subr.mxu1 %v19161_v0 }
 0x674   : > { %15446 = vmatmul.mubr.msk.f32.vlgmr.msra.gmra.mxu0 %vm777_vm3, %v8398_v22  ;;  %15449 = vmatpush3.msra.mxu1 %v18338_v15 }
 0x675   : > { %15450 = vmatprep.mubr.msk.f32.mxu1 %vm16241_vm0, %v19161_v0  ;;  %15453 = vmatprep.subr.mxu0 %v19161_v0 }
 0x676   : > { %15451 = vmatmul.mubr.msk.f32.vlgmr.msra.gmra.mxu1 %vm777_vm3, %v8412_v1  ;;  %13522 = vrot.lane.b32.xlu0 %v19177_v37, %s16248_s5  ;;  %v19181_v37 = vld [vmem:[#allocation34_spill] sm:$0xff]  ;;  %v18502_v27 = vpop.permute.xlu0 %1326 }
 0x677   : > { %15454 = vmatpush3.msra.mxu0 %v18171_v54  ;;  %15455 = vmatprep.mubr.msk.f32.mxu0 %vm16241_vm0, %v19161_v0  ;;  %v19182_v54 = vld [vmem:[#allocation39_spill] sm:$0xff] }
 0x678   : > { %15456 = vmatmul.mubr.msk.f32.vlgmr.msra.gmra.mxu0 %vm777_vm3, %v8420_v59  ;;  %15458 = vmatprep.subr.mxu1 %v19161_v0 }
 0x679   : > { %15459 = vmatpush3.msra.mxu1 %v18286_v25  ;;  %15460 = vmatprep.mubr.msk.f32.mxu1 %vm16241_vm0, %v19161_v0  ;;  %v8419_v25 = vrot.slane %v8391_v14, %v16883_v58 }
 0x67a   : > { %13424 = vrot.lane.b32.xlu1 %v19181_v37, %s16248_s5  ;;  %15461 = vmatmul.mubr.msk.f32.vlgmr.msra.gmra.mxu1 %vm777_vm3, %v8422_v16 }
 0x67b   : > { %15463 = vmatprep.subr.mxu0 %v19161_v0  ;;  %13620 = vrot.lane.b32.xlu0 %v19182_v54, %s16248_s5 }
 0x67c   : > { %15464 = vmatpush3.msra.mxu0 %v18325_v53  ;;  %15465 = vmatprep.mubr.msk.f32.mxu0 %vm16241_vm0, %v19161_v0  ;;  %v19183_v53 = vld [vmem:[#allocation50_spill] sm:$0xff] }
 0x67d   : > { %15466 = vmatmul.mubr.msk.f32.vlgmr.msra.gmra.mxu0 %vm777_vm3, %v8405_v55  ;;  %15468 = vmatprep.subr.mxu1 %v19161_v0 }
 0x67e   : > { %15469 = vmatpush3.msra.mxu1 %v18305_v45  ;;  %15470 = vmatprep.mubr.msk.f32.mxu1 %vm16241_vm0, %v19161_v0  ;;  %v8421_v45 = vcombine.high %v8405_v55, %v8405_v55 }
 0x67f   : > { %15473 = vmatprep.subr.mxu0 %v19161_v0  ;;  %13914 = vrot.lane.b32.xlu1 %v17229_v38, %s16248_s5  ;;  %v8423_v38 = vcombine.high %v8419_v25, %v8419_v25 }
 0x680   : > { %15471 = vmatmul.mubr.msk.f32.vlgmr.msra.gmra.mxu1 %vm777_vm3, %v8419_v25  ;;  %15474 = vmatpush3.msra.mxu0 %v18351_v23  ;;  %v19193_v25 = vld [vmem:[#allocation49_spill] sm:$0xff] }
 0x681   : > { %13718 = vrot.lane.b32.xlu0 %v19178_v10, %s16248_s5  ;;  %15475 = vmatprep.mubr.msk.f32.mxu0 %vm16241_vm0, %v19161_v0  ;;  %v19184_v10 = vld [vmem:[#allocation46_spill] sm:$0xff] }
 0x682   : > { %15478 = vmatprep.subr.mxu1 %v19161_v0  ;;  %15483 = vmatprep.subr.mxu0 %v19161_v0 }
 0x683   : > { %15476 = vmatmul.mubr.msk.f32.vlgmr.msra.gmra.mxu0 %vm777_vm3, %v8421_v45  ;;  %15479 = vmatpush3.msra.mxu1 %v18311_v32  ;;  %v19186_v32 = vld [vmem:[#allocation41_spill] sm:$0xff] }
 0x684   : > { %15484 = vmatpush3.msra.mxu0 %v19183_v53  ;;  %15480 = vmatprep.mubr.msk.f32.mxu1 %vm16241_vm0, %v19161_v0 }
 0x685   : > { %15488 = vmatprep.subr.mxu1 %v19161_v0  ;;  %15481 = vmatmul.mubr.msk.f32.vlgmr.msra.gmra.mxu1 %vm777_vm3, %v8423_v38 }
 0x686   : > { %15489 = vmatpush3.msra.mxu1 %v19184_v10  ;;  %13816 = vrot.lane.b32.xlu0 %v19185_v46, %s16248_s5  ;;  %v8286_v9 = vpop.xlane.xlu1 %8285 }
 0x687   : > { %15939 = vrcp.f32 %v8286_v9  ;;  %15485 = vmatprep.mubr.msk.f32.mxu0 %vm16241_vm0, %v19161_v0  ;;  %15493 = vmatprep.subr.mxu0 %v19161_v0 }
 0x688   : > { %15490 = vmatprep.mubr.msk.f32.mxu1 %vm16241_vm0, %v19161_v0  ;;  %15498 = vmatprep.subr.mxu1 %v19161_v0  ;;  %15941 = vrcp.f32 %v8289_v47 }
 0x68a   : > { %14012 = vrot.lane.b32.xlu0 %v19186_v32, %s16248_s5  ;;  %v18595_v37 = vpop.permute.xlu1 %1320 }
 0x694   : > { %v15940_v15 = vpop.eup %15939 }
 0x695   : > { %v18496_v6 = vmul.f32 %v15940_v15, %v18316_v56  ;;  %v15942_v11 = vpop.eup %15941  ;;  %v8292_v56 = vpop.xlane.xlu0 %8291 }
 0x696   : > { %v18517_v61 = vmul.f32 %v15942_v11, %v18298_v44  ;;  %15943 = vrcp.f32 %v8292_v56  ;;  %v19190_v44 = vld [vmem:[#allocation47_spill] sm:$0xff] }
 0x697   : > { %v8431_v35 = vrot.slane %v18496_v6, %v16883_v58  ;;  %v8424_v29 = vcombine.high %v18496_v6, %v18496_v6 }
 0x698   : > { %v8480_v24 = vrot.slane %v18517_v61, %v16883_v58  ;;  %v8473_v3 = vcombine.high %v18517_v61, %v18517_v61 }
 0x699   : > { %v8447_v34 = vrot.slane %v8431_v35, %v16883_v58  ;;  %v8439_v23 = vcombine.high %v8431_v35, %v8431_v35  ;;  %v8438_v51 = vrot.slane %v8424_v29, %v16883_v58  ;;  %v18624_v47 = vpop.permute.xlu0 %1336 }
 0x69a   : > { %v8488_v4 = vcombine.high %v8480_v24, %v8480_v24  ;;  %v8496_v7 = vrot.slane %v8480_v24, %v16883_v58  ;;  %v8487_v19 = vrot.slane %v8473_v3, %v16883_v58 }
 0x69b   : > { %15486 = vmatmul.mubr.msk.f32.vlgmr.msra.gmra.mxu0 %vm777_vm3, %v8447_v34  ;;  %v8461_v50 = vrot.slane %v8439_v23, %v16883_v58  ;;  %v8469_v36 = vcombine.high %v8447_v34, %v8447_v34  ;;  %v8440_v40 = vcombine.high %v8438_v51, %v8438_v51  ;;  %v8454_v31 = vrot.slane %v8438_v51, %v16883_v58 }
 0x69c   : > { %15494 = vmatpush3.msra.mxu0 %v19187_v42  ;;  %15495 = vmatprep.mubr.msk.f32.mxu0 %vm16241_vm0, %v19161_v0  ;;  %v8510_v57 = vrot.slane %v8488_v4, %v16883_v58  ;;  %v8518_v43 = vcombine.high %v8496_v7, %v8496_v7  ;;  %v8489_v1 = vcombine.high %v8487_v19, %v8487_v19 }
 0x69d   : > { %15491 = vmatmul.mubr.msk.f32.vlgmr.msra.gmra.mxu1 %vm777_vm3, %v8461_v50  ;;  %15503 = vmatprep.subr.mxu0 %v19161_v0  ;;  %v8471_v63 = vcombine.high %v8461_v50, %v8461_v50  ;;  %v8468_v8 = vrot.slane %v8440_v40, %v16883_v58  ;;  %v8470_v49 = vcombine.high %v8454_v31, %v8454_v31  ;;  %v18642_v23 = vpop.permute.xlu0 %1338 }
 0x69e   : > { %15499 = vmatpush3.msra.mxu1 %v19188_v17  ;;  %15500 = vmatprep.mubr.msk.f32.mxu1 %vm16241_vm0, %v19161_v0  ;;  %v8520_v2 = vcombine.high %v8510_v57, %v8510_v57  ;;  %v8503_v59 = vrot.slane %v8487_v19, %v16883_v58 }
 0x69f   : > { %15496 = vmatmul.mubr.msk.f32.vlgmr.msra.gmra.mxu0 %vm777_vm3, %v8469_v36  ;;  %15508 = vmatprep.subr.mxu1 %v19161_v0  ;;  %v8472_v30 = vcombine.high %v8468_v8, %v8468_v8 }
 0x6a0   : > { %15504 = vmatpush3.msra.mxu0 %v19189_v18  ;;  %15505 = vmatprep.mubr.msk.f32.mxu0 %vm16241_vm0, %v19161_v0  ;;  %v8519_v16 = vcombine.high %v8503_v59, %v8503_v59 }
 0x6a1   : > { %15501 = vmatmul.mubr.msk.f32.vlgmr.msra.gmra.mxu1 %vm777_vm3, %v8471_v63  ;;  %15513 = vmatprep.subr.mxu0 %v19161_v0  ;;  %v18661_v56 = vpop.permute.xlu0 %1340 }
 0x6a2   : > { %15509 = vmatpush3.msra.mxu1 %v19190_v44  ;;  %15510 = vmatprep.mubr.msk.f32.mxu1 %vm16241_vm0, %v19161_v0 }
 0x6a3   : > { %15506 = vmatmul.mubr.msk.f32.vlgmr.msra.gmra.mxu0 %vm777_vm3, %v8454_v31  ;;  %15518 = vmatprep.subr.mxu1 %v19161_v0  ;;  %v15944_v39 = vpop.eup %15943 }
 0x6a4   : > { %15514 = vmatpush3.msra.mxu0 %v19191_v52  ;;  %15515 = vmatprep.mubr.msk.f32.mxu0 %vm16241_vm0, %v19161_v0  ;;  %v18569_v22 = vmul.f32 %v15944_v39, %v18320_v5  ;;  %v8517_v5 = vrot.slane %v8489_v1, %v16883_v58 }
 0x6a5   : > { %15511 = vmatmul.mubr.msk.f32.vlgmr.msra.gmra.mxu1 %vm777_vm3, %v8468_v8  ;;  %15523 = vmatprep.subr.mxu0 %v19161_v0 }
 0x6a6   : > { %15519 = vmatpush3.msra.mxu1 %v19192_v12  ;;  %15520 = vmatprep.mubr.msk.f32.mxu1 %vm16241_vm0, %v19161_v0  ;;  %v8529_v28 = vrot.slane %v18569_v22, %v16883_v58  ;;  %v8521_v14 = vcombine.high %v8517_v5, %v8517_v5  ;;  %v8522_v55 = vcombine.high %v18569_v22, %v18569_v22 }
 0x6a7   : > { %15516 = vmatmul.mubr.msk.f32.vlgmr.msra.gmra.mxu0 %vm777_vm3, %v8470_v49  ;;  %15528 = vmatprep.subr.mxu1 %v19161_v0 }
 0x6a8   : > { %15524 = vmatpush3.msra.mxu0 %v19183_v53  ;;  %15525 = vmatprep.mubr.msk.f32.mxu0 %vm16241_vm0, %v19161_v0  ;;  %v8537_v54 = vcombine.high %v8529_v28, %v8529_v28  ;;  %v8545_v45 = vrot.slane %v8529_v28, %v16883_v58 }
 0x6a9   : > { %15521 = vmatmul.mubr.msk.f32.vlgmr.msra.gmra.mxu1 %vm777_vm3, %v8472_v30  ;;  %15533 = vmatprep.subr.mxu0 %v19161_v0 }
 0x6aa   : > { %15529 = vmatpush3.msra.mxu1 %v19184_v10  ;;  %15530 = vmatprep.mubr.msk.f32.mxu1 %vm16241_vm0, %v19161_v0  ;;  %v8559_v53 = vrot.slane %v8537_v54, %v16883_v58  ;;  %v8536_v10 = vrot.slane %v8522_v55, %v16883_v58  ;;  %v8567_v46 = vcombine.high %v8545_v45, %v8545_v45 }
 0x6ab   : > { %15526 = vmatmul.mubr.msk.f32.vlgmr.msra.gmra.mxu0 %vm777_vm3, %v8496_v7  ;;  %15538 = vmatprep.subr.mxu1 %v19161_v0 }
 0x6ac   : > { %15534 = vmatpush3.msra.mxu0 %v19187_v42  ;;  %15535 = vmatprep.mubr.msk.f32.mxu0 %vm16241_vm0, %v19161_v0  ;;  %v8569_v9 = vcombine.high %v8559_v53, %v8559_v53  ;;  %v8538_v32 = vcombine.high %v8536_v10, %v8536_v10  ;;  %v8552_v15 = vrot.slane %v8536_v10, %v16883_v58 }
 0x6ad   : > { %15531 = vmatmul.mubr.msk.f32.vlgmr.msra.gmra.mxu1 %vm777_vm3, %v8510_v57  ;;  %15543 = vmatprep.subr.mxu0 %v19161_v0 }
 0x6ae   : > { %15539 = vmatpush3.msra.mxu1 %v19188_v17  ;;  %15540 = vmatprep.mubr.msk.f32.mxu1 %vm16241_vm0, %v19161_v0  ;;  %v8566_v29 = vrot.slane %v8538_v32, %v16883_v58  ;;  %v8568_v34 = vcombine.high %v8552_v15, %v8552_v15 }
 0x6af   : > { %15536 = vmatmul.mubr.msk.f32.vlgmr.msra.gmra.mxu0 %vm777_vm3, %v8518_v43  ;;  %15548 = vmatprep.subr.mxu1 %v19161_v0 }
 0x6b0   : > { %15544 = vmatpush3.msra.mxu0 %v19189_v18  ;;  %15545 = vmatprep.mubr.msk.f32.mxu0 %vm16241_vm0, %v19161_v0  ;;  %v8570_v50 = vcombine.high %v8566_v29, %v8566_v29 }
 0x6b1   : > { %15541 = vmatmul.mubr.msk.f32.vlgmr.msra.gmra.mxu1 %vm777_vm3, %v8520_v2  ;;  %15553 = vmatprep.subr.mxu0 %v19161_v0 }
 0x6b2   : > { %15549 = vmatpush3.msra.mxu1 %v19190_v44  ;;  %15550 = vmatprep.mubr.msk.f32.mxu1 %vm16241_vm0, %v19161_v0 }
 0x6b3   : > { %15546 = vmatmul.mubr.msk.f32.vlgmr.msra.gmra.mxu0 %vm777_vm3, %v8503_v59  ;;  %15558 = vmatprep.subr.mxu1 %v19161_v0 }
 0x6b4   : > { %15554 = vmatpush3.msra.mxu0 %v19191_v52  ;;  %15555 = vmatprep.mubr.msk.f32.mxu0 %vm16241_vm0, %v19161_v0 }
 0x6b5   : > { %15551 = vmatmul.mubr.msk.f32.vlgmr.msra.gmra.mxu1 %vm777_vm3, %v8517_v5  ;;  %15563 = vmatprep.subr.mxu0 %v19161_v0 }
 0x6b6   : > { %15559 = vmatpush3.msra.mxu1 %v19192_v12  ;;  %15560 = vmatprep.mubr.msk.f32.mxu1 %vm16241_vm0, %v19161_v0 }
 0x6b7   : > { %15556 = vmatmul.mubr.msk.f32.vlgmr.msra.gmra.mxu0 %vm777_vm3, %v8519_v16  ;;  %15568 = vmatprep.subr.mxu1 %v19161_v0 }
 0x6b8   : > { %15564 = vmatpush3.msra.mxu0 %v19193_v25  ;;  %15565 = vmatprep.mubr.msk.f32.mxu0 %vm16241_vm0, %v19161_v0 }
 0x6b9   : > { %15561 = vmatmul.mubr.msk.f32.vlgmr.msra.gmra.mxu1 %vm777_vm3, %v8521_v14  ;;  %15573 = vmatprep.subr.mxu0 %v19161_v0 }
 0x6ba   : > { %15569 = vmatpush3.msra.mxu1 %v18302_v41  ;;  %15570 = vmatprep.mubr.msk.f32.mxu1 %vm16241_vm0, %v19161_v0 }
 0x6bb   : > { %v8295_v38 = vpop.xlane.xlu1 %8294  ;;  %15566 = vmatmul.mubr.msk.f32.vlgmr.msra.gmra.mxu0 %vm777_vm3, %v8545_v45  ;;  %15578 = vmatprep.subr.mxu1 %v19161_v0 }
 0x6bc   : > { %15945 = vrcp.f32 %v8295_v38  ;;  %15574 = vmatpush3.msra.mxu0 %v18329_v13  ;;  %15575 = vmatprep.mubr.msk.f32.mxu0 %vm16241_vm0, %v19161_v0 }
 0x6bd   : > { %15571 = vmatmul.mubr.msk.f32.vlgmr.msra.gmra.mxu1 %vm777_vm3, %v8559_v53  ;;  %15583 = vmatprep.subr.mxu0 %v19161_v0 }
 0x6be   : > { %15579 = vmatpush3.msra.mxu1 %v18357_v21  ;;  %15580 = vmatprep.mubr.msk.f32.mxu1 %vm16241_vm0, %v19161_v0 }
 0x6bf   : > { %15576 = vmatmul.mubr.msk.f32.vlgmr.msra.gmra.mxu0 %vm777_vm3, %v8567_v46  ;;  %15588 = vmatprep.subr.mxu1 %v19161_v0  ;;  %v1325_v35 = vpop.permute.xlu1 %1324 }
 0x6c0   : > { %15584 = vmatpush3.msra.mxu0 %v18595_v37  ;;  %15585 = vmatprep.mubr.msk.f32.mxu0 %vm16241_vm0, %v19161_v0 }
 0x6c1   : > { %15581 = vmatmul.mubr.msk.f32.vlgmr.msra.gmra.mxu1 %vm777_vm3, %v8569_v9  ;;  %15593 = vmatprep.subr.mxu0 %v19161_v0 }
 0x6c2   : > { %15589 = vmatpush3.msra.mxu1 %v18493_v26  ;;  %15590 = vmatprep.mubr.msk.f32.mxu1 %vm16241_vm0, %v19161_v0 }
 0x6c3   : > { %15586 = vmatmul.mubr.msk.f32.vlgmr.msra.gmra.mxu0 %vm777_vm3, %v8552_v15  ;;  %15598 = vmatprep.subr.mxu1 %v19161_v0 }
 0x6c4   : > { %15594 = vmatpush3.msra.mxu0 %v1325_v35  ;;  %15595 = vmatprep.mubr.msk.f32.mxu0 %vm16241_vm0, %v19161_v0 }
 0x6c5   : > { %15591 = vmatmul.mubr.msk.f32.vlgmr.msra.gmra.mxu1 %vm777_vm3, %v8566_v29  ;;  %15603 = vmatprep.subr.mxu0 %v19161_v0 }
 0x6c6   : > { %15599 = vmatpush3.msra.mxu1 %v18502_v27  ;;  %15600 = vmatprep.mubr.msk.f32.mxu1 %vm16241_vm0, %v19161_v0 }
 0x6c7   : > { %15596 = vmatmul.mubr.msk.f32.vlgmr.msra.gmra.mxu0 %vm777_vm3, %v8568_v34  ;;  %15608 = vmatprep.subr.mxu1 %v19161_v0 }
 0x6c8   : > { %15604 = vmatpush3.msra.mxu0 %v19193_v25  ;;  %15605 = vmatprep.mubr.msk.f32.mxu0 %vm16241_vm0, %v19161_v0 }
 0x6c9   : > { %v15946_v51 = vpop.eup %15945  ;;  %15601 = vmatmul.mubr.msk.f32.vlgmr.msra.gmra.mxu1 %vm777_vm3, %v8570_v50  ;;  %15613 = vmatprep.subr.mxu0 %v19161_v0 }
 0x6ca   : > { %v18655_v11 = vmul.f32 %v15946_v51, %v18344_v20  ;;  %15609 = vmatpush3.msra.mxu1 %v18302_v41  ;;  %15610 = vmatprep.mubr.msk.f32.mxu1 %vm16241_vm0, %v19161_v0 }
 0x6cb   : > { %15618 = vmatprep.subr.mxu1 %v19161_v0 }
 0x6cc   : > { %v8571_v42 = vcombine.high %v18655_v11, %v18655_v11  ;;  %v8578_v36 = vrot.slane %v18655_v11, %v16883_v58 }
 0x6ce   : > { %v8594_v17 = vrot.slane %v8578_v36, %v16883_v58  ;;  %v8586_v63 = vcombine.high %v8578_v36, %v8578_v36  ;;  %v8585_v40 = vrot.slane %v8571_v42, %v16883_v58 }
 0x6d0   : > { %15606 = vmatmul.mubr.msk.f32.vlgmr.msra.gmra.mxu0 %vm777_vm3, %v8594_v17  ;;  %v8298_v20 = vpop.xlane.xlu0 %8297  ;;  %v8608_v41 = vrot.slane %v8586_v63, %v16883_v58  ;;  %v8616_v18 = vcombine.high %v8594_v17, %v8594_v17 }
 0x6d1   : > { %15614 = vmatpush3.msra.mxu0 %v18329_v13  ;;  %15947 = vrcp.f32 %v8298_v20  ;;  %15615 = vmatprep.mubr.msk.f32.mxu0 %vm16241_vm0, %v19161_v0  ;;  %v8587_v13 = vcombine.high %v8585_v40, %v8585_v40 }
 0x6d2   : > { %15611 = vmatmul.mubr.msk.f32.vlgmr.msra.gmra.mxu1 %vm777_vm3, %v8608_v41  ;;  %15623 = vmatprep.subr.mxu0 %v19161_v0  ;;  %v8618_v31 = vcombine.high %v8608_v41, %v8608_v41 }
 0x6d3   : > { %15619 = vmatpush3.msra.mxu1 %v18357_v21  ;;  %15620 = vmatprep.mubr.msk.f32.mxu1 %vm16241_vm0, %v19161_v0  ;;  %v8601_v21 = vrot.slane %v8585_v40, %v16883_v58  ;;  %v8615_v8 = vrot.slane %v8587_v13, %v16883_v58 }
 0x6d4   : > { %15616 = vmatmul.mubr.msk.f32.vlgmr.msra.gmra.mxu0 %vm777_vm3, %v8616_v18  ;;  %15628 = vmatprep.subr.mxu1 %v19161_v0  ;;  %v18687_v44 = vpop.permute.xlu0 %1342 }
 0x6d5   : > { %15624 = vmatpush3.msra.mxu0 %v18595_v37  ;;  %15625 = vmatprep.mubr.msk.f32.mxu0 %vm16241_vm0, %v19161_v0  ;;  %v8617_v24 = vcombine.high %v8601_v21, %v8601_v21 }
 0x6d6   : > { %15621 = vmatmul.mubr.msk.f32.vlgmr.msra.gmra.mxu1 %vm777_vm3, %v8618_v31  ;;  %15633 = vmatprep.subr.mxu0 %v19161_v0 }
 0x6d7   : > { %15629 = vmatpush3.msra.mxu1 %v18493_v26  ;;  %15630 = vmatprep.mubr.msk.f32.mxu1 %vm16241_vm0, %v19161_v0  ;;  %v8619_v26 = vcombine.high %v8615_v8, %v8615_v8 }
 0x6d8   : > { %15626 = vmatmul.mubr.msk.f32.vlgmr.msra.gmra.mxu0 %vm777_vm3, %v8601_v21  ;;  %15638 = vmatprep.subr.mxu1 %v19161_v0  ;;  %v18704_v52 = vpop.permute.xlu0 %1344 }
 0x6d9   : > { %15634 = vmatpush3.msra.mxu0 %v1325_v35  ;;  %15635 = vmatprep.mubr.msk.f32.mxu0 %vm16241_vm0, %v19161_v0 }
 0x6da   : > { %15631 = vmatmul.mubr.msk.f32.vlgmr.msra.gmra.mxu1 %vm777_vm3, %v8615_v8  ;;  %15643 = vmatprep.subr.mxu0 %v19161_v0 }
 0x6db   : > { %15639 = vmatpush3.msra.mxu1 %v18502_v27  ;;  %15640 = vmatprep.mubr.msk.f32.mxu1 %vm16241_vm0, %v19161_v0 }
 0x6dc   : > { %15636 = vmatmul.mubr.msk.f32.vlgmr.msra.gmra.mxu0 %vm777_vm3, %v8617_v24  ;;  %15648 = vmatprep.subr.mxu1 %v19161_v0  ;;  %v18722_v4 = vpop.permute.xlu0 %1346 }
 0x6dd   : > { %15644 = vmatpush3.msra.mxu0 %v18624_v47  ;;  %15645 = vmatprep.mubr.msk.f32.mxu0 %vm16241_vm0, %v19161_v0 }
 0x6de   : > { %v15948_v49 = vpop.eup %15947  ;;  %15641 = vmatmul.mubr.msk.f32.vlgmr.msra.gmra.mxu1 %vm777_vm3, %v8619_v26  ;;  %15653 = vmatprep.subr.mxu0 %v19161_v0 }
 0x6df   : > { %v18712_v27 = vmul.f32 %v15948_v49, %v18348_v62  ;;  %15649 = vmatpush3.msra.mxu1 %v18642_v23  ;;  %15650 = vmatprep.mubr.msk.f32.mxu1 %vm16241_vm0, %v19161_v0 }
 0x6e0   : > { %15658 = vmatprep.subr.mxu1 %v19161_v0  ;;  %v18736_v39 = vpop.permute.xlu0 %1348 }
 0x6e1   : > { %v8620_v12 = vcombine.high %v18712_v27, %v18712_v27  ;;  %v8627_v30 = vrot.slane %v18712_v27, %v16883_v58 }
 0x6e3   : > { %v8643_v3 = vrot.slane %v8627_v30, %v16883_v58  ;;  %v8635_v7 = vcombine.high %v8627_v30, %v8627_v30  ;;  %v8634_v57 = vrot.slane %v8620_v12, %v16883_v58 }
 0x6e4   : > { %v1351_v5 = vpop.permute.xlu0 %1350 }
 0x6e5   : > { %15646 = vmatmul.mubr.msk.f32.vlgmr.msra.gmra.mxu0 %vm777_vm3, %v8643_v3  ;;  %v8657_v62 = vrot.slane %v8635_v7, %v16883_v58  ;;  %v8665_v19 = vcombine.high %v8643_v3, %v8643_v3  ;;  %v8636_v2 = vcombine.high %v8634_v57, %v8634_v57  ;;  %v8650_v1 = vrot.slane %v8634_v57, %v16883_v58 }
 0x6e6   : > { %15654 = vmatpush3.msra.mxu0 %v18661_v56  ;;  %15655 = vmatprep.mubr.msk.f32.mxu0 %vm16241_vm0, %v19161_v0 }
 0x6e7   : > { %15651 = vmatmul.mubr.msk.f32.vlgmr.msra.gmra.mxu1 %vm777_vm3, %v8657_v62  ;;  %15663 = vmatprep.subr.mxu0 %v19161_v0  ;;  %v8667_v43 = vcombine.high %v8657_v62, %v8657_v62  ;;  %v8664_v59 = vrot.slane %v8636_v2, %v16883_v58  ;;  %v8666_v28 = vcombine.high %v8650_v1, %v8650_v1 }
 0x6e8   : > { %15659 = vmatpush3.msra.mxu1 %v18687_v44  ;;  %15660 = vmatprep.mubr.msk.f32.mxu1 %vm16241_vm0, %v19161_v0  ;;  %v13327_v55 = vpop.permute.xlu0 %13326 }
 0x6e9   : > { %15656 = vmatmul.mubr.msk.f32.vlgmr.msra.gmra.mxu0 %vm777_vm3, %v8665_v19  ;;  %15668 = vmatprep.subr.mxu1 %v19161_v0  ;;  %v8668_v37 = vcombine.high %v8664_v59, %v8664_v59 }
 0x6ea   : > { %15664 = vmatpush3.msra.mxu0 %v18704_v52  ;;  %15665 = vmatprep.mubr.msk.f32.mxu0 %vm16241_vm0, %v19161_v0 }
 0x6eb   : > { %15661 = vmatmul.mubr.msk.f32.vlgmr.msra.gmra.mxu1 %vm777_vm3, %v8667_v43  ;;  %15673 = vmatprep.subr.mxu0 %v19161_v0 }
 0x6ec   : > { %15669 = vmatpush3.msra.mxu1 %v18722_v4  ;;  %15670 = vmatprep.mubr.msk.f32.mxu1 %vm16241_vm0, %v19161_v0 }
 0x6ed   : > { %15666 = vmatmul.mubr.msk.f32.vlgmr.msra.gmra.mxu0 %vm777_vm3, %v8650_v1  ;;  %15678 = vmatprep.subr.mxu1 %v19161_v0 }
 0x6ee   : > { %15674 = vmatpush3.msra.mxu0 %v18736_v39  ;;  %15675 = vmatprep.mubr.msk.f32.mxu0 %vm16241_vm0, %v19161_v0 }
 0x6ef   : > { %15671 = vmatmul.mubr.msk.f32.vlgmr.msra.gmra.mxu1 %vm777_vm3, %v8664_v59  ;;  %15683 = vmatprep.subr.mxu0 %v19161_v0 }
 0x6f0   : > { %v8301_v16 = vpop.xlane.xlu1 %8300  ;;  %15679 = vmatpush3.msra.mxu1 %v1351_v5  ;;  %15680 = vmatprep.mubr.msk.f32.mxu1 %vm16241_vm0, %v19161_v0 }
 0x6f1   : > { %15949 = vrcp.f32 %v8301_v16  ;;  %15676 = vmatmul.mubr.msk.f32.vlgmr.msra.gmra.mxu0 %vm777_vm3, %v8666_v28  ;;  %15688 = vmatprep.subr.mxu1 %v19161_v0 }
 0x6f2   : > { %15684 = vmatpush3.msra.mxu0 %v18624_v47  ;;  %15685 = vmatprep.mubr.msk.f32.mxu0 %vm16241_vm0, %v19161_v0 }
 0x6f3   : > { %15681 = vmatmul.mubr.msk.f32.vlgmr.msra.gmra.mxu1 %vm777_vm3, %v8668_v37  ;;  %15693 = vmatprep.subr.mxu0 %v19161_v0 }
 0x6f4   : > { %15689 = vmatpush3.msra.mxu1 %v18642_v23  ;;  %15690 = vmatprep.mubr.msk.f32.mxu1 %vm16241_vm0, %v19161_v0 }
 0x6f5   : > { %15698 = vmatprep.subr.mxu1 %v19161_v0 }
 0x6fe   : > { %v15950_v14 = vpop.eup %15949 }
 0x6ff   : > { %v18771_v54 = vmul.f32 %v15950_v14, %v18371_v48  ;;  %v13523_v48 = vpop.permute.xlu0 %13522 }
 0x701   : > { %v8669_v25 = vcombine.high %v18771_v54, %v18771_v54  ;;  %v8676_v45 = vrot.slane %v18771_v54, %v16883_v58 }
 0x703   : > { %v8692_v38 = vrot.slane %v8676_v45, %v16883_v58  ;;  %v8684_v53 = vcombine.high %v8676_v45, %v8676_v45  ;;  %v8683_v46 = vrot.slane %v8669_v25, %v16883_v58  ;;  %v13621_v35 = vpop.permute.xlu0 %13620 }
 0x705   : > { %15686 = vmatmul.mubr.msk.f32.vlgmr.msra.gmra.mxu0 %vm777_vm3, %v8692_v38  ;;  %v8706_v10 = vrot.slane %v8684_v53, %v16883_v58  ;;  %v8714_v9 = vcombine.high %v8692_v38, %v8692_v38  ;;  %v8685_v47 = vcombine.high %v8683_v46, %v8683_v46  ;;  %v8699_v15 = vrot.slane %v8683_v46, %v16883_v58 }
 0x706   : > { %15694 = vmatpush3.msra.mxu0 %v18661_v56  ;;  %15695 = vmatprep.mubr.msk.f32.mxu0 %vm16241_vm0, %v19161_v0 }
 0x707   : > { %15691 = vmatmul.mubr.msk.f32.vlgmr.msra.gmra.mxu1 %vm777_vm3, %v8706_v10  ;;  %15703 = vmatprep.subr.mxu0 %v19161_v0  ;;  %v8716_v32 = vcombine.high %v8706_v10, %v8706_v10  ;;  %v8713_v29 = vrot.slane %v8685_v47, %v16883_v58  ;;  %v8715_v34 = vcombine.high %v8699_v15, %v8699_v15  ;;  %v13425_v58 = vpop.permute.xlu1 %13424  ;;  %v13719_v50 = vpop.permute.xlu0 %13718 }
 0x708   : > { %15699 = vmatpush3.msra.mxu1 %v18687_v44  ;;  %15700 = vmatprep.mubr.msk.f32.mxu1 %vm16241_vm0, %v19161_v0 }
 0x709   : > { %15696 = vmatmul.mubr.msk.f32.vlgmr.msra.gmra.mxu0 %vm777_vm3, %v8714_v9  ;;  %15708 = vmatprep.subr.mxu1 %v19161_v0  ;;  %v8717_v23 = vcombine.high %v8713_v29, %v8713_v29 }
 0x70a   : > { %15704 = vmatpush3.msra.mxu0 %v18704_v52  ;;  %15705 = vmatprep.mubr.msk.f32.mxu0 %vm16241_vm0, %v19161_v0 }
 0x70b   : > { %15701 = vmatmul.mubr.msk.f32.vlgmr.msra.gmra.mxu1 %vm777_vm3, %v8716_v32  ;;  %15713 = vmatprep.subr.mxu0 %v19161_v0  ;;  %v13817_v51 = vpop.permute.xlu0 %13816 }
 0x70c   : > { %15709 = vmatpush3.msra.mxu1 %v18722_v4  ;;  %15710 = vmatprep.mubr.msk.f32.mxu1 %vm16241_vm0, %v19161_v0 }
 0x70d   : > { %15706 = vmatmul.mubr.msk.f32.vlgmr.msra.gmra.mxu0 %vm777_vm3, %v8699_v15  ;;  %15718 = vmatprep.subr.mxu1 %v19161_v0 }
 0x70e   : > { %15714 = vmatpush3.msra.mxu0 %v18736_v39  ;;  %15715 = vmatprep.mubr.msk.f32.mxu0 %vm16241_vm0, %v19161_v0 }
 0x70f   : > { %15711 = vmatmul.mubr.msk.f32.vlgmr.msra.gmra.mxu1 %vm777_vm3, %v8713_v29  ;;  %15723 = vmatprep.subr.mxu0 %v19161_v0 }
 0x710   : > { %15719 = vmatpush3.msra.mxu1 %v1351_v5  ;;  %15720 = vmatprep.mubr.msk.f32.mxu1 %vm16241_vm0, %v19161_v0 }
 0x711   : > { %15716 = vmatmul.mubr.msk.f32.vlgmr.msra.gmra.mxu0 %vm777_vm3, %v8715_v34  ;;  %15728 = vmatprep.subr.mxu1 %v19161_v0 }
 0x712   : > { %15724 = vmatpush3.msra.mxu0 %v13327_v55  ;;  %15725 = vmatprep.mubr.msk.f32.mxu0 %vm16241_vm0, %v19161_v0 }
 0x713   : > { %15721 = vmatmul.mubr.msk.f32.vlgmr.msra.gmra.mxu1 %vm777_vm3, %v8717_v23  ;;  %15733 = vmatprep.subr.mxu0 %v19161_v0 }
 0x714   : > { %15729 = vmatpush3.msra.mxu1 %v13425_v58  ;;  %15730 = vmatprep.mubr.msk.f32.mxu1 %vm16241_vm0, %v19161_v0 }
 0x715   : > { %15726 = vmatmul.mubr.msk.f32.vlgmr.msra.gmra.mxu0 %vm777_vm3, %v18360_v60  ;;  %15738 = vmatprep.subr.mxu1 %v19161_v0  ;;  %v13915_v60 = vpop.permute.xlu1 %13914 }
 0x716   : > { %15734 = vmatpush3.msra.mxu0 %v13523_v48  ;;  %15735 = vmatprep.mubr.msk.f32.mxu0 %vm16241_vm0, %v19161_v0 }
 0x717   : > { %15731 = vmatmul.mubr.msk.f32.vlgmr.msra.gmra.mxu1 %vm777_vm3, %v18389_v33  ;;  %15743 = vmatprep.subr.mxu0 %v19161_v0  ;;  %v14013_v33 = vpop.permute.xlu0 %14012 }
 0x718   : > { %15739 = vmatpush3.msra.mxu1 %v13621_v35  ;;  %15740 = vmatprep.mubr.msk.f32.mxu1 %vm16241_vm0, %v19161_v0 }
 0x719   : > { %15736 = vmatmul.mubr.msk.f32.vlgmr.msra.gmra.mxu0 %vm777_vm3, %v18496_v6  ;;  %15748 = vmatprep.subr.mxu1 %v19161_v0 }
 0x71a   : > { %15744 = vmatpush3.msra.mxu0 %v13719_v50  ;;  %15745 = vmatprep.mubr.msk.f32.mxu0 %vm16241_vm0, %v19161_v0 }
 0x71b   : > { %15741 = vmatmul.mubr.msk.f32.vlgmr.msra.gmra.mxu1 %vm777_vm3, %v18517_v61  ;;  %15753 = vmatprep.subr.mxu0 %v19161_v0 }
 0x71c   : > { %15749 = vmatpush3.msra.mxu1 %v13817_v51  ;;  %15750 = vmatprep.mubr.msk.f32.mxu1 %vm16241_vm0, %v19161_v0 }
 0x71d   : > { %15746 = vmatmul.mubr.msk.f32.vlgmr.msra.gmra.mxu0 %vm777_vm3, %v18569_v22  ;;  %15758 = vmatprep.subr.mxu1 %v19161_v0 }
 0x71e   : > { %15754 = vmatpush3.msra.mxu0 %v13915_v60  ;;  %15755 = vmatprep.mubr.msk.f32.mxu0 %vm16241_vm0, %v19161_v0 }
 0x71f   : > { %15751 = vmatmul.mubr.msk.f32.vlgmr.msra.gmra.mxu1 %vm777_vm3, %v18655_v11 }
 0x720   : > { %15759 = vmatpush3.msra.mxu1 %v14013_v33  ;;  %15760 = vmatprep.mubr.msk.f32.mxu1 %vm16241_vm0, %v19161_v0 }
 0x721   : > { %15756 = vmatmul.mubr.msk.f32.vlgmr.msra.gmra.mxu0 %vm777_vm3, %v18712_v27 }
 0x723   : > { %v8786_v6 = vpop.f32.mrf.mxu0  ;;  %15761 = vmatmul.mubr.msk.f32.vlgmr.msra.gmra.mxu1 %vm777_vm3, %v18771_v54 }
 0x725   : > { %v15407_v61 = vpop.f32.mrf.mxu0  ;;  %v8858_v22 = vpop.f32.mrf.mxu1 }
 0x726   : > { %v13337_v56 = vrot.slane %v8858_v22, 7 }
 0x727   : > { %v15412_v42 = vpop.f32.mrf.mxu1  ;;  %v8930_v36 = vpop.f32.mrf.mxu0 }
 0x728   : > { %v13338_v17 = vsel %vm627_vm2, %v13337_v56, %v8786_v6  ;;  %v13339_v63 = vrot.slane %v8930_v36, 6 }
 0x729   : > { %v15417_v11 = vpop.f32.mrf.mxu0  ;;  %v9002_v20 = vpop.f32.mrf.mxu1 }
 0x72a   : > { %v13340_v41 = vsel %vm6437_vm4, %v13339_v63, %v13338_v17  ;;  %v13341_v0 = vrot.slane %v9002_v20, 5 }
 0x72b   : > { %v15422_v40 = vpop.f32.mrf.mxu1  ;;  %v9074_v18 = vpop.f32.mrf.mxu0 }
 0x72c   : > { %v13342_v31 = vsel %vm6440_vm5, %v13341_v0, %v13340_v41  ;;  %v13343_v13 = vrot.slane %v9074_v18, 4 }
 0x72d   : > { %v15427_v21 = vpop.f32.mrf.mxu0  ;;  %v9146_v44 = vpop.f32.mrf.mxu1 }
 0x72e   : > { %v13344_v8 = vsel %vm6443_vm6, %v13343_v13, %v13342_v31  ;;  %v13345_v24 = vrot.slane %v9146_v44, 3 }
 0x72f   : > { %v15432_v26 = vpop.f32.mrf.mxu1  ;;  %v9218_v52 = vpop.f32.mrf.mxu0 }
 0x730   : > { %v13346_v49 = vsel %vm6446_vm7, %v13345_v24, %v13344_v8  ;;  %v13347_v27 = vrot.slane %v9218_v52, 2 }
 0x731   : > { %v15437_v12 = vpop.f32.mrf.mxu0  ;;  %v9290_v30 = vpop.f32.mrf.mxu1 }
 0x732   : > { %v13349_v4 = vrot.slane %v9290_v30, 1  ;;  %v13348_v3 = vsel %vm6449_vm8, %v13347_v27, %v13346_v49 }
 0x733   : > { %v15442_v7 = vpop.f32.mrf.mxu1 }
 0x734   : > { %v9362_v62 = vpop.f32.mrf.mxu0  ;;  %v18858_v57 = vsel %vm6452_vm9, %v13349_v4, %v13348_v3 }
 0x736   : > { %v15447_v19 = vpop.f32.mrf.mxu0  ;;  %v9434_v39 = vpop.f32.mrf.mxu1 }
 0x737   : > { %v13435_v43 = vrot.slane %v9434_v39, 7 }
 0x738   : > { %v15452_v2 = vpop.f32.mrf.mxu1  ;;  %v9506_v1 = vpop.f32.mrf.mxu0 }
 0x739   : > { %v13436_v59 = vsel %vm627_vm2, %v13435_v43, %v9362_v62  ;;  %v13437_v5 = vrot.slane %v9506_v1, 6 }
 0x73a   : > { %v15457_v28 = vpop.f32.mrf.mxu0  ;;  %v9578_v16 = vpop.f32.mrf.mxu1 }
 0x73b   : > { %v13438_v37 = vsel %vm6437_vm4, %v13437_v5, %v13436_v59  ;;  %v13439_v14 = vrot.slane %v9578_v16, 5 }
 0x73c   : > { %v15462_v54 = vpop.f32.mrf.mxu1 }
 0x73d   : > { %v13440_v55 = vsel %vm6440_vm5, %v13439_v14, %v13438_v37  ;;  %v9650_v25 = vpop.f32.mrf.mxu0 }
 0x73e   : > { %v13441_v45 = vrot.slane %v9650_v25, 4 }
 0x73f   : > { %v15467_v38 = vpop.f32.mrf.mxu0 }
 0x740   : > { %v13442_v53 = vsel %vm6443_vm6, %v13441_v45, %v13440_v55  ;;  %v9722_v10 = vpop.f32.mrf.mxu1 }
 0x741   : > { %v13443_v46 = vrot.slane %v9722_v10, 3 }
 0x742   : > { %v15472_v48 = vpop.f32.mrf.mxu1 }
 0x743   : > { %v13444_v9 = vsel %vm6446_vm7, %v13443_v46, %v13442_v53  ;;  %v9794_v32 = vpop.f32.mrf.mxu0 }
 0x744   : > { %v13445_v47 = vrot.slane %v9794_v32, 2 }
 0x745   : > { %v15477_v15 = vpop.f32.mrf.mxu0  ;;  %v9866_v35 = vpop.f32.mrf.mxu1 }
 0x746   : > { %v13447_v29 = vrot.slane %v9866_v35, 1  ;;  %v13446_v34 = vsel %vm6449_vm8, %v13445_v47, %v13444_v9 }
 0x747   : > { %v15482_v23 = vpop.f32.mrf.mxu1 }
 0x748   : > { %v18867_v58 = vsel %vm6452_vm9, %v13447_v29, %v13446_v34 }
 0x75b   : > { %v9938_v50 = vpop.f32.mrf.mxu0 }
 0x75d   : > { %v15487_v51 = vpop.f32.mrf.mxu0  ;;  %v10010_v60 = vpop.f32.mrf.mxu1 }
 0x75e   : > { %v13533_v33 = vrot.slane %v10010_v60, 7 }
 0x75f   : > { %v15492_v6 = vpop.f32.mrf.mxu1  ;;  %v10082_v61 = vpop.f32.mrf.mxu0 }
 0x760   : > { %v13534_v22 = vsel %vm627_vm2, %v13533_v33, %v9938_v50  ;;  %v13535_v56 = vrot.slane %v10082_v61, 6 }
 0x761   : > { %v15497_v42 = vpop.f32.mrf.mxu0  ;;  %v10154_v36 = vpop.f32.mrf.mxu1 }
 0x762   : > { %v13536_v17 = vsel %vm6437_vm4, %v13535_v56, %v13534_v22  ;;  %v13537_v63 = vrot.slane %v10154_v36, 5 }
 0x763   : > { %v15502_v11 = vpop.f32.mrf.mxu1  ;;  %v10226_v20 = vpop.f32.mrf.mxu0 }
 0x764   : > { %v13538_v41 = vsel %vm6440_vm5, %v13537_v63, %v13536_v17  ;;  %v13539_v0 = vrot.slane %v10226_v20, 4 }
 0x765   : > { %v15507_v40 = vpop.f32.mrf.mxu0  ;;  %v10298_v18 = vpop.f32.mrf.mxu1 }
 0x766   : > { %v13540_v31 = vsel %vm6443_vm6, %v13539_v0, %v13538_v41  ;;  %v13541_v13 = vrot.slane %v10298_v18, 3 }
 0x767   : > { %v15512_v21 = vpop.f32.mrf.mxu1  ;;  %v10370_v44 = vpop.f32.mrf.mxu0 }
 0x768   : > { %v13542_v8 = vsel %vm6446_vm7, %v13541_v13, %v13540_v31  ;;  %v13543_v24 = vrot.slane %v10370_v44, 2 }
 0x769   : > { %v15517_v26 = vpop.f32.mrf.mxu0  ;;  %v10442_v52 = vpop.f32.mrf.mxu1 }
 0x76a   : > { %v13545_v49 = vrot.slane %v10442_v52, 1  ;;  %v13544_v27 = vsel %vm6449_vm8, %v13543_v24, %v13542_v8 }
 0x76b   : > { %v15522_v12 = vpop.f32.mrf.mxu1  ;;  %v10514_v30 = vpop.f32.mrf.mxu0 }
 0x76c   : > { %v18876_v4 = vsel %vm6452_vm9, %v13545_v49, %v13544_v27 }
 0x76d   : > { %v15527_v3 = vpop.f32.mrf.mxu0  ;;  %v10586_v7 = vpop.f32.mrf.mxu1 }
 0x76e   : > { %v13631_v62 = vrot.slane %v10586_v7, 7 }
 0x76f   : > { %v15532_v19 = vpop.f32.mrf.mxu1  ;;  %v10658_v39 = vpop.f32.mrf.mxu0 }
 0x770   : > { %v13632_v43 = vsel %vm627_vm2, %v13631_v62, %v10514_v30  ;;  %v13633_v2 = vrot.slane %v10658_v39, 6 }
 0x771   : > { %v15537_v1 = vpop.f32.mrf.mxu0  ;;  %v10730_v59 = vpop.f32.mrf.mxu1 }
 0x772   : > { %v13634_v5 = vsel %vm6437_vm4, %v13633_v2, %v13632_v43  ;;  %v13635_v28 = vrot.slane %v10730_v59, 5 }
 0x773   : > { %v15542_v16 = vpop.f32.mrf.mxu1  ;;  %v10802_v37 = vpop.f32.mrf.mxu0 }
 0x774   : > { %v13636_v14 = vsel %vm6440_vm5, %v13635_v28, %v13634_v5  ;;  %v13637_v54 = vrot.slane %v10802_v37, 4 }
 0x775   : > { %v15547_v55 = vpop.f32.mrf.mxu0  ;;  %v10874_v25 = vpop.f32.mrf.mxu1 }
 0x776   : > { %v13638_v45 = vsel %vm6443_vm6, %v13637_v54, %v13636_v14  ;;  %v13639_v38 = vrot.slane %v10874_v25, 3 }
 0x777   : > { %v15552_v53 = vpop.f32.mrf.mxu1  ;;  %v10946_v10 = vpop.f32.mrf.mxu0 }
 0x778   : > { %v13640_v46 = vsel %vm6446_vm7, %v13639_v38, %v13638_v45  ;;  %v13641_v48 = vrot.slane %v10946_v10, 2 }
 0x779   : > { %v15557_v9 = vpop.f32.mrf.mxu0  ;;  %v11018_v32 = vpop.f32.mrf.mxu1 }
 0x77a   : > { %v13643_v47 = vrot.slane %v11018_v32, 1  ;;  %v13642_v15 = vsel %vm6449_vm8, %v13641_v48, %v13640_v46 }
 0x77b   : > { %v15562_v35 = vpop.f32.mrf.mxu1  ;;  %v11090_v29 = vpop.f32.mrf.mxu0 }
 0x77c   : > { %v18885_v34 = vsel %vm6452_vm9, %v13643_v47, %v13642_v15 }
 0x77d   : > { %v15567_v23 = vpop.f32.mrf.mxu0  ;;  %v11162_v50 = vpop.f32.mrf.mxu1 }
 0x77e   : > { %v13729_v51 = vrot.slane %v11162_v50, 7 }
 0x77f   : > { %v15572_v60 = vpop.f32.mrf.mxu1  ;;  %v11234_v33 = vpop.f32.mrf.mxu0 }
 0x780   : > { %v13730_v6 = vsel %vm627_vm2, %v13729_v51, %v11090_v29  ;;  %v13731_v61 = vrot.slane %v11234_v33, 6 }
 0x781   : > { %v15577_v22 = vpop.f32.mrf.mxu0  ;;  %v11306_v56 = vpop.f32.mrf.mxu1 }
 0x782   : > { %v13732_v42 = vsel %vm6437_vm4, %v13731_v61, %v13730_v6  ;;  %v13733_v36 = vrot.slane %v11306_v56, 5 }
 0x783   : > { %v15582_v17 = vpop.f32.mrf.mxu1  ;;  %v11378_v63 = vpop.f32.mrf.mxu0 }
 0x784   : > { %v13734_v11 = vsel %vm6440_vm5, %v13733_v36, %v13732_v42  ;;  %v13735_v20 = vrot.slane %v11378_v63, 4 }
 0x785   : > { %v15587_v41 = vpop.f32.mrf.mxu0  ;;  %v11450_v0 = vpop.f32.mrf.mxu1 }
 0x786   : > { %v13736_v40 = vsel %vm6443_vm6, %v13735_v20, %v13734_v11  ;;  %v13737_v18 = vrot.slane %v11450_v0, 3 }
 0x787   : > { %v15592_v31 = vpop.f32.mrf.mxu1  ;;  %v11522_v13 = vpop.f32.mrf.mxu0 }
 0x788   : > { %v13738_v21 = vsel %vm6446_vm7, %v13737_v18, %v13736_v40  ;;  %v13739_v44 = vrot.slane %v11522_v13, 2 }
 0x789   : > { %v15597_v8 = vpop.f32.mrf.mxu0  ;;  %v11594_v24 = vpop.f32.mrf.mxu1 }
 0x78a   : > { %v13741_v26 = vrot.slane %v11594_v24, 1  ;;  %v13740_v52 = vsel %vm6449_vm8, %v13739_v44, %v13738_v21 }
 0x78b   : > { %v15602_v49 = vpop.f32.mrf.mxu1 }
 0x78c   : > { %v18894_v27 = vsel %vm6452_vm9, %v13741_v26, %v13740_v52 }
 0x790   : > { %v11666_v12 = vpop.f32.mrf.mxu0 }
 0x792   : > { %v15607_v30 = vpop.f32.mrf.mxu0  ;;  %v11738_v3 = vpop.f32.mrf.mxu1 }
 0x793   : > { %v13827_v7 = vrot.slane %v11738_v3, 7 }
 0x794   : > { %v15612_v62 = vpop.f32.mrf.mxu1  ;;  %v11810_v19 = vpop.f32.mrf.mxu0 }
 0x795   : > { %v13828_v39 = vsel %vm627_vm2, %v13827_v7, %v11666_v12  ;;  %v13829_v43 = vrot.slane %v11810_v19, 6 }
 0x796   : > { %v15617_v2 = vpop.f32.mrf.mxu0  ;;  %v11882_v1 = vpop.f32.mrf.mxu1 }
 0x797   : > { %v13830_v59 = vsel %vm6437_vm4, %v13829_v43, %v13828_v39  ;;  %v13831_v5 = vrot.slane %v11882_v1, 5 }
 0x798   : > { %v15622_v28 = vpop.f32.mrf.mxu1  ;;  %v11954_v16 = vpop.f32.mrf.mxu0 }
 0x799   : > { %v13832_v37 = vsel %vm6440_vm5, %v13831_v5, %v13830_v59  ;;  %v13833_v14 = vrot.slane %v11954_v16, 4 }
 0x79a   : > { %v15627_v54 = vpop.f32.mrf.mxu0  ;;  %v12026_v55 = vpop.f32.mrf.mxu1 }
 0x79b   : > { %v13834_v25 = vsel %vm6443_vm6, %v13833_v14, %v13832_v37  ;;  %v13835_v45 = vrot.slane %v12026_v55, 3 }
 0x79c   : > { %v15632_v38 = vpop.f32.mrf.mxu1  ;;  %v18900_v53 = vpop.f32.mrf.mxu0 }
 0x79d   : > { %v18903_v10 = vsel %vm6446_vm7, %v13835_v45, %v13834_v25  ;;  %v13837_v25 = vrot.slane %v18900_v53, 2 }
 0x79e   : > { %v15637_v46 = vpop.f32.mrf.mxu0  ;;  %v18905_v48 = vpop.f32.mrf.mxu1 }
 0x79f   : > { %v13839_v53 = vrot.slane %v18905_v48, 1 }
 0x7a0   : > { %v15642_v9 = vpop.f32.mrf.mxu1 }
 0x7a5   : > { %v12242_v32 = vpop.f32.mrf.mxu0 }
 0x7a7   : > { %v15647_v47 = vpop.f32.mrf.mxu0  ;;  %v12314_v15 = vpop.f32.mrf.mxu1 }
 0x7a8   : > { %v13925_v0 = vrot.slane %v12314_v15, 7  ;;  %v14150_v47 = vld [vmem:[#allocation11 + $0x18] sm:$0xff]  ;;  %v14149_v15 = vld [vmem:[#allocation11 + $0x10] sm:$0xff] }
 0x7a9   : > { %v15652_v35 = vpop.f32.mrf.mxu1  ;;  %v12386_v29 = vpop.f32.mrf.mxu0  ;;  %15763 = vmatprep.subr.mxu0 %v14150_v47 }
 0x7aa   : > { %v13927_v44 = vrot.slane %v12386_v29, 6  ;;  %v13926_v8 = vsel %vm627_vm2, %v13925_v0, %v12242_v32  ;;  %15764 = vmatpush3.msra.mxu0 %v14150_v47 }
 0x7ab   : > { %v15657_v23 = vpop.f32.mrf.mxu0  ;;  %v12458_v50 = vpop.f32.mrf.mxu1  ;;  %15765 = vmatprep.subr.mxu0 %v14149_v15 }
 0x7ac   : > { %v13929_v49 = vrot.slane %v12458_v50, 5  ;;  %v13928_v7 = vsel %vm6437_vm4, %v13927_v44, %v13926_v8  ;;  %15766 = vmatpush3.msra.mxu0 %v14149_v15 }
 0x7ad   : > { %v15662_v51 = vpop.f32.mrf.mxu1  ;;  %v12530_v60 = vpop.f32.mrf.mxu0 }
 0x7ae   : > { %v13931_v43 = vrot.slane %v12530_v60, 4  ;;  %v13930_v1 = vsel %vm6440_vm5, %v13929_v49, %v13928_v7  ;;  %v14148_v51 = vld [vmem:[#allocation11 + $0x8] sm:$0xff]  ;;  %v14674_v7 = vld [vmem:[%s19196_s16] ss:$0 sm:$0xff] }
 0x7af   : > { %v15667_v33 = vpop.f32.mrf.mxu0  ;;  %v12602_v6 = vpop.f32.mrf.mxu1  ;;  %15767 = vmatprep.subr.mxu0 %v14148_v51 }
 0x7b0   : > { %v13933_v37 = vrot.slane %v12602_v6, 3  ;;  %v13932_v45 = vsel %vm6443_vm6, %v13931_v43, %v13930_v1  ;;  %v13838_v6 = vsel %vm6449_vm8, %v13837_v25, %v18903_v10  ;;  %15768 = vmatpush3.msra.mxu0 %v14148_v51  ;;  %v19198_v43 = vld [vmem:[#allocation33_spill] sm:$0xff] }
 0x7b1   : > { %v15672_v61 = vpop.f32.mrf.mxu1  ;;  %v18907_v22 = vpop.f32.mrf.mxu0  ;;  %v13840_v10 = vsel %vm6452_vm9, %v13839_v53, %v13838_v6 }
 0x7b2   : > { %v13934_v23 = vsel %vm6446_vm7, %v13933_v37, %v13932_v45 }
 0x7b3   : > { %v15677_v56 = vpop.f32.mrf.mxu0  ;;  %v18909_v42 = vpop.f32.mrf.mxu1 }
 0x7b4   : > { %v14147_v56 = vld [vmem:[#allocation11] sm:$0xff] }
 0x7b5   : > { %v15682_v36 = vpop.f32.mrf.mxu1  ;;  %15769 = vmatprep.subr.mxu0 %v14147_v56 }
 0x7b6   : > { %15770 = vmatpush3.msra.mxu0 %v14147_v56 }
 0x7c5   : > { %v12818_v17 = vpop.f32.mrf.mxu0 }
 0x7c7   : > { %v15687_v63 = vpop.f32.mrf.mxu0  ;;  %v12890_v11 = vpop.f32.mrf.mxu1 }
 0x7c8   : > { %v14023_v31 = vrot.slane %v12890_v11, 7 }
 0x7c9   : > { %v15692_v20 = vpop.f32.mrf.mxu1  ;;  %v12962_v41 = vpop.f32.mrf.mxu0 }
 0x7ca   : > { %v14025_v52 = vrot.slane %v12962_v41, 6  ;;  %v14024_v12 = vsel %vm627_vm2, %v14023_v31, %v12818_v17 }
 0x7cb   : > { %v15697_v40 = vpop.f32.mrf.mxu0  ;;  %v13034_v18 = vpop.f32.mrf.mxu1 }
 0x7cc   : > { %v14027_v62 = vrot.slane %v13034_v18, 5  ;;  %v14026_v2 = vsel %vm6437_vm4, %v14025_v52, %v14024_v12 }
 0x7cd   : > { %v15702_v13 = vpop.f32.mrf.mxu1  ;;  %v13106_v21 = vpop.f32.mrf.mxu0 }
 0x7ce   : > { %v14029_v28 = vrot.slane %v13106_v21, 4  ;;  %v14028_v14 = vsel %vm6440_vm5, %v14027_v62, %v14026_v2 }
 0x7cf   : > { %v15707_v24 = vpop.f32.mrf.mxu0  ;;  %v13178_v26 = vpop.f32.mrf.mxu1 }
 0x7d0   : > { %v14031_v46 = vrot.slane %v13178_v26, 3  ;;  %v14030_v35 = vsel %vm6443_vm6, %v14029_v28, %v14028_v14 }
 0x7d1   : > { %v15712_v30 = vpop.f32.mrf.mxu1  ;;  %v13250_v3 = vpop.f32.mrf.mxu0 }
 0x7d2   : > { %v14033_v60 = vrot.slane %v13250_v3, 2  ;;  %v14032_v48 = vsel %vm6446_vm7, %v14031_v46, %v14030_v35 }
 0x7d3   : > { %v15717_v19 = vpop.f32.mrf.mxu0  ;;  %v18914_v39 = vpop.f32.mrf.mxu1 }
 0x7d4   : > { %v14035_v17 = vrot.slane %v18914_v39, 1  ;;  %v14034_v20 = vsel %vm6449_vm8, %v14033_v60, %v14032_v48 }
 0x7d5   : > { %v15722_v59 = vpop.f32.mrf.mxu1  ;;  %v13420_v5 = vpop.f32.mrf.mxu0 }
 0x7d6   : > { %v13421_v16 = vadd.f32 %v13420_v5, %v18858_v57  ;;  %v13935_v57 = vrot.slane %v18907_v22, 2  ;;  %v14036_v31 = vsel %vm6452_vm9, %v14035_v17, %v14034_v20  ;;  %v19199_v59 = vld [vmem:[#allocation32_spill] sm:$0xff] }
 0x7d7   : > { %v15727_v54 = vpop.f32.mrf.mxu0  ;;  %v13518_v55 = vpop.f32.mrf.mxu1 }
 0x7d8   : > { %14110 = vst.msk [vmem:[#allocation2] sm:$0xff] %vm777_vm3, %v13421_v16  ;;  %v13519_v38 = vadd.f32 %v13518_v55, %v18867_v58 }
 0x7d9   : > { %v15732_v9 = vpop.f32.mrf.mxu1  ;;  %v13616_v32 = vpop.f32.mrf.mxu0 }
 0x7da   : > { %14111 = vst.msk [vmem:[#allocation2 + $0x8] sm:$0xff] %vm777_vm3, %v13519_v38  ;;  %v13617_v29 = vadd.f32 %v13616_v32, %v18876_v4  ;;  %v13937_v4 = vrot.slane %v18909_v42, 1 }
 0x7db   : > { %v15737_v50 = vpop.f32.mrf.mxu0  ;;  %v13714_v58 = vpop.f32.mrf.mxu1 }
 0x7dc   : > { %v13715_v33 = vadd.f32 %v13714_v58, %v18885_v34  ;;  %14114 = vrot.lane.b32.xlu1 %v13617_v29, %s16249_s9  ;;  %v13936_v34 = vsel %vm6449_vm8, %v13935_v57, %v13934_v23 }
 0x7dd   : > { %v15742_v61 = vpop.f32.mrf.mxu1  ;;  %v13812_v22 = vpop.f32.mrf.mxu0 }
 0x7de   : > { %v13813_v36 = vadd.f32 %v13812_v22, %v18894_v27  ;;  %14116 = vrot.lane.b32.xlu0 %v13715_v33, %s16249_s9  ;;  %v13938_v27 = vsel %vm6452_vm9, %v13937_v4, %v13936_v34 }
 0x7df   : > { %v15747_v63 = vpop.f32.mrf.mxu0  ;;  %v13910_v11 = vpop.f32.mrf.mxu1 }
 0x7e0   : > { %v13911_v42 = vadd.f32 %v13910_v11, %v13840_v10  ;;  %14125 = vrot.lane.b32.xlu1 %v13813_v36, %s16250_s7 }
 0x7e1   : > { %v15752_v41 = vpop.f32.mrf.mxu1  ;;  %v14008_v0 = vpop.f32.mrf.mxu0 }
 0x7e2   : > { %v14009_v40 = vadd.f32 %v14008_v0, %v13938_v27  ;;  %14127 = vrot.lane.b32.xlu0 %v13911_v42, %s16250_s7  ;;  %s19200_s7 = sld [smem:[#allocation65_spill]] }
 0x7e3   : > { %v15757_v18 = vpop.f32.mrf.mxu0  ;;  %v14106_v13 = vpop.f32.mrf.mxu1 }
 0x7e4   : > { %v14107_v21 = vadd.f32 %v14106_v13, %v14036_v31  ;;  %14136 = vrot.lane.b32.xlu1 %v14009_v40, %s16251_s19 }
 0x7e5   : > { %v15762_v44 = vpop.f32.mrf.mxu1 }
 0x7e6   : > { %14138 = vrot.lane.b32.xlu0 %v14107_v21, %s16251_s19 }
 0x7e8   : > { %s18961_s19 = scalar_lea.hbm %s19200_s7, %s14680_s6 }
 0x84e   : > { %v14115_v8 = vpop.permute.xlu1 %14114 }
 0x84f   : > { %14121 = vst.msk [vmem:[#allocation2] sm:$0xff] %vm14120_vm10, %v14115_v8 }
 0x850   : > { %v14117_v24 = vpop.permute.xlu0 %14116 }
 0x851   : > { %14122 = vst.msk [vmem:[#allocation2 + $0x8] sm:$0xff] %vm14120_vm10, %v14117_v24 }
 0x852   : > { %v14126_v26 = vpop.permute.xlu1 %14125 }
 0x853   : > { %14132 = vst.msk [vmem:[#allocation2] sm:$0xff] %vm14131_vm11, %v14126_v26 }
 0x854   : > { %v14128_v52 = vpop.permute.xlu0 %14127 }
 0x855   : > { %14133 = vst.msk [vmem:[#allocation2 + $0x8] sm:$0xff] %vm14131_vm11, %v14128_v52 }
 0x856   : > { %v14137_v49 = vpop.permute.xlu1 %14136 }
 0x857   : > { %14143 = vst.msk [vmem:[#allocation2] sm:$0xff] %vm14142_vm12, %v14137_v49 }
 0x858   : > { %v14139_v12 = vpop.permute.xlu0 %14138 }
 0x859   : > { %14144 = vst.msk [vmem:[#allocation2 + $0x8] sm:$0xff] %vm14142_vm12, %v14139_v12 }
 0x85e   : > { %v14145_v30 = vld [vmem:[#allocation2] sm:$0xff] }
 0x85f   : > { %15771 = vmatprep.mubr.msk.f32.mxu0 %vm585_vm1, %v14145_v30 }
 0x860   : > { %v14146_v3 = vld [vmem:[#allocation2 + $0x8] sm:$0xff] }
 0x861   : > { %15772 = vmatmul.mubr.msk.f32.vlgmr.msra.gmra.mxu0 %vm585_vm1, %v14146_v3 }
 0x921   : > { %v15773_v62 = vpop.f32.mrf.mxu0 }
 0x922   : > { %v14236_v19 = vadd.f32 %v15773_v62, %v14674_v7 }
 0x923   : > { %v14230_v39 = vpop.f32.mrf.mxu0 }
 0x924   : > { %v14240_v2 = vadd.f32 %v14236_v19, %v19198_v43  ;;  %v14231_v1 = vadd.f32 %v14674_v7, %v14230_v39 }
 0x926   : > { %14242 = vst.msk [vmem:[%s580_s2 + $0x8] sm:$0xff] %vm585_vm1, %v14240_v2  ;;  %v14239_v5 = vadd.f32 %v14231_v1, %v19199_v59 }
 0x928   : > { %14241 = vst.msk [vmem:[%s580_s2] sm:$0xff] %vm585_vm1, %v14239_v5 }
 0x929   : > { %16112 = shalt.err (!%p16109_p7)
}
 0x92a   : > { %s16113_s3 = scalar_lea.hbm %s18961_s19, 256  ;;  %s16117_s20 = scalar_lea.hbm %s19200_s7, 1024 }
 0x92b   : > { %p16114_p9 = scmp.ne.s32.totalorder %s18961_s19, %s16113_s3  ;;  %p16118_p10 = scmp.lt.s32.totalorder %s18961_s19, %s19200_s7 }
 0x92c   : > { %p16119_p4 = scmp.lt.s32.totalorder %s16117_s20, %s16113_s3 }
 0x92d   : > { %p16115_p1 = pnand %p16114_p9, %p16480_p3 }
 0x92e   : > { %p16120_p11 = por %p16119_p4, %p16118_p10 }
 0x92f   : > { %p16116_p13 = pneg %p16115_p1 }
 0x931   : > { %p16121_p12 = pnand %p16120_p11, %p16116_p13 }
 0x933   : > { %16124 = shalt.err (!%p16121_p12)
}
 0x934   : > { %s16253_s24 = smov 128  }
 0x935   : > { %15786 = dma.vmem_to_hbm [thread:$0]  (%p16480_p3), %s18954_s25, 256, %s18961_s19, %s14244_s11, %s16253_s24, %s16253_s24, %s16249_s9  }
 0x936 PF: > { %s19201_s5 = sld [smem:[#allocation19_spill]]  ;;  %p15812_p6 = scmp.ge.s32.totalorder %s16231_s13, 2 }
 0x937   : > { %s19202_s28 = sld [smem:[#allocation26_spill]] }
 0x93c   : > { %s14274_s12 = sand.u32 1, %s19201_s5  }
 0x93d   : > { %p19203_p5 = scmp.ne.s32.totalorder %s19202_s28, 0  ;;  %s14275_s10 = scalar_lea.sflag [#allocation5], %s14274_s12 }
 0x93f   : > { %p15806_p0 = pnand %p15812_p6, %p19203_p5 }
 0x941   : > { %p15807_p8 = pneg %p15806_p0 }
 0x943   : > { %16186 = dma.done.wait (%p15807_p8), %s14275_s10, 256  }
 0x944   : > { %16188 = vsyncadd (%p15807_p8), %s14275_s10, 4294967040  ;;  %s34_s13 = sadd.s32 1, %s16231_s13   ;;  %s19204_s21 = sld [smem:[#allocation18_spill]] }
 0x945   : > { %p31_p2 = scmp.ge.s32.totalorder %s34_s13, 6   ;;  %s19205_s1 = smov %s16493_s22 }
 0x946   : > { %s19206_s24 = sld [smem:[#allocation20_spill]]  ;;  %s19208_s15 = smov %s19222_s27 }
 0x947   : > { %s19207_s9 = sld [smem:[#allocation29_spill]]  ;;  %s19209_s22 = smov %s16199_s23 }
 0x948   : > { %s19210_s23 = smov %s19205_s1  ;;  %s19211_s25 = smov %s16211_s26 }
 0x949   : > { %s19212_s26 = smov %s16496_s14  ;;  %s19213_s27 = smov %s16223_s29 }
 0x94a   : > { %s19214_s28 = smov %s16227_s30  ;;  %s19216_s30 = smov %s19208_s15 }
 0x94b   :  { %33 = sbr.rel (!%p31_p2) target bundleno = 25 (0x19), region = 154 }
 0x94d   : > { %s19215_s29 = smov %s19207_s9 }
 0x950   :  { %14280 = vsyncpa [#allocation4], 1 }
 0x951   :  { %14282 = vsyncpa [#allocation4 + $0x1], 1 }
 0x952   :  { %14283 = vsyncpa [#allocation7], 1 }
 0x953   :  { %14285 = vsyncpa [#allocation7 + $0x1], 1 }
 0x954   :  { %14286 = vsyncpa [#allocation10], 1 }
 0x955   :  { %14288 = vsyncpa [#allocation10 + $0x1], 1 }
 0x956   :  { %14289 = vsyncpa [#allocation5], 1 }
 0x957   :  { %14291 = vsyncpa [#allocation5 + $0x1], 1 }

</bundles_post_ra>
